<compile_context>
chip_gen: v6e
topology: v6e:2x2x1
jax: 0.10.0
libtpu: 0.0.40
codegen_flags: <defaults>
</compile_context>

<pallas_src>
import functools

import jax
import jax.numpy as jnp
from jax import lax
from jax.experimental import pallas as pl
from jax.experimental.pallas import tpu as pltpu


def bilstm_kernel(x_ref, wih_ref, whh_ref, bias_ref, out_ref,
                  xg_f_ref, xg_b_ref, h_ref, *, fused):
    """Bidirectional LSTM over a full sequence resident in VMEM.

    x_ref:    (T*Bp, E) bf16   embedded tokens, time-major, batch padded to Bp
    wih_ref:  (E, 8H)   bf16   [wih_f | wih_b], gate order [i,f,o,g] per dir
    whh_ref:  fused:  (2H, 8H) bf16  blockdiag(whh_f, whh_b)
              split:  (2, H, 4H) bf16  stacked [whh_f; whh_b]
    bias_ref: (1, 8H)   f32    [b_ih_f + b_hh_f | b_ih_b + b_hh_b]
    out_ref:  (Bp, H)   f32    h_fwd_final + h_bwd_final
    xg_f_ref: (T, Bp, 4H) f32  scratch: x @ W_ih_f + b_f (forward gates)
    xg_b_ref: (T, Bp, 4H) f32  scratch: x @ W_ih_b + b_b (backward gates)
    h_ref:    (Bp, 2H)  f32    scratch: [h_f | h_b] matmul operand (fused path)
    """
    T, Bp, H4 = xg_f_ref.shape          # H4 = 4H
    H = H4 // 4

    # ---- Phase 1: hoist all input projections out of the recurrence --------
    # One large bf16 MXU matmul (bias folded) instead of 2*T tiny ones on the
    # serial critical path; slabs split per direction so the loop only loads
    # what it uses.
    xg = jnp.dot(x_ref[...], wih_ref[...],
                 preferred_element_type=jnp.float32) + bias_ref[...]
    xg = xg.reshape(T, Bp, 2 * H4)
    xg_f_ref[...] = xg[:, :, :H4]
    xg_b_ref[...] = xg[:, :, H4:]

    whh = whh_ref[...]                   # loop-invariant bf16 weights

    def gate_math(gates, c):
        # Repacked gate order [i, f, o, g]: one contiguous sigmoid over 3H
        # lanes and one tanh over H lanes -> 2 EUP issues per direction/step.
        ifo = jax.nn.sigmoid(gates[:, :3 * H])
        g = jnp.tanh(gates[:, 3 * H:])
        i = ifo[:, :H]
        f = ifo[:, H:2 * H]
        o = ifo[:, 2 * H:3 * H]
        c_new = f * c + i * g
        h_new = o * jnp.tanh(c_new)
        return h_new, c_new

    # ---- Phase 2: serial recurrence — only the h @ W_hh matmul per step ----
    def body(t, carry):
        h_f, c_f, h_b, c_b = carry                      # f32 (Bp, H) each
        gx_f = xg_f_ref[t]                              # (Bp, 4H)
        gx_b = xg_b_ref[T - 1 - t]                      # (Bp, 4H)
        if fused:
            # One K=2H (=256) block-diagonal MXU pass per step (v6e/v7x).
            gh = jnp.dot(h_ref[...].astype(jnp.bfloat16), whh,
                         preferred_element_type=jnp.float32)   # (Bp, 8H)
            gates_f = gx_f + gh[:, :H4]
            gates_b = gx_b + gh[:, H4:]
        else:
            # v5: two independent K=H (=128) matmuls; they still interleave
            # under unroll, and avoid doubling the MXU push count.
            gates_f = gx_f + jnp.dot(h_f.astype(jnp.bfloat16), whh[0],
                                     preferred_element_type=jnp.float32)
            gates_b = gx_b + jnp.dot(h_b.astype(jnp.bfloat16), whh[1],
                                     preferred_element_type=jnp.float32)
        h_f, c_f = gate_math(gates_f, c_f)
        h_b, c_b = gate_math(gates_b, c_b)
        if fused:
            # Write the two halves back into the fused matmul operand; this
            # replaces a per-step jnp.concatenate on the latency-bound chain.
            h_ref[:, :H] = h_f
            h_ref[:, H:] = h_b
        return h_f, c_f, h_b, c_b

    if fused:
        h_ref[...] = jnp.zeros_like(h_ref)
    zeros = jnp.zeros((Bp, H), jnp.float32)
    unroll = True if T <= 16 else 8
    h_f, _, h_b, _ = lax.fori_loop(0, T, body, (zeros, zeros, zeros, zeros),
                                   unroll=unroll)

    # PyTorch: output[:, -1, :H] = forward final h; output[:, 0, H:] = backward
    # final h; the module sums them.
    out_ref[...] = h_f + h_b


def _reorder_ifgo_to_ifog(w, H):
    """Repack gate columns [i | f | g | o] -> [i | f | o | g]."""
    return jnp.concatenate(
        [w[..., :2 * H], w[..., 3 * H:], w[..., 2 * H:3 * H]], axis=-1)


def _use_fused_hidden_matmul():
    """Fused K=2H block-diagonal hidden matmul on v6e/v7x; split on v5."""
    try:
        kind = jax.devices()[0].device_kind.lower()
    except Exception:
        return True
    return "v5" not in kind


def text_model_forward(tokens, params):
    """tokens: (B, T) int32.  Returns (B, H) float32."""
    emb = params["embedding"]                        # (V, E)
    B, T = tokens.shape
    E = emb.shape[1]
    H = params["whh_f"].shape[0]

    # Pad batch up to a full sublane group so kernel tiles are unmasked.
    SUBLANE = 8
    Bp = max(SUBLANE, ((B + SUBLANE - 1) // SUBLANE) * SUBLANE)
    tokens_p = jnp.pad(tokens, ((0, Bp - B), (0, 0)))

    # Embedding gather directly in time-major order -> (T*Bp, E) bf16 so the
    # kernel's input projection is a single bf16 MXU matmul.
    x = jnp.take(emb, tokens_p.T, axis=0).reshape(T * Bp, E).astype(jnp.bfloat16)

    # One-time weight packing: gate reorder [i,f,g,o]->[i,f,o,g], fused input
    # projection (both directions, bias folded), bf16 MXU weights.
    wih_f = _reorder_ifgo_to_ifog(params["wih_f"], H)
    wih_b = _reorder_ifgo_to_ifog(params["wih_b"], H)
    whh_f = _reorder_ifgo_to_ifog(params["whh_f"], H)
    whh_b = _reorder_ifgo_to_ifog(params["whh_b"], H)
    b_f = _reorder_ifgo_to_ifog(params["b_f"], H)
    b_b = _reorder_ifgo_to_ifog(params["b_b"], H)

    wih_cat = jnp.concatenate([wih_f, wih_b], axis=1).astype(jnp.bfloat16)  # (E, 8H)
    bias_cat = jnp.concatenate([b_f, b_b], axis=1)                          # (1, 8H) f32

    fused = _use_fused_hidden_matmul()
    if fused:
        whh_packed = jnp.zeros((2 * H, 8 * H), jnp.float32)
        whh_packed = whh_packed.at[:H, :4 * H].set(whh_f)
        whh_packed = whh_packed.at[H:, 4 * H:].set(whh_b)
        whh_packed = whh_packed.astype(jnp.bfloat16)                        # (2H, 8H)
    else:
        whh_packed = jnp.stack([whh_f, whh_b], axis=0).astype(jnp.bfloat16) # (2, H, 4H)

    # Explicit VMEM budget (whole sequence resident; fine at these sizes).
    slab_bytes = 2 * T * Bp * 4 * H * 4
    vmem_bytes = (x.size * 2 + wih_cat.size * 2 + whh_packed.size * 2
                  + bias_cat.size * 4 + slab_bytes
                  + Bp * 2 * H * 4 + Bp * H * 4)
    vmem_limit = int(min(max(2 * vmem_bytes + (1 << 20), 8 << 20), 48 << 20))

    vmem = pl.BlockSpec(memory_space=pltpu.MemorySpace.VMEM)
    out = pl.pallas_call(
        functools.partial(bilstm_kernel, fused=fused),
        out_shape=jax.ShapeDtypeStruct((Bp, H), jnp.float32),
        in_specs=[vmem] * 4,
        out_specs=vmem,
        scratch_shapes=[
            pltpu.VMEM((T, Bp, 4 * H), jnp.float32),   # fwd gate slab
            pltpu.VMEM((T, Bp, 4 * H), jnp.float32),   # bwd gate slab
            pltpu.VMEM((Bp, 2 * H), jnp.float32),      # fused h matmul operand
        ],
        compiler_params=pltpu.CompilerParams(vmem_limit_bytes=vmem_limit),
    )(x, wih_cat, whh_packed, bias_cat)
    return out[:B]


def make_params(key, vocab_size, embedding_dim, hidden_size):
    ks = jax.random.split(key, 11)
    H, E, V = hidden_size, embedding_dim, vocab_size
    s = 1.0 / jnp.sqrt(jnp.float32(H))

    def u(k, shape):
        return jax.random.uniform(k, shape, jnp.float32, -s, s)

    # PyTorch stores W_ih as (4H, E) / W_hh as (4H, H); we keep them transposed
    # so matmuls are (B, E) @ (E, 4H) and (B, H) @ (H, 4H); gate order [i,f,g,o].
    return {
        "embedding": jax.random.normal(ks[0], (V, E), jnp.float32),
        "wih_f": u(ks[1], (E, 4 * H)),
        "whh_f": u(ks[2], (H, 4 * H)),
        "b_f": u(ks[3], (1, 4 * H)) + u(ks[4], (1, 4 * H)),   # b_ih + b_hh
        "wih_b": u(ks[5], (E, 4 * H)),
        "whh_b": u(ks[6], (H, 4 * H)),
        "b_b": u(ks[7], (1, 4 * H)) + u(ks[8], (1, 4 * H)),
    }


def reference_forward(tokens, params):
    """Pure-JAX f32 reference replicating nn.LSTM(bidirectional) semantics."""
    x = jnp.take(params["embedding"], tokens, axis=0)   # (B, T, E)
    B, T, E = x.shape
    H = params["whh_f"].shape[0]

    def cell(carry, x_t, wih, whh, b):
        h, c = carry
        gates = x_t @ wih + h @ whh + b
        i = jax.nn.sigmoid(gates[:, 0 * H:1 * H])
        f = jax.nn.sigmoid(gates[:, 1 * H:2 * H])
        g = jnp.tanh(gates[:, 2 * H:3 * H])
        o = jax.nn.sigmoid(gates[:, 3 * H:4 * H])
        c = f * c + i * g
        h = o * jnp.tanh(c)
        return (h, c), h

    init = (jnp.zeros((B, H), jnp.float32), jnp.zeros((B, H), jnp.float32))
    (h_f, _), _ = lax.scan(
        lambda c, xt: cell(c, xt, params["wih_f"], params["whh_f"], params["b_f"]),
        init, jnp.transpose(x, (1, 0, 2)))
    (h_b, _), _ = lax.scan(
        lambda c, xt: cell(c, xt, params["wih_b"], params["whh_b"], params["b_b"]),
        init, jnp.transpose(x, (1, 0, 2))[::-1])
    return h_f + h_b


if __name__ == "__main__":
    # Small shapes consistent with the module (x: (batch, seq) token ids).
    vocab_size = 15258
    embedding_dim = 64
    hidden_size = 128
    batch = 2
    seq = 8

    key = jax.random.PRNGKey(0)
    kp, kx = jax.random.split(key)
    params = make_params(kp, vocab_size, embedding_dim, hidden_size)
    tokens = jax.random.randint(kx, (batch, seq), 0, vocab_size, jnp.int32)

    out = text_model_forward(tokens, params)
    out = jax.block_until_ready(out)

    ref = jax.block_until_ready(reference_forward(tokens, params))
    assert out.shape == (batch, hidden_size)
    # Tolerance covers bf16 MXU operands (f32 accumulate, f32 gate/cell math)
    # vs. the pure-f32 reference, plus reassociation from the fused matmuls.
    assert jnp.allclose(out, ref, atol=2e-2, rtol=2e-2), "mismatch vs reference"

    print("KERNEL_OK")
</pallas_src>

<mosaic_0001>
module attributes {stable_mosaic.version = 11 : i64} {
  func.func @bilstm_kernel(%arg0: memref<64x64xbf16, #tpu.memory_space<vmem>>, %arg1: memref<64x1024xbf16, #tpu.memory_space<vmem>>, %arg2: memref<256x1024xbf16, #tpu.memory_space<vmem>>, %arg3: memref<1x1024xf32, #tpu.memory_space<vmem>>, %arg4: memref<8x128xf32, #tpu.memory_space<vmem>>, %arg5: memref<8x8x512xf32, #tpu.memory_space<vmem>>, %arg6: memref<8x8x512xf32, #tpu.memory_space<vmem>>, %arg7: memref<8x256xf32, #tpu.memory_space<vmem>>) attributes {dimension_semantics = [], scalar_prefetch = 0 : i64, scratch_operands = 3 : i64, tpu.core_type = #tpu.core_type<tc>} {
    %c0 = arith.constant 0 : index
    %c0_0 = arith.constant 0 : index
    %0 = vector.load %arg0[%c0, %c0_0] : memref<64x64xbf16, #tpu.memory_space<vmem>>, vector<64x64xbf16>
    %c0_1 = arith.constant 0 : index
    %c0_2 = arith.constant 0 : index
    %1 = vector.load %arg1[%c0_1, %c0_2] : memref<64x1024xbf16, #tpu.memory_space<vmem>>, vector<64x1024xbf16>
    %cst = arith.constant dense<0.000000e+00> : vector<64x1024xf32>
    %2 = tpu.matmul %0, %1, %cst {dimension_numbers = #tpu.dot_dimension_numbers<[1], [0], [0], [1], [0, 0, 1, 1], [], []>} : vector<64x64xbf16>, vector<64x1024xbf16>, vector<64x1024xf32> -> vector<64x1024xf32>
    %c0_3 = arith.constant 0 : index
    %c0_4 = arith.constant 0 : index
    %3 = vector.load %arg3[%c0_3, %c0_4] : memref<1x1024xf32, #tpu.memory_space<vmem>>, vector<1x1024xf32>
    %4 = vector.broadcast %3 : vector<1x1024xf32> to vector<64x1024xf32>
    %5 = arith.addf %2, %4 : vector<64x1024xf32>
    %6 = vector.shape_cast %5 : vector<64x1024xf32> to vector<8x8x1024xf32>
    %7 = vector.extract_strided_slice %6 {offsets = [0, 0, 0], sizes = [8, 8, 512], strides = [1, 1, 1]} : vector<8x8x1024xf32> to vector<8x8x512xf32>
    %c0_5 = arith.constant 0 : index
    %c0_6 = arith.constant 0 : index
    %c0_7 = arith.constant 0 : index
    %8 = vector.load %arg5[%c0_5, %c0_6, %c0_7] : memref<8x8x512xf32, #tpu.memory_space<vmem>>, vector<8x8x512xf32>
    tpu.vector_store %arg5[%c0_5, %c0_6, %c0_7], %7 {strides = array<i32>} : memref<8x8x512xf32, #tpu.memory_space<vmem>>, vector<8x8x512xf32>,
    %9 = vector.extract_strided_slice %6 {offsets = [0, 0, 512], sizes = [8, 8, 512], strides = [1, 1, 1]} : vector<8x8x1024xf32> to vector<8x8x512xf32>
    %c0_8 = arith.constant 0 : index
    %c0_9 = arith.constant 0 : index
    %c0_10 = arith.constant 0 : index
    %10 = vector.load %arg6[%c0_8, %c0_9, %c0_10] : memref<8x8x512xf32, #tpu.memory_space<vmem>>, vector<8x8x512xf32>
    tpu.vector_store %arg6[%c0_8, %c0_9, %c0_10], %9 {strides = array<i32>} : memref<8x8x512xf32, #tpu.memory_space<vmem>>, vector<8x8x512xf32>,
    %c0_11 = arith.constant 0 : index
    %c0_12 = arith.constant 0 : index
    %11 = vector.load %arg2[%c0_11, %c0_12] : memref<256x1024xbf16, #tpu.memory_space<vmem>>, vector<256x1024xbf16>
    %cst_13 = arith.constant 0.000000e+00 : f32
    %12 = vector.broadcast %cst_13 : f32 to vector<8x256xf32>
    %c0_14 = arith.constant 0 : index
    %c0_15 = arith.constant 0 : index
    %13 = vector.load %arg7[%c0_14, %c0_15] : memref<8x256xf32, #tpu.memory_space<vmem>>, vector<8x256xf32>
    tpu.vector_store %arg7[%c0_14, %c0_15], %12 {strides = array<i32>} : memref<8x256xf32, #tpu.memory_space<vmem>>, vector<8x256xf32>,
    %cst_16 = arith.constant 0.000000e+00 : f32
    %14 = vector.broadcast %cst_16 : f32 to vector<8x128xf32>
    %c0_i32 = arith.constant 0 : i32
    %15 = arith.index_cast %c0_i32 : i32 to index
    %c0_17 = arith.constant 0 : index
    %c0_18 = arith.constant 0 : index
    %16 = vector.load %arg5[%15, %c0_17, %c0_18] : memref<8x8x512xf32, #tpu.memory_space<vmem>>, vector<1x8x512xf32>
    %17 = vector.shape_cast %16 : vector<1x8x512xf32> to vector<8x512xf32>
    %c7_i32 = arith.constant 7 : i32
    %18 = arith.subi %c7_i32, %c0_i32 : i32
    %19 = arith.index_cast %18 : i32 to index
    %c0_19 = arith.constant 0 : index
    %c0_20 = arith.constant 0 : index
    %20 = vector.load %arg6[%19, %c0_19, %c0_20] : memref<8x8x512xf32, #tpu.memory_space<vmem>>, vector<1x8x512xf32>
    %21 = vector.shape_cast %20 : vector<1x8x512xf32> to vector<8x512xf32>
    %c0_21 = arith.constant 0 : index
    %c0_22 = arith.constant 0 : index
    %22 = vector.load %arg7[%c0_21, %c0_22] : memref<8x256xf32, #tpu.memory_space<vmem>>, vector<8x256xf32>
    %23 = arith.truncf %22 : vector<8x256xf32> to vector<8x256xbf16>
    %cst_23 = arith.constant dense<0.000000e+00> : vector<8x1024xf32>
    %24 = tpu.matmul %23, %11, %cst_23 {dimension_numbers = #tpu.dot_dimension_numbers<[1], [0], [0], [1], [0, 0, 1, 1], [], []>} : vector<8x256xbf16>, vector<256x1024xbf16>, vector<8x1024xf32> -> vector<8x1024xf32>
    %25 = vector.extract_strided_slice %24 {offsets = [0, 0], sizes = [8, 512], strides = [1, 1]} : vector<8x1024xf32> to vector<8x512xf32>
    %26 = arith.addf %17, %25 : vector<8x512xf32>
    %27 = vector.extract_strided_slice %24 {offsets = [0, 512], sizes = [8, 512], strides = [1, 1]} : vector<8x1024xf32> to vector<8x512xf32>
    %28 = arith.addf %21, %27 : vector<8x512xf32>
    %29 = vector.extract_strided_slice %26 {offsets = [0, 0], sizes = [8, 384], strides = [1, 1]} : vector<8x512xf32> to vector<8x384xf32>
    %30 = arith.negf %29 : vector<8x384xf32>
    %31 = math.exp %30 : vector<8x384xf32>
    %cst_24 = arith.constant 1.000000e+00 : f32
    %32 = vector.broadcast %cst_24 : f32 to vector<8x384xf32>
    %33 = arith.addf %32, %31 : vector<8x384xf32>
    %34 = arith.divf %32, %33 : vector<8x384xf32>
    %35 = vector.extract_strided_slice %26 {offsets = [0, 384], sizes = [8, 128], strides = [1, 1]} : vector<8x512xf32> to vector<8x128xf32>
    %36 = math.tanh %35 : vector<8x128xf32>
    %37 = vector.extract_strided_slice %34 {offsets = [0, 0], sizes = [8, 128], strides = [1, 1]} : vector<8x384xf32> to vector<8x128xf32>
    %38 = vector.extract_strided_slice %34 {offsets = [0, 128], sizes = [8, 128], strides = [1, 1]} : vector<8x384xf32> to vector<8x128xf32>
    %39 = vector.extract_strided_slice %34 {offsets = [0, 256], sizes = [8, 128], strides = [1, 1]} : vector<8x384xf32> to vector<8x128xf32>
    %40 = arith.mulf %38, %14 : vector<8x128xf32>
    %41 = arith.mulf %37, %36 : vector<8x128xf32>
    %42 = arith.addf %40, %41 : vector<8x128xf32>
    %43 = math.tanh %42 : vector<8x128xf32>
    %44 = arith.mulf %39, %43 : vector<8x128xf32>
    %45 = vector.extract_strided_slice %28 {offsets = [0, 0], sizes = [8, 384], strides = [1, 1]} : vector<8x512xf32> to vector<8x384xf32>
    %46 = arith.negf %45 : vector<8x384xf32>
    %47 = math.exp %46 : vector<8x384xf32>
    %cst_25 = arith.constant 1.000000e+00 : f32
    %48 = vector.broadcast %cst_25 : f32 to vector<8x384xf32>
    %49 = arith.addf %48, %47 : vector<8x384xf32>
    %50 = arith.divf %48, %49 : vector<8x384xf32>
    %51 = vector.extract_strided_slice %28 {offsets = [0, 384], sizes = [8, 128], strides = [1, 1]} : vector<8x512xf32> to vector<8x128xf32>
    %52 = math.tanh %51 : vector<8x128xf32>
    %53 = vector.extract_strided_slice %50 {offsets = [0, 0], sizes = [8, 128], strides = [1, 1]} : vector<8x384xf32> to vector<8x128xf32>
    %54 = vector.extract_strided_slice %50 {offsets = [0, 128], sizes = [8, 128], strides = [1, 1]} : vector<8x384xf32> to vector<8x128xf32>
    %55 = vector.extract_strided_slice %50 {offsets = [0, 256], sizes = [8, 128], strides = [1, 1]} : vector<8x384xf32> to vector<8x128xf32>
    %56 = arith.mulf %54, %14 : vector<8x128xf32>
    %57 = arith.mulf %53, %52 : vector<8x128xf32>
    %58 = arith.addf %56, %57 : vector<8x128xf32>
    %59 = math.tanh %58 : vector<8x128xf32>
    %60 = arith.mulf %55, %59 : vector<8x128xf32>
    %c0_26 = arith.constant 0 : index
    %c0_27 = arith.constant 0 : index
    %61 = vector.load %arg7[%c0_26, %c0_27] : memref<8x256xf32, #tpu.memory_space<vmem>>, vector<8x128xf32>
    tpu.vector_store %arg7[%c0_26, %c0_27], %44 {strides = array<i32>} : memref<8x256xf32, #tpu.memory_space<vmem>>, vector<8x128xf32>,
    %c0_28 = arith.constant 0 : index
    %c128 = arith.constant 128 : index
    %62 = vector.load %arg7[%c0_28, %c128] : memref<8x256xf32, #tpu.memory_space<vmem>>, vector<8x128xf32>
    tpu.vector_store %arg7[%c0_28, %c128], %60 {strides = array<i32>} : memref<8x256xf32, #tpu.memory_space<vmem>>, vector<8x128xf32>,
    %c1_i32 = arith.constant 1 : i32
    %63 = arith.index_cast %c1_i32 : i32 to index
    %c0_29 = arith.constant 0 : index
    %c0_30 = arith.constant 0 : index
    %64 = vector.load %arg5[%63, %c0_29, %c0_30] : memref<8x8x512xf32, #tpu.memory_space<vmem>>, vector<1x8x512xf32>
    %65 = vector.shape_cast %64 : vector<1x8x512xf32> to vector<8x512xf32>
    %c7_i32_31 = arith.constant 7 : i32
    %66 = arith.subi %c7_i32_31, %c1_i32 : i32
    %67 = arith.index_cast %66 : i32 to index
    %c0_32 = arith.constant 0 : index
    %c0_33 = arith.constant 0 : index
    %68 = vector.load %arg6[%67, %c0_32, %c0_33] : memref<8x8x512xf32, #tpu.memory_space<vmem>>, vector<1x8x512xf32>
    %69 = vector.shape_cast %68 : vector<1x8x512xf32> to vector<8x512xf32>
    %c0_34 = arith.constant 0 : index
    %c0_35 = arith.constant 0 : index
    %70 = vector.load %arg7[%c0_34, %c0_35] : memref<8x256xf32, #tpu.memory_space<vmem>>, vector<8x256xf32>
    %71 = arith.truncf %70 : vector<8x256xf32> to vector<8x256xbf16>
    %cst_36 = arith.constant dense<0.000000e+00> : vector<8x1024xf32>
    %72 = tpu.matmul %71, %11, %cst_36 {dimension_numbers = #tpu.dot_dimension_numbers<[1], [0], [0], [1], [0, 0, 1, 1], [], []>} : vector<8x256xbf16>, vector<256x1024xbf16>, vector<8x1024xf32> -> vector<8x1024xf32>
    %73 = vector.extract_strided_slice %72 {offsets = [0, 0], sizes = [8, 512], strides = [1, 1]} : vector<8x1024xf32> to vector<8x512xf32>
    %74 = arith.addf %65, %73 : vector<8x512xf32>
    %75 = vector.extract_strided_slice %72 {offsets = [0, 512], sizes = [8, 512], strides = [1, 1]} : vector<8x1024xf32> to vector<8x512xf32>
    %76 = arith.addf %69, %75 : vector<8x512xf32>
    %77 = vector.extract_strided_slice %74 {offsets = [0, 0], sizes = [8, 384], strides = [1, 1]} : vector<8x512xf32> to vector<8x384xf32>
    %78 = arith.negf %77 : vector<8x384xf32>
    %79 = math.exp %78 : vector<8x384xf32>
    %cst_37 = arith.constant 1.000000e+00 : f32
    %80 = vector.broadcast %cst_37 : f32 to vector<8x384xf32>
    %81 = arith.addf %80, %79 : vector<8x384xf32>
    %82 = arith.divf %80, %81 : vector<8x384xf32>
    %83 = vector.extract_strided_slice %74 {offsets = [0, 384], sizes = [8, 128], strides = [1, 1]} : vector<8x512xf32> to vector<8x128xf32>
    %84 = math.tanh %83 : vector<8x128xf32>
    %85 = vector.extract_strided_slice %82 {offsets = [0, 0], sizes = [8, 128], strides = [1, 1]} : vector<8x384xf32> to vector<8x128xf32>
    %86 = vector.extract_strided_slice %82 {offsets = [0, 128], sizes = [8, 128], strides = [1, 1]} : vector<8x384xf32> to vector<8x128xf32>
    %87 = vector.extract_strided_slice %82 {offsets = [0, 256], sizes = [8, 128], strides = [1, 1]} : vector<8x384xf32> to vector<8x128xf32>
    %88 = arith.mulf %86, %42 : vector<8x128xf32>
    %89 = arith.mulf %85, %84 : vector<8x128xf32>
    %90 = arith.addf %88, %89 : vector<8x128xf32>
    %91 = math.tanh %90 : vector<8x128xf32>
    %92 = arith.mulf %87, %91 : vector<8x128xf32>
    %93 = vector.extract_strided_slice %76 {offsets = [0, 0], sizes = [8, 384], strides = [1, 1]} : vector<8x512xf32> to vector<8x384xf32>
    %94 = arith.negf %93 : vector<8x384xf32>
    %95 = math.exp %94 : vector<8x384xf32>
    %cst_38 = arith.constant 1.000000e+00 : f32
    %96 = vector.broadcast %cst_38 : f32 to vector<8x384xf32>
    %97 = arith.addf %96, %95 : vector<8x384xf32>
    %98 = arith.divf %96, %97 : vector<8x384xf32>
    %99 = vector.extract_strided_slice %76 {offsets = [0, 384], sizes = [8, 128], strides = [1, 1]} : vector<8x512xf32> to vector<8x128xf32>
    %100 = math.tanh %99 : vector<8x128xf32>
    %101 = vector.extract_strided_slice %98 {offsets = [0, 0], sizes = [8, 128], strides = [1, 1]} : vector<8x384xf32> to vector<8x128xf32>
    %102 = vector.extract_strided_slice %98 {offsets = [0, 128], sizes = [8, 128], strides = [1, 1]} : vector<8x384xf32> to vector<8x128xf32>
    %103 = vector.extract_strided_slice %98 {offsets = [0, 256], sizes = [8, 128], strides = [1, 1]} : vector<8x384xf32> to vector<8x128xf32>
    %104 = arith.mulf %102, %58 : vector<8x128xf32>
    %105 = arith.mulf %101, %100 : vector<8x128xf32>
    %106 = arith.addf %104, %105 : vector<8x128xf32>
    %107 = math.tanh %106 : vector<8x128xf32>
    %108 = arith.mulf %103, %107 : vector<8x128xf32>
    %c0_39 = arith.constant 0 : index
    %c0_40 = arith.constant 0 : index
    %109 = vector.load %arg7[%c0_39, %c0_40] : memref<8x256xf32, #tpu.memory_space<vmem>>, vector<8x128xf32>
    tpu.vector_store %arg7[%c0_39, %c0_40], %92 {strides = array<i32>} : memref<8x256xf32, #tpu.memory_space<vmem>>, vector<8x128xf32>,
    %c0_41 = arith.constant 0 : index
    %c128_42 = arith.constant 128 : index
    %110 = vector.load %arg7[%c0_41, %c128_42] : memref<8x256xf32, #tpu.memory_space<vmem>>, vector<8x128xf32>
    tpu.vector_store %arg7[%c0_41, %c128_42], %108 {strides = array<i32>} : memref<8x256xf32, #tpu.memory_space<vmem>>, vector<8x128xf32>,
    %c2_i32 = arith.constant 2 : i32
    %111 = arith.index_cast %c2_i32 : i32 to index
    %c0_43 = arith.constant 0 : index
    %c0_44 = arith.constant 0 : index
    %112 = vector.load %arg5[%111, %c0_43, %c0_44] : memref<8x8x512xf32, #tpu.memory_space<vmem>>, vector<1x8x512xf32>
    %113 = vector.shape_cast %112 : vector<1x8x512xf32> to vector<8x512xf32>
    %c7_i32_45 = arith.constant 7 : i32
    %114 = arith.subi %c7_i32_45, %c2_i32 : i32
    %115 = arith.index_cast %114 : i32 to index
    %c0_46 = arith.constant 0 : index
    %c0_47 = arith.constant 0 : index
    %116 = vector.load %arg6[%115, %c0_46, %c0_47] : memref<8x8x512xf32, #tpu.memory_space<vmem>>, vector<1x8x512xf32>
    %117 = vector.shape_cast %116 : vector<1x8x512xf32> to vector<8x512xf32>
    %c0_48 = arith.constant 0 : index
    %c0_49 = arith.constant 0 : index
    %118 = vector.load %arg7[%c0_48, %c0_49] : memref<8x256xf32, #tpu.memory_space<vmem>>, vector<8x256xf32>
    %119 = arith.truncf %118 : vector<8x256xf32> to vector<8x256xbf16>
    %cst_50 = arith.constant dense<0.000000e+00> : vector<8x1024xf32>
    %120 = tpu.matmul %119, %11, %cst_50 {dimension_numbers = #tpu.dot_dimension_numbers<[1], [0], [0], [1], [0, 0, 1, 1], [], []>} : vector<8x256xbf16>, vector<256x1024xbf16>, vector<8x1024xf32> -> vector<8x1024xf32>
    %121 = vector.extract_strided_slice %120 {offsets = [0, 0], sizes = [8, 512], strides = [1, 1]} : vector<8x1024xf32> to vector<8x512xf32>
    %122 = arith.addf %113, %121 : vector<8x512xf32>
    %123 = vector.extract_strided_slice %120 {offsets = [0, 512], sizes = [8, 512], strides = [1, 1]} : vector<8x1024xf32> to vector<8x512xf32>
    %124 = arith.addf %117, %123 : vector<8x512xf32>
    %125 = vector.extract_strided_slice %122 {offsets = [0, 0], sizes = [8, 384], strides = [1, 1]} : vector<8x512xf32> to vector<8x384xf32>
    %126 = arith.negf %125 : vector<8x384xf32>
    %127 = math.exp %126 : vector<8x384xf32>
    %cst_51 = arith.constant 1.000000e+00 : f32
    %128 = vector.broadcast %cst_51 : f32 to vector<8x384xf32>
    %129 = arith.addf %128, %127 : vector<8x384xf32>
    %130 = arith.divf %128, %129 : vector<8x384xf32>
    %131 = vector.extract_strided_slice %122 {offsets = [0, 384], sizes = [8, 128], strides = [1, 1]} : vector<8x512xf32> to vector<8x128xf32>
    %132 = math.tanh %131 : vector<8x128xf32>
    %133 = vector.extract_strided_slice %130 {offsets = [0, 0], sizes = [8, 128], strides = [1, 1]} : vector<8x384xf32> to vector<8x128xf32>
    %134 = vector.extract_strided_slice %130 {offsets = [0, 128], sizes = [8, 128], strides = [1, 1]} : vector<8x384xf32> to vector<8x128xf32>
    %135 = vector.extract_strided_slice %130 {offsets = [0, 256], sizes = [8, 128], strides = [1, 1]} : vector<8x384xf32> to vector<8x128xf32>
    %136 = arith.mulf %134, %90 : vector<8x128xf32>
    %137 = arith.mulf %133, %132 : vector<8x128xf32>
    %138 = arith.addf %136, %137 : vector<8x128xf32>
    %139 = math.tanh %138 : vector<8x128xf32>
    %140 = arith.mulf %135, %139 : vector<8x128xf32>
    %141 = vector.extract_strided_slice %124 {offsets = [0, 0], sizes = [8, 384], strides = [1, 1]} : vector<8x512xf32> to vector<8x384xf32>
    %142 = arith.negf %141 : vector<8x384xf32>
    %143 = math.exp %142 : vector<8x384xf32>
    %cst_52 = arith.constant 1.000000e+00 : f32
    %144 = vector.broadcast %cst_52 : f32 to vector<8x384xf32>
    %145 = arith.addf %144, %143 : vector<8x384xf32>
    %146 = arith.divf %144, %145 : vector<8x384xf32>
    %147 = vector.extract_strided_slice %124 {offsets = [0, 384], sizes = [8, 128], strides = [1, 1]} : vector<8x512xf32> to vector<8x128xf32>
    %148 = math.tanh %147 : vector<8x128xf32>
    %149 = vector.extract_strided_slice %146 {offsets = [0, 0], sizes = [8, 128], strides = [1, 1]} : vector<8x384xf32> to vector<8x128xf32>
    %150 = vector.extract_strided_slice %146 {offsets = [0, 128], sizes = [8, 128], strides = [1, 1]} : vector<8x384xf32> to vector<8x128xf32>
    %151 = vector.extract_strided_slice %146 {offsets = [0, 256], sizes = [8, 128], strides = [1, 1]} : vector<8x384xf32> to vector<8x128xf32>
    %152 = arith.mulf %150, %106 : vector<8x128xf32>
    %153 = arith.mulf %149, %148 : vector<8x128xf32>
    %154 = arith.addf %152, %153 : vector<8x128xf32>
    %155 = math.tanh %154 : vector<8x128xf32>
    %156 = arith.mulf %151, %155 : vector<8x128xf32>
    %c0_53 = arith.constant 0 : index
    %c0_54 = arith.constant 0 : index
    %157 = vector.load %arg7[%c0_53, %c0_54] : memref<8x256xf32, #tpu.memory_space<vmem>>, vector<8x128xf32>
    tpu.vector_store %arg7[%c0_53, %c0_54], %140 {strides = array<i32>} : memref<8x256xf32, #tpu.memory_space<vmem>>, vector<8x128xf32>,
    %c0_55 = arith.constant 0 : index
    %c128_56 = arith.constant 128 : index
    %158 = vector.load %arg7[%c0_55, %c128_56] : memref<8x256xf32, #tpu.memory_space<vmem>>, vector<8x128xf32>
    tpu.vector_store %arg7[%c0_55, %c128_56], %156 {strides = array<i32>} : memref<8x256xf32, #tpu.memory_space<vmem>>, vector<8x128xf32>,
    %c3_i32 = arith.constant 3 : i32
    %159 = arith.index_cast %c3_i32 : i32 to index
    %c0_57 = arith.constant 0 : index
    %c0_58 = arith.constant 0 : index
    %160 = vector.load %arg5[%159, %c0_57, %c0_58] : memref<8x8x512xf32, #tpu.memory_space<vmem>>, vector<1x8x512xf32>
    %161 = vector.shape_cast %160 : vector<1x8x512xf32> to vector<8x512xf32>
    %c7_i32_59 = arith.constant 7 : i32
    %162 = arith.subi %c7_i32_59, %c3_i32 : i32
    %163 = arith.index_cast %162 : i32 to index
    %c0_60 = arith.constant 0 : index
    %c0_61 = arith.constant 0 : index
    %164 = vector.load %arg6[%163, %c0_60, %c0_61] : memref<8x8x512xf32, #tpu.memory_space<vmem>>, vector<1x8x512xf32>
    %165 = vector.shape_cast %164 : vector<1x8x512xf32> to vector<8x512xf32>
    %c0_62 = arith.constant 0 : index
    %c0_63 = arith.constant 0 : index
    %166 = vector.load %arg7[%c0_62, %c0_63] : memref<8x256xf32, #tpu.memory_space<vmem>>, vector<8x256xf32>
    %167 = arith.truncf %166 : vector<8x256xf32> to vector<8x256xbf16>
    %cst_64 = arith.constant dense<0.000000e+00> : vector<8x1024xf32>
    %168 = tpu.matmul %167, %11, %cst_64 {dimension_numbers = #tpu.dot_dimension_numbers<[1], [0], [0], [1], [0, 0, 1, 1], [], []>} : vector<8x256xbf16>, vector<256x1024xbf16>, vector<8x1024xf32> -> vector<8x1024xf32>
    %169 = vector.extract_strided_slice %168 {offsets = [0, 0], sizes = [8, 512], strides = [1, 1]} : vector<8x1024xf32> to vector<8x512xf32>
    %170 = arith.addf %161, %169 : vector<8x512xf32>
    %171 = vector.extract_strided_slice %168 {offsets = [0, 512], sizes = [8, 512], strides = [1, 1]} : vector<8x1024xf32> to vector<8x512xf32>
    %172 = arith.addf %165, %171 : vector<8x512xf32>
    %173 = vector.extract_strided_slice %170 {offsets = [0, 0], sizes = [8, 384], strides = [1, 1]} : vector<8x512xf32> to vector<8x384xf32>
    %174 = arith.negf %173 : vector<8x384xf32>
    %175 = math.exp %174 : vector<8x384xf32>
    %cst_65 = arith.constant 1.000000e+00 : f32
    %176 = vector.broadcast %cst_65 : f32 to vector<8x384xf32>
    %177 = arith.addf %176, %175 : vector<8x384xf32>
    %178 = arith.divf %176, %177 : vector<8x384xf32>
    %179 = vector.extract_strided_slice %170 {offsets = [0, 384], sizes = [8, 128], strides = [1, 1]} : vector<8x512xf32> to vector<8x128xf32>
    %180 = math.tanh %179 : vector<8x128xf32>
    %181 = vector.extract_strided_slice %178 {offsets = [0, 0], sizes = [8, 128], strides = [1, 1]} : vector<8x384xf32> to vector<8x128xf32>
    %182 = vector.extract_strided_slice %178 {offsets = [0, 128], sizes = [8, 128], strides = [1, 1]} : vector<8x384xf32> to vector<8x128xf32>
    %183 = vector.extract_strided_slice %178 {offsets = [0, 256], sizes = [8, 128], strides = [1, 1]} : vector<8x384xf32> to vector<8x128xf32>
    %184 = arith.mulf %182, %138 : vector<8x128xf32>
    %185 = arith.mulf %181, %180 : vector<8x128xf32>
    %186 = arith.addf %184, %185 : vector<8x128xf32>
    %187 = math.tanh %186 : vector<8x128xf32>
    %188 = arith.mulf %183, %187 : vector<8x128xf32>
    %189 = vector.extract_strided_slice %172 {offsets = [0, 0], sizes = [8, 384], strides = [1, 1]} : vector<8x512xf32> to vector<8x384xf32>
    %190 = arith.negf %189 : vector<8x384xf32>
    %191 = math.exp %190 : vector<8x384xf32>
    %cst_66 = arith.constant 1.000000e+00 : f32
    %192 = vector.broadcast %cst_66 : f32 to vector<8x384xf32>
    %193 = arith.addf %192, %191 : vector<8x384xf32>
    %194 = arith.divf %192, %193 : vector<8x384xf32>
    %195 = vector.extract_strided_slice %172 {offsets = [0, 384], sizes = [8, 128], strides = [1, 1]} : vector<8x512xf32> to vector<8x128xf32>
    %196 = math.tanh %195 : vector<8x128xf32>
    %197 = vector.extract_strided_slice %194 {offsets = [0, 0], sizes = [8, 128], strides = [1, 1]} : vector<8x384xf32> to vector<8x128xf32>
    %198 = vector.extract_strided_slice %194 {offsets = [0, 128], sizes = [8, 128], strides = [1, 1]} : vector<8x384xf32> to vector<8x128xf32>
    %199 = vector.extract_strided_slice %194 {offsets = [0, 256], sizes = [8, 128], strides = [1, 1]} : vector<8x384xf32> to vector<8x128xf32>
    %200 = arith.mulf %198, %154 : vector<8x128xf32>
    %201 = arith.mulf %197, %196 : vector<8x128xf32>
    %202 = arith.addf %200, %201 : vector<8x128xf32>
    %203 = math.tanh %202 : vector<8x128xf32>
    %204 = arith.mulf %199, %203 : vector<8x128xf32>
    %c0_67 = arith.constant 0 : index
    %c0_68 = arith.constant 0 : index
    %205 = vector.load %arg7[%c0_67, %c0_68] : memref<8x256xf32, #tpu.memory_space<vmem>>, vector<8x128xf32>
    tpu.vector_store %arg7[%c0_67, %c0_68], %188 {strides = array<i32>} : memref<8x256xf32, #tpu.memory_space<vmem>>, vector<8x128xf32>,
    %c0_69 = arith.constant 0 : index
    %c128_70 = arith.constant 128 : index
    %206 = vector.load %arg7[%c0_69, %c128_70] : memref<8x256xf32, #tpu.memory_space<vmem>>, vector<8x128xf32>
    tpu.vector_store %arg7[%c0_69, %c128_70], %204 {strides = array<i32>} : memref<8x256xf32, #tpu.memory_space<vmem>>, vector<8x128xf32>,
    %c4_i32 = arith.constant 4 : i32
    %207 = arith.index_cast %c4_i32 : i32 to index
    %c0_71 = arith.constant 0 : index
    %c0_72 = arith.constant 0 : index
    %208 = vector.load %arg5[%207, %c0_71, %c0_72] : memref<8x8x512xf32, #tpu.memory_space<vmem>>, vector<1x8x512xf32>
    %209 = vector.shape_cast %208 : vector<1x8x512xf32> to vector<8x512xf32>
    %c7_i32_73 = arith.constant 7 : i32
    %210 = arith.subi %c7_i32_73, %c4_i32 : i32
    %211 = arith.index_cast %210 : i32 to index
    %c0_74 = arith.constant 0 : index
    %c0_75 = arith.constant 0 : index
    %212 = vector.load %arg6[%211, %c0_74, %c0_75] : memref<8x8x512xf32, #tpu.memory_space<vmem>>, vector<1x8x512xf32>
    %213 = vector.shape_cast %212 : vector<1x8x512xf32> to vector<8x512xf32>
    %c0_76 = arith.constant 0 : index
    %c0_77 = arith.constant 0 : index
    %214 = vector.load %arg7[%c0_76, %c0_77] : memref<8x256xf32, #tpu.memory_space<vmem>>, vector<8x256xf32>
    %215 = arith.truncf %214 : vector<8x256xf32> to vector<8x256xbf16>
    %cst_78 = arith.constant dense<0.000000e+00> : vector<8x1024xf32>
    %216 = tpu.matmul %215, %11, %cst_78 {dimension_numbers = #tpu.dot_dimension_numbers<[1], [0], [0], [1], [0, 0, 1, 1], [], []>} : vector<8x256xbf16>, vector<256x1024xbf16>, vector<8x1024xf32> -> vector<8x1024xf32>
    %217 = vector.extract_strided_slice %216 {offsets = [0, 0], sizes = [8, 512], strides = [1, 1]} : vector<8x1024xf32> to vector<8x512xf32>
    %218 = arith.addf %209, %217 : vector<8x512xf32>
    %219 = vector.extract_strided_slice %216 {offsets = [0, 512], sizes = [8, 512], strides = [1, 1]} : vector<8x1024xf32> to vector<8x512xf32>
    %220 = arith.addf %213, %219 : vector<8x512xf32>
    %221 = vector.extract_strided_slice %218 {offsets = [0, 0], sizes = [8, 384], strides = [1, 1]} : vector<8x512xf32> to vector<8x384xf32>
    %222 = arith.negf %221 : vector<8x384xf32>
    %223 = math.exp %222 : vector<8x384xf32>
    %cst_79 = arith.constant 1.000000e+00 : f32
    %224 = vector.broadcast %cst_79 : f32 to vector<8x384xf32>
    %225 = arith.addf %224, %223 : vector<8x384xf32>
    %226 = arith.divf %224, %225 : vector<8x384xf32>
    %227 = vector.extract_strided_slice %218 {offsets = [0, 384], sizes = [8, 128], strides = [1, 1]} : vector<8x512xf32> to vector<8x128xf32>
    %228 = math.tanh %227 : vector<8x128xf32>
    %229 = vector.extract_strided_slice %226 {offsets = [0, 0], sizes = [8, 128], strides = [1, 1]} : vector<8x384xf32> to vector<8x128xf32>
    %230 = vector.extract_strided_slice %226 {offsets = [0, 128], sizes = [8, 128], strides = [1, 1]} : vector<8x384xf32> to vector<8x128xf32>
    %231 = vector.extract_strided_slice %226 {offsets = [0, 256], sizes = [8, 128], strides = [1, 1]} : vector<8x384xf32> to vector<8x128xf32>
    %232 = arith.mulf %230, %186 : vector<8x128xf32>
    %233 = arith.mulf %229, %228 : vector<8x128xf32>
    %234 = arith.addf %232, %233 : vector<8x128xf32>
    %235 = math.tanh %234 : vector<8x128xf32>
    %236 = arith.mulf %231, %235 : vector<8x128xf32>
    %237 = vector.extract_strided_slice %220 {offsets = [0, 0], sizes = [8, 384], strides = [1, 1]} : vector<8x512xf32> to vector<8x384xf32>
    %238 = arith.negf %237 : vector<8x384xf32>
    %239 = math.exp %238 : vector<8x384xf32>
    %cst_80 = arith.constant 1.000000e+00 : f32
    %240 = vector.broadcast %cst_80 : f32 to vector<8x384xf32>
    %241 = arith.addf %240, %239 : vector<8x384xf32>
    %242 = arith.divf %240, %241 : vector<8x384xf32>
    %243 = vector.extract_strided_slice %220 {offsets = [0, 384], sizes = [8, 128], strides = [1, 1]} : vector<8x512xf32> to vector<8x128xf32>
    %244 = math.tanh %243 : vector<8x128xf32>
    %245 = vector.extract_strided_slice %242 {offsets = [0, 0], sizes = [8, 128], strides = [1, 1]} : vector<8x384xf32> to vector<8x128xf32>
    %246 = vector.extract_strided_slice %242 {offsets = [0, 128], sizes = [8, 128], strides = [1, 1]} : vector<8x384xf32> to vector<8x128xf32>
    %247 = vector.extract_strided_slice %242 {offsets = [0, 256], sizes = [8, 128], strides = [1, 1]} : vector<8x384xf32> to vector<8x128xf32>
    %248 = arith.mulf %246, %202 : vector<8x128xf32>
    %249 = arith.mulf %245, %244 : vector<8x128xf32>
    %250 = arith.addf %248, %249 : vector<8x128xf32>
    %251 = math.tanh %250 : vector<8x128xf32>
    %252 = arith.mulf %247, %251 : vector<8x128xf32>
    %c0_81 = arith.constant 0 : index
    %c0_82 = arith.constant 0 : index
    %253 = vector.load %arg7[%c0_81, %c0_82] : memref<8x256xf32, #tpu.memory_space<vmem>>, vector<8x128xf32>
    tpu.vector_store %arg7[%c0_81, %c0_82], %236 {strides = array<i32>} : memref<8x256xf32, #tpu.memory_space<vmem>>, vector<8x128xf32>,
    %c0_83 = arith.constant 0 : index
    %c128_84 = arith.constant 128 : index
    %254 = vector.load %arg7[%c0_83, %c128_84] : memref<8x256xf32, #tpu.memory_space<vmem>>, vector<8x128xf32>
    tpu.vector_store %arg7[%c0_83, %c128_84], %252 {strides = array<i32>} : memref<8x256xf32, #tpu.memory_space<vmem>>, vector<8x128xf32>,
    %c5_i32 = arith.constant 5 : i32
    %255 = arith.index_cast %c5_i32 : i32 to index
    %c0_85 = arith.constant 0 : index
    %c0_86 = arith.constant 0 : index
    %256 = vector.load %arg5[%255, %c0_85, %c0_86] : memref<8x8x512xf32, #tpu.memory_space<vmem>>, vector<1x8x512xf32>
    %257 = vector.shape_cast %256 : vector<1x8x512xf32> to vector<8x512xf32>
    %c7_i32_87 = arith.constant 7 : i32
    %258 = arith.subi %c7_i32_87, %c5_i32 : i32
    %259 = arith.index_cast %258 : i32 to index
    %c0_88 = arith.constant 0 : index
    %c0_89 = arith.constant 0 : index
    %260 = vector.load %arg6[%259, %c0_88, %c0_89] : memref<8x8x512xf32, #tpu.memory_space<vmem>>, vector<1x8x512xf32>
    %261 = vector.shape_cast %260 : vector<1x8x512xf32> to vector<8x512xf32>
    %c0_90 = arith.constant 0 : index
    %c0_91 = arith.constant 0 : index
    %262 = vector.load %arg7[%c0_90, %c0_91] : memref<8x256xf32, #tpu.memory_space<vmem>>, vector<8x256xf32>
    %263 = arith.truncf %262 : vector<8x256xf32> to vector<8x256xbf16>
    %cst_92 = arith.constant dense<0.000000e+00> : vector<8x1024xf32>
    %264 = tpu.matmul %263, %11, %cst_92 {dimension_numbers = #tpu.dot_dimension_numbers<[1], [0], [0], [1], [0, 0, 1, 1], [], []>} : vector<8x256xbf16>, vector<256x1024xbf16>, vector<8x1024xf32> -> vector<8x1024xf32>
    %265 = vector.extract_strided_slice %264 {offsets = [0, 0], sizes = [8, 512], strides = [1, 1]} : vector<8x1024xf32> to vector<8x512xf32>
    %266 = arith.addf %257, %265 : vector<8x512xf32>
    %267 = vector.extract_strided_slice %264 {offsets = [0, 512], sizes = [8, 512], strides = [1, 1]} : vector<8x1024xf32> to vector<8x512xf32>
    %268 = arith.addf %261, %267 : vector<8x512xf32>
    %269 = vector.extract_strided_slice %266 {offsets = [0, 0], sizes = [8, 384], strides = [1, 1]} : vector<8x512xf32> to vector<8x384xf32>
    %270 = arith.negf %269 : vector<8x384xf32>
    %271 = math.exp %270 : vector<8x384xf32>
    %cst_93 = arith.constant 1.000000e+00 : f32
    %272 = vector.broadcast %cst_93 : f32 to vector<8x384xf32>
    %273 = arith.addf %272, %271 : vector<8x384xf32>
    %274 = arith.divf %272, %273 : vector<8x384xf32>
    %275 = vector.extract_strided_slice %266 {offsets = [0, 384], sizes = [8, 128], strides = [1, 1]} : vector<8x512xf32> to vector<8x128xf32>
    %276 = math.tanh %275 : vector<8x128xf32>
    %277 = vector.extract_strided_slice %274 {offsets = [0, 0], sizes = [8, 128], strides = [1, 1]} : vector<8x384xf32> to vector<8x128xf32>
    %278 = vector.extract_strided_slice %274 {offsets = [0, 128], sizes = [8, 128], strides = [1, 1]} : vector<8x384xf32> to vector<8x128xf32>
    %279 = vector.extract_strided_slice %274 {offsets = [0, 256], sizes = [8, 128], strides = [1, 1]} : vector<8x384xf32> to vector<8x128xf32>
    %280 = arith.mulf %278, %234 : vector<8x128xf32>
    %281 = arith.mulf %277, %276 : vector<8x128xf32>
    %282 = arith.addf %280, %281 : vector<8x128xf32>
    %283 = math.tanh %282 : vector<8x128xf32>
    %284 = arith.mulf %279, %283 : vector<8x128xf32>
    %285 = vector.extract_strided_slice %268 {offsets = [0, 0], sizes = [8, 384], strides = [1, 1]} : vector<8x512xf32> to vector<8x384xf32>
    %286 = arith.negf %285 : vector<8x384xf32>
    %287 = math.exp %286 : vector<8x384xf32>
    %cst_94 = arith.constant 1.000000e+00 : f32
    %288 = vector.broadcast %cst_94 : f32 to vector<8x384xf32>
    %289 = arith.addf %288, %287 : vector<8x384xf32>
    %290 = arith.divf %288, %289 : vector<8x384xf32>
    %291 = vector.extract_strided_slice %268 {offsets = [0, 384], sizes = [8, 128], strides = [1, 1]} : vector<8x512xf32> to vector<8x128xf32>
    %292 = math.tanh %291 : vector<8x128xf32>
    %293 = vector.extract_strided_slice %290 {offsets = [0, 0], sizes = [8, 128], strides = [1, 1]} : vector<8x384xf32> to vector<8x128xf32>
    %294 = vector.extract_strided_slice %290 {offsets = [0, 128], sizes = [8, 128], strides = [1, 1]} : vector<8x384xf32> to vector<8x128xf32>
    %295 = vector.extract_strided_slice %290 {offsets = [0, 256], sizes = [8, 128], strides = [1, 1]} : vector<8x384xf32> to vector<8x128xf32>
    %296 = arith.mulf %294, %250 : vector<8x128xf32>
    %297 = arith.mulf %293, %292 : vector<8x128xf32>
    %298 = arith.addf %296, %297 : vector<8x128xf32>
    %299 = math.tanh %298 : vector<8x128xf32>
    %300 = arith.mulf %295, %299 : vector<8x128xf32>
    %c0_95 = arith.constant 0 : index
    %c0_96 = arith.constant 0 : index
    %301 = vector.load %arg7[%c0_95, %c0_96] : memref<8x256xf32, #tpu.memory_space<vmem>>, vector<8x128xf32>
    tpu.vector_store %arg7[%c0_95, %c0_96], %284 {strides = array<i32>} : memref<8x256xf32, #tpu.memory_space<vmem>>, vector<8x128xf32>,
    %c0_97 = arith.constant 0 : index
    %c128_98 = arith.constant 128 : index
    %302 = vector.load %arg7[%c0_97, %c128_98] : memref<8x256xf32, #tpu.memory_space<vmem>>, vector<8x128xf32>
    tpu.vector_store %arg7[%c0_97, %c128_98], %300 {strides = array<i32>} : memref<8x256xf32, #tpu.memory_space<vmem>>, vector<8x128xf32>,
    %c6_i32 = arith.constant 6 : i32
    %303 = arith.index_cast %c6_i32 : i32 to index
    %c0_99 = arith.constant 0 : index
    %c0_100 = arith.constant 0 : index
    %304 = vector.load %arg5[%303, %c0_99, %c0_100] : memref<8x8x512xf32, #tpu.memory_space<vmem>>, vector<1x8x512xf32>
    %305 = vector.shape_cast %304 : vector<1x8x512xf32> to vector<8x512xf32>
    %c7_i32_101 = arith.constant 7 : i32
    %306 = arith.subi %c7_i32_101, %c6_i32 : i32
    %307 = arith.index_cast %306 : i32 to index
    %c0_102 = arith.constant 0 : index
    %c0_103 = arith.constant 0 : index
    %308 = vector.load %arg6[%307, %c0_102, %c0_103] : memref<8x8x512xf32, #tpu.memory_space<vmem>>, vector<1x8x512xf32>
    %309 = vector.shape_cast %308 : vector<1x8x512xf32> to vector<8x512xf32>
    %c0_104 = arith.constant 0 : index
    %c0_105 = arith.constant 0 : index
    %310 = vector.load %arg7[%c0_104, %c0_105] : memref<8x256xf32, #tpu.memory_space<vmem>>, vector<8x256xf32>
    %311 = arith.truncf %310 : vector<8x256xf32> to vector<8x256xbf16>
    %cst_106 = arith.constant dense<0.000000e+00> : vector<8x1024xf32>
    %312 = tpu.matmul %311, %11, %cst_106 {dimension_numbers = #tpu.dot_dimension_numbers<[1], [0], [0], [1], [0, 0, 1, 1], [], []>} : vector<8x256xbf16>, vector<256x1024xbf16>, vector<8x1024xf32> -> vector<8x1024xf32>
    %313 = vector.extract_strided_slice %312 {offsets = [0, 0], sizes = [8, 512], strides = [1, 1]} : vector<8x1024xf32> to vector<8x512xf32>
    %314 = arith.addf %305, %313 : vector<8x512xf32>
    %315 = vector.extract_strided_slice %312 {offsets = [0, 512], sizes = [8, 512], strides = [1, 1]} : vector<8x1024xf32> to vector<8x512xf32>
    %316 = arith.addf %309, %315 : vector<8x512xf32>
    %317 = vector.extract_strided_slice %314 {offsets = [0, 0], sizes = [8, 384], strides = [1, 1]} : vector<8x512xf32> to vector<8x384xf32>
    %318 = arith.negf %317 : vector<8x384xf32>
    %319 = math.exp %318 : vector<8x384xf32>
    %cst_107 = arith.constant 1.000000e+00 : f32
    %320 = vector.broadcast %cst_107 : f32 to vector<8x384xf32>
    %321 = arith.addf %320, %319 : vector<8x384xf32>
    %322 = arith.divf %320, %321 : vector<8x384xf32>
    %323 = vector.extract_strided_slice %314 {offsets = [0, 384], sizes = [8, 128], strides = [1, 1]} : vector<8x512xf32> to vector<8x128xf32>
    %324 = math.tanh %323 : vector<8x128xf32>
    %325 = vector.extract_strided_slice %322 {offsets = [0, 0], sizes = [8, 128], strides = [1, 1]} : vector<8x384xf32> to vector<8x128xf32>
    %326 = vector.extract_strided_slice %322 {offsets = [0, 128], sizes = [8, 128], strides = [1, 1]} : vector<8x384xf32> to vector<8x128xf32>
    %327 = vector.extract_strided_slice %322 {offsets = [0, 256], sizes = [8, 128], strides = [1, 1]} : vector<8x384xf32> to vector<8x128xf32>
    %328 = arith.mulf %326, %282 : vector<8x128xf32>
    %329 = arith.mulf %325, %324 : vector<8x128xf32>
    %330 = arith.addf %328, %329 : vector<8x128xf32>
    %331 = math.tanh %330 : vector<8x128xf32>
    %332 = arith.mulf %327, %331 : vector<8x128xf32>
    %333 = vector.extract_strided_slice %316 {offsets = [0, 0], sizes = [8, 384], strides = [1, 1]} : vector<8x512xf32> to vector<8x384xf32>
    %334 = arith.negf %333 : vector<8x384xf32>
    %335 = math.exp %334 : vector<8x384xf32>
    %cst_108 = arith.constant 1.000000e+00 : f32
    %336 = vector.broadcast %cst_108 : f32 to vector<8x384xf32>
    %337 = arith.addf %336, %335 : vector<8x384xf32>
    %338 = arith.divf %336, %337 : vector<8x384xf32>
    %339 = vector.extract_strided_slice %316 {offsets = [0, 384], sizes = [8, 128], strides = [1, 1]} : vector<8x512xf32> to vector<8x128xf32>
    %340 = math.tanh %339 : vector<8x128xf32>
    %341 = vector.extract_strided_slice %338 {offsets = [0, 0], sizes = [8, 128], strides = [1, 1]} : vector<8x384xf32> to vector<8x128xf32>
    %342 = vector.extract_strided_slice %338 {offsets = [0, 128], sizes = [8, 128], strides = [1, 1]} : vector<8x384xf32> to vector<8x128xf32>
    %343 = vector.extract_strided_slice %338 {offsets = [0, 256], sizes = [8, 128], strides = [1, 1]} : vector<8x384xf32> to vector<8x128xf32>
    %344 = arith.mulf %342, %298 : vector<8x128xf32>
    %345 = arith.mulf %341, %340 : vector<8x128xf32>
    %346 = arith.addf %344, %345 : vector<8x128xf32>
    %347 = math.tanh %346 : vector<8x128xf32>
    %348 = arith.mulf %343, %347 : vector<8x128xf32>
    %c0_109 = arith.constant 0 : index
    %c0_110 = arith.constant 0 : index
    %349 = vector.load %arg7[%c0_109, %c0_110] : memref<8x256xf32, #tpu.memory_space<vmem>>, vector<8x128xf32>
    tpu.vector_store %arg7[%c0_109, %c0_110], %332 {strides = array<i32>} : memref<8x256xf32, #tpu.memory_space<vmem>>, vector<8x128xf32>,
    %c0_111 = arith.constant 0 : index
    %c128_112 = arith.constant 128 : index
    %350 = vector.load %arg7[%c0_111, %c128_112] : memref<8x256xf32, #tpu.memory_space<vmem>>, vector<8x128xf32>
    tpu.vector_store %arg7[%c0_111, %c128_112], %348 {strides = array<i32>} : memref<8x256xf32, #tpu.memory_space<vmem>>, vector<8x128xf32>,
    %c7_i32_113 = arith.constant 7 : i32
    %351 = arith.index_cast %c7_i32_113 : i32 to index
    %c0_114 = arith.constant 0 : index
    %c0_115 = arith.constant 0 : index
    %352 = vector.load %arg5[%351, %c0_114, %c0_115] : memref<8x8x512xf32, #tpu.memory_space<vmem>>, vector<1x8x512xf32>
    %353 = vector.shape_cast %352 : vector<1x8x512xf32> to vector<8x512xf32>
    %c7_i32_116 = arith.constant 7 : i32
    %354 = arith.subi %c7_i32_116, %c7_i32_113 : i32
    %355 = arith.index_cast %354 : i32 to index
    %c0_117 = arith.constant 0 : index
    %c0_118 = arith.constant 0 : index
    %356 = vector.load %arg6[%355, %c0_117, %c0_118] : memref<8x8x512xf32, #tpu.memory_space<vmem>>, vector<1x8x512xf32>
    %357 = vector.shape_cast %356 : vector<1x8x512xf32> to vector<8x512xf32>
    %c0_119 = arith.constant 0 : index
    %c0_120 = arith.constant 0 : index
    %358 = vector.load %arg7[%c0_119, %c0_120] : memref<8x256xf32, #tpu.memory_space<vmem>>, vector<8x256xf32>
    %359 = arith.truncf %358 : vector<8x256xf32> to vector<8x256xbf16>
    %cst_121 = arith.constant dense<0.000000e+00> : vector<8x1024xf32>
    %360 = tpu.matmul %359, %11, %cst_121 {dimension_numbers = #tpu.dot_dimension_numbers<[1], [0], [0], [1], [0, 0, 1, 1], [], []>} : vector<8x256xbf16>, vector<256x1024xbf16>, vector<8x1024xf32> -> vector<8x1024xf32>
    %361 = vector.extract_strided_slice %360 {offsets = [0, 0], sizes = [8, 512], strides = [1, 1]} : vector<8x1024xf32> to vector<8x512xf32>
    %362 = arith.addf %353, %361 : vector<8x512xf32>
    %363 = vector.extract_strided_slice %360 {offsets = [0, 512], sizes = [8, 512], strides = [1, 1]} : vector<8x1024xf32> to vector<8x512xf32>
    %364 = arith.addf %357, %363 : vector<8x512xf32>
    %365 = vector.extract_strided_slice %362 {offsets = [0, 0], sizes = [8, 384], strides = [1, 1]} : vector<8x512xf32> to vector<8x384xf32>
    %366 = arith.negf %365 : vector<8x384xf32>
    %367 = math.exp %366 : vector<8x384xf32>
    %cst_122 = arith.constant 1.000000e+00 : f32
    %368 = vector.broadcast %cst_122 : f32 to vector<8x384xf32>
    %369 = arith.addf %368, %367 : vector<8x384xf32>
    %370 = arith.divf %368, %369 : vector<8x384xf32>
    %371 = vector.extract_strided_slice %362 {offsets = [0, 384], sizes = [8, 128], strides = [1, 1]} : vector<8x512xf32> to vector<8x128xf32>
    %372 = math.tanh %371 : vector<8x128xf32>
    %373 = vector.extract_strided_slice %370 {offsets = [0, 0], sizes = [8, 128], strides = [1, 1]} : vector<8x384xf32> to vector<8x128xf32>
    %374 = vector.extract_strided_slice %370 {offsets = [0, 128], sizes = [8, 128], strides = [1, 1]} : vector<8x384xf32> to vector<8x128xf32>
    %375 = vector.extract_strided_slice %370 {offsets = [0, 256], sizes = [8, 128], strides = [1, 1]} : vector<8x384xf32> to vector<8x128xf32>
    %376 = arith.mulf %374, %330 : vector<8x128xf32>
    %377 = arith.mulf %373, %372 : vector<8x128xf32>
    %378 = arith.addf %376, %377 : vector<8x128xf32>
    %379 = math.tanh %378 : vector<8x128xf32>
    %380 = arith.mulf %375, %379 : vector<8x128xf32>
    %381 = vector.extract_strided_slice %364 {offsets = [0, 0], sizes = [8, 384], strides = [1, 1]} : vector<8x512xf32> to vector<8x384xf32>
    %382 = arith.negf %381 : vector<8x384xf32>
    %383 = math.exp %382 : vector<8x384xf32>
    %cst_123 = arith.constant 1.000000e+00 : f32
    %384 = vector.broadcast %cst_123 : f32 to vector<8x384xf32>
    %385 = arith.addf %384, %383 : vector<8x384xf32>
    %386 = arith.divf %384, %385 : vector<8x384xf32>
    %387 = vector.extract_strided_slice %364 {offsets = [0, 384], sizes = [8, 128], strides = [1, 1]} : vector<8x512xf32> to vector<8x128xf32>
    %388 = math.tanh %387 : vector<8x128xf32>
    %389 = vector.extract_strided_slice %386 {offsets = [0, 0], sizes = [8, 128], strides = [1, 1]} : vector<8x384xf32> to vector<8x128xf32>
    %390 = vector.extract_strided_slice %386 {offsets = [0, 128], sizes = [8, 128], strides = [1, 1]} : vector<8x384xf32> to vector<8x128xf32>
    %391 = vector.extract_strided_slice %386 {offsets = [0, 256], sizes = [8, 128], strides = [1, 1]} : vector<8x384xf32> to vector<8x128xf32>
    %392 = arith.mulf %390, %346 : vector<8x128xf32>
    %393 = arith.mulf %389, %388 : vector<8x128xf32>
    %394 = arith.addf %392, %393 : vector<8x128xf32>
    %395 = math.tanh %394 : vector<8x128xf32>
    %396 = arith.mulf %391, %395 : vector<8x128xf32>
    %c0_124 = arith.constant 0 : index
    %c0_125 = arith.constant 0 : index
    %397 = vector.load %arg7[%c0_124, %c0_125] : memref<8x256xf32, #tpu.memory_space<vmem>>, vector<8x128xf32>
    tpu.vector_store %arg7[%c0_124, %c0_125], %380 {strides = array<i32>} : memref<8x256xf32, #tpu.memory_space<vmem>>, vector<8x128xf32>,
    %c0_126 = arith.constant 0 : index
    %c128_127 = arith.constant 128 : index
    %398 = vector.load %arg7[%c0_126, %c128_127] : memref<8x256xf32, #tpu.memory_space<vmem>>, vector<8x128xf32>
    tpu.vector_store %arg7[%c0_126, %c128_127], %396 {strides = array<i32>} : memref<8x256xf32, #tpu.memory_space<vmem>>, vector<8x128xf32>,
    %c8_i32 = arith.constant 8 : i32
    %399 = arith.addf %380, %396 : vector<8x128xf32>
    %c0_128 = arith.constant 0 : index
    %c0_129 = arith.constant 0 : index
    %400 = vector.load %arg4[%c0_128, %c0_129] : memref<8x128xf32, #tpu.memory_space<vmem>>, vector<8x128xf32>
    tpu.vector_store %arg4[%c0_128, %c0_129], %399 {strides = array<i32>} : memref<8x128xf32, #tpu.memory_space<vmem>>, vector<8x128xf32>,
    return
  }
}

</mosaic_0001>

<bundles_post_ra>
// kernel: tpu_custom_call.1
= control target key start
LH: loop header
LB: loop body
LE: loop exit
PB: predicated region body
PF: predicated region fallthrough
CT: control target
= control target key end

     0   :  { %9 = vsyncpa [#allocation6], 0  ;;  %s5764_s0 = inlined_call_operand.hbm [shape: bf16[64,64], index: 0, kind: input, shape index: {}]   ;;  %s5765_s1 = inlined_call_operand.hbm [shape: bf16[64,1024], index: 1, kind: input, shape index: {}]   ;;  %s5766_s2 = inlined_call_operand.hbm [shape: bf16[256,1024], index: 2, kind: input, shape index: {}]   ;;  %s5767_s3 = inlined_call_operand.hbm [shape: f32[1,1024], index: 3, kind: input, shape index: {}]   ;;  %s5768_s4 = inlined_call_operand.hbm [shape: f32[8,128], index: 4, kind: output, shape index: {}]  }
   0x1   :  { %10 = vsyncpa [#allocation9], 0 }
   0x2   :  { %11 = vsyncpa [#allocation12], 0 }
   0x3   :  { %12 = vsyncpa [#allocation7], 0  ;;  %s3985_s15 = smov [#allocation8]  }
   0x4   :  { %s30_s16 = sshll.u32 %s3985_s15, 4  ;;  %s31_s16 = int_to_ptr.vmem [resolvable:$true] %s30_s16 }
   0x5   :  { %s3885_s17 = scalar_lea.vmem %s31_s16, 4096  ;;  %p3890_p1 = scmp.lt.s32.totalorder %s31_s16, %s31_s16 }
   0x6   :  { %p3886_p0 = scmp.ne.s32.totalorder %s31_s16, %s3885_s17  ;;  %p3891_p2 = scmp.lt.s32.totalorder %s3885_s17, %s3885_s17 }
   0x8   :  { %p3892_p3 = por %p3891_p2, %p3890_p1 }
   0xa   :  { %p3893_p4 = pnand %p3892_p3, %p3886_p0 }
   0xc   :  { %3896 = shalt.err (!%p3893_p4)
}
   0xd   :  { %s3986_s18 = smov 512   ;;  %s3987_s19 = smov 32  }
   0xe   :  { %36 = dma.hbm_to_vmem [thread:$0]  %s5765_s1, 4096, %s31_s16, [#allocation9], %s3986_s18, %s3986_s18, %s3987_s19  }
   0xf   :  { %s3988_s22 = smov [#allocation5]  }
  0x10   :  { %s18_s23 = sshll.u32 %s3988_s22, 4  ;;  %s19_s23 = int_to_ptr.vmem [resolvable:$true] %s18_s23 }
  0x11   :  { %s3905_s24 = scalar_lea.vmem %s19_s23, 512  ;;  %p3910_p6 = scmp.lt.s32.totalorder %s19_s23, %s19_s23 }
  0x12   :  { %p3906_p5 = scmp.ne.s32.totalorder %s19_s23, %s3905_s24  ;;  %p3911_p7 = scmp.lt.s32.totalorder %s3905_s24, %s3905_s24 }
  0x14   :  { %p3912_p8 = por %p3911_p7, %p3910_p6 }
  0x16   :  { %p3913_p9 = pnand %p3912_p8, %p3906_p5 }
  0x18   :  { %3916 = shalt.err (!%p3913_p9)
}
  0x19   :  { %s3989_s25 = smov 64   ;;  %s3990_s26 = smov 4  }
  0x1a   :  { %24 = dma.hbm_to_vmem [thread:$0]  %s5764_s0, 512, %s19_s23, [#allocation6], %s3989_s25, %s3989_s25, %s3990_s26  }
  0x1b   :  { %s3991_s29 = smov [#allocation10]   ;;  %s3992_s5 = smov [#allocation11]  }
  0x1c   :  { %s42_s30 = sshll.u32 %s3991_s29, 4  ;;  %s55_s1 = sshll.u32 %s3992_s5, 4  ;;  %s43_s30 = int_to_ptr.vmem [resolvable:$true] %s42_s30  ;;  %s56_s1 = int_to_ptr.vmem [resolvable:$true] %s55_s1 }
  0x1d   :  { %s3925_s6 = scalar_lea.vmem %s43_s30, 16384  ;;  %p3930_p11 = scmp.lt.s32.totalorder %s43_s30, %s43_s30 }
  0x1e   :  { %p3926_p10 = scmp.ne.s32.totalorder %s43_s30, %s3925_s6  ;;  %p3931_p12 = scmp.lt.s32.totalorder %s3925_s6, %s3925_s6 }
  0x20   :  { %p3932_p13 = por %p3931_p12, %p3930_p11 }
  0x22   :  { %p3933_p0 = pnand %p3932_p13, %p3926_p10 }
  0x24   :  { %3936 = shalt.err (!%p3933_p0)
}
  0x25   :  { %48 = dma.hbm_to_vmem [thread:$0]  %s5766_s2, 16384, %s43_s30, [#allocation9], %s3986_s18, %s3986_s18, %s3987_s19  }
  0x26   :  { %s3945_s0 = scalar_lea.vmem %s56_s1, 128  ;;  %p3950_p2 = scmp.lt.s32.totalorder %s56_s1, %s56_s1 }
  0x27   :  { %p3946_p1 = scmp.ne.s32.totalorder %s56_s1, %s3945_s0  ;;  %p3951_p3 = scmp.lt.s32.totalorder %s3945_s0, %s3945_s0 }
  0x29   :  { %p3952_p4 = por %p3951_p3, %p3950_p2 }
  0x2b   :  { %p3953_p5 = pnand %p3952_p4, %p3946_p1 }
  0x2d   :  { %3956 = shalt.err (!%p3953_p5)
}
  0x2e   :  { %58 = dma.hbm_to_vmem [thread:$0]  %s5767_s3, 128, %s56_s1, [#allocation12]  }
  0x2f   :  { %3977 = dma.done.wait [#allocation6], 512  }
  0x30   :  { %3978 = vsyncadd [#allocation6], 4294966784 }
  0x31   :  { %3979 = dma.done.wait [#allocation9], 20480  }
  0x32   :  { %3980 = vsyncadd [#allocation9], 4294946816 }
  0x33   :  { %3981 = dma.done.wait [#allocation12], 128  }
  0x34   :  { %3982 = vsyncadd [#allocation12], 4294967168  ;;  %v3993_v0 = vmov 0   ;;  %v104_v1 = vld [vmem:[#allocation8 + $0xc0] sm:$0xff]  ;;  %v105_v3 = vld [vmem:[#allocation8 + $0xc8] sm:$0xff]  ;;  %vm334_vm0 = vcmask 523264  }
  0x35   :  { %379 = vmatprep.mubr.bf16.mxu0 %v3993_v0  ;;  %452 = vmatprep.mubr.bf16.mxu1 %v3993_v0  ;;  %v108_v2 = vld [vmem:[#allocation8 + $0xe0] sm:$0xff]  ;;  %v109_v5 = vld [vmem:[#allocation8 + $0xe8] sm:$0xff]  ;;  %v106_v31 = vld [vmem:[#allocation8 + $0xd0] sm:$0xff]  ;;  %s3995_s2 = smov [#allocation13]  }
  0x36   :  { %v3407_v4 = vcombine.high %v104_v1, %v108_v2  ;;  %v3406_v6 = vcombine.low %v104_v1, %v108_v2  ;;  %v96_v7 = vld [vmem:[#allocation8 + $0x80] sm:$0xff]  ;;  %v3409_v9 = vcombine.high %v105_v3, %v109_v5  ;;  %v3408_v10 = vcombine.low %v105_v3, %v109_v5  ;;  %v97_v12 = vld [vmem:[#allocation8 + $0x88] sm:$0xff]  ;;  %v110_v32 = vld [vmem:[#allocation8 + $0xf0] sm:$0xff]  ;;  %s3367_s3 = sshll.u32 %s3995_s2, 4  ;;  %s3368_s3 = int_to_ptr.vmem [resolvable:$true] %s3367_s3 }
  0x37   :  { %v100_v8 = vld [vmem:[#allocation8 + $0xa0] sm:$0xff]  ;;  %v101_v13 = vld [vmem:[#allocation8 + $0xa8] sm:$0xff]  ;;  %v107_v33 = vld [vmem:[#allocation8 + $0xd8] sm:$0xff]  ;;  %v3411_v37 = vcombine.high %v106_v31, %v110_v32  ;;  %v3410_v42 = vcombine.low %v106_v31, %v110_v32  ;;  %s3957_s11 = scalar_lea.vmem %s3368_s3, 128  ;;  %p3962_p7 = scmp.lt.s32.totalorder %s3368_s3, %s3368_s3 }
  0x38   :  { %v3399_v11 = vcombine.high %v96_v7, %v100_v8  ;;  %v88_v14 = vld [vmem:[#allocation8 + $0x40] sm:$0xff]  ;;  %355 = vmatprep.subr.bf16.mxu0 %v3407_v4  ;;  %v3401_v15 = vcombine.high %v97_v12, %v101_v13  ;;  %v89_v17 = vld [vmem:[#allocation8 + $0x48] sm:$0xff]  ;;  %428 = vmatprep.subr.bf16.mxu1 %v3409_v9  ;;  %v3398_v19 = vcombine.low %v96_v7, %v100_v8  ;;  %v111_v34 = vld [vmem:[#allocation8 + $0xf8] sm:$0xff]  ;;  %p3958_p6 = scmp.ne.s32.totalorder %s3368_s3, %s3957_s11  ;;  %p3963_p8 = scmp.lt.s32.totalorder %s3957_s11, %s3957_s11 }
  0x39   :  { %v92_v16 = vld [vmem:[#allocation8 + $0x60] sm:$0xff]  ;;  %v93_v18 = vld [vmem:[#allocation8 + $0x68] sm:$0xff]  ;;  %356 = vmatpush1.bf16.msra.mxu0 %v3406_v6  ;;  %429 = vmatpush1.bf16.msra.mxu1 %v3408_v10  ;;  %v3400_v20 = vcombine.low %v97_v12, %v101_v13  ;;  %v3413_v38 = vcombine.high %v107_v33, %v111_v34  ;;  %v98_v40 = vld [vmem:[#allocation8 + $0x90] sm:$0xff]  ;;  %v3412_v46 = vcombine.low %v107_v33, %v111_v34 }
  0x3a   :  { %357 = vmatprep.subr.bf16.mxu0 %v3399_v11  ;;  %v3391_v21 = vcombine.high %v88_v14, %v92_v16  ;;  %430 = vmatprep.subr.bf16.mxu1 %v3401_v15  ;;  %v3393_v22 = vcombine.high %v89_v17, %v93_v18  ;;  %v80_v23 = vld [vmem:[#allocation8] sm:$0xff]  ;;  %v81_v25 = vld [vmem:[#allocation8 + $0x8] sm:$0xff]  ;;  %v3390_v27 = vcombine.low %v88_v14, %v92_v16  ;;  %v102_v41 = vld [vmem:[#allocation8 + $0xb0] sm:$0xff]  ;;  %p3964_p9 = por %p3963_p8, %p3962_p7 }
  0x3b   :  { %v84_v24 = vld [vmem:[#allocation8 + $0x20] sm:$0xff]  ;;  %v85_v26 = vld [vmem:[#allocation8 + $0x28] sm:$0xff]  ;;  %v3392_v28 = vcombine.low %v89_v17, %v93_v18  ;;  %v99_v43 = vld [vmem:[#allocation8 + $0x98] sm:$0xff]  ;;  %v3403_v45 = vcombine.high %v98_v40, %v102_v41  ;;  %v3402_v50 = vcombine.low %v98_v40, %v102_v41 }
  0x3c   :  { %v3383_v29 = vcombine.high %v80_v23, %v84_v24  ;;  %v3385_v30 = vcombine.high %v81_v25, %v85_v26  ;;  %v3382_v35 = vcombine.low %v80_v23, %v84_v24  ;;  %v3384_v36 = vcombine.low %v81_v25, %v85_v26  ;;  %v4041_v39 = vld [vmem:[#allocation5] sm:$0xff]   ;;  %v103_v44 = vld [vmem:[#allocation8 + $0xb8] sm:$0xff]  ;;  %v90_v47 = vld [vmem:[#allocation8 + $0x50] sm:$0xff]  ;;  %p3965_p10 = pnand %p3964_p9, %p3958_p6 }
  0x3d   :  { %358 = vmatpush1.bf16.msra.mxu0 %v3398_v19  ;;  %431 = vmatpush1.bf16.msra.mxu1 %v3400_v20  ;;  %v94_v48 = vld [vmem:[#allocation8 + $0x70] sm:$0xff]  ;;  %v3405_v49 = vcombine.high %v99_v43, %v103_v44  ;;  %v91_v51 = vld [vmem:[#allocation8 + $0x58] sm:$0xff]  ;;  %v3404_v54 = vcombine.low %v99_v43, %v103_v44  ;;  %v4049_v55 = vld [vmem:[#allocation5 + $0x8] sm:$0xff]  }
  0x3e   :  { %359 = vmatprep.subr.bf16.mxu0 %v3391_v21  ;;  %432 = vmatprep.subr.bf16.mxu1 %v3393_v22  ;;  %v95_v52 = vld [vmem:[#allocation8 + $0x78] sm:$0xff]  ;;  %v3395_v53 = vcombine.high %v90_v47, %v94_v48  ;;  %v82_v57 = vld [vmem:[#allocation8 + $0x10] sm:$0xff]  ;;  %v3394_v61 = vcombine.low %v90_v47, %v94_v48  ;;  %v759_v2 = vld [vmem:[#allocation10 + $0x1c0] sm:$0xff] }
  0x3f   :  { %v3397_v56 = vcombine.high %v91_v51, %v95_v52  ;;  %v86_v58 = vld [vmem:[#allocation8 + $0x30] sm:$0xff]  ;;  %v83_v59 = vld [vmem:[#allocation8 + $0x18] sm:$0xff]  ;;  %v3396_v62 = vcombine.low %v91_v51, %v95_v52  ;;  %v763_v3 = vld [vmem:[#allocation10 + $0x1e0] sm:$0xff] }
  0x40   :  { %v87_v60 = vld [vmem:[#allocation8 + $0x38] sm:$0xff]  ;;  %v3387_v63 = vcombine.high %v82_v57, %v86_v58  ;;  %v760_v4 = vld [vmem:[#allocation10 + $0x1c8] sm:$0xff]  ;;  %v3386_v6 = vcombine.low %v82_v57, %v86_v58  ;;  %v4057_v8 = vcombine.high %v759_v2, %v763_v3  ;;  %v4059_v9 = vld [vmem:[#allocation5 + $0x10] sm:$0xff]   ;;  %v4079_v16 = vcombine.low %v759_v2, %v763_v3 }
  0x41   :  { %360 = vmatpush1.bf16.msra.mxu0 %v3390_v27  ;;  %433 = vmatpush1.bf16.msra.mxu1 %v3392_v28  ;;  %v3389_v1 = vcombine.high %v83_v59, %v87_v60  ;;  %v764_v5 = vld [vmem:[#allocation10 + $0x1e8] sm:$0xff]  ;;  %v3388_v7 = vcombine.low %v83_v59, %v87_v60  ;;  %v4071_v11 = vld [vmem:[#allocation5 + $0x18] sm:$0xff]   ;;  %v751_v12 = vld [vmem:[#allocation10 + $0x180] sm:$0xff] }
  0x42   :  { %361 = vmatprep.subr.bf16.mxu0 %v3383_v29  ;;  %434 = vmatprep.subr.bf16.mxu1 %v3385_v30  ;;  %6035 = vst [vmem:[#allocation18_spill] sm:$0xff] %v4057_v8  ;;  %v4061_v10 = vcombine.high %v760_v4, %v764_v5  ;;  %v755_v13 = vld [vmem:[#allocation10 + $0x1a0] sm:$0xff]  ;;  %v752_v14 = vld [vmem:[#allocation10 + $0x188] sm:$0xff]  ;;  %6037 = vst [vmem:[#allocation20_spill] sm:$0xff] %v4079_v16  ;;  %v4081_v17 = vcombine.low %v760_v4, %v764_v5 }
  0x43   :  { %v756_v15 = vld [vmem:[#allocation10 + $0x1a8] sm:$0xff]  ;;  %v4083_v18 = vcombine.high %v751_v12, %v755_v13  ;;  %v743_v20 = vld [vmem:[#allocation10 + $0x140] sm:$0xff]  ;;  %v4092_v24 = vcombine.low %v751_v12, %v755_v13 }
  0x44   :  { %6036 = vst [vmem:[#allocation19_spill] sm:$0xff] %v4061_v10  ;;  %6038 = vst [vmem:[#allocation21_spill] sm:$0xff] %v4081_v17  ;;  %v4085_v19 = vcombine.high %v752_v14, %v756_v15  ;;  %v747_v21 = vld [vmem:[#allocation10 + $0x160] sm:$0xff]  ;;  %v744_v22 = vld [vmem:[#allocation10 + $0x148] sm:$0xff]  ;;  %v4096_v25 = vcombine.low %v752_v14, %v756_v15 }
  0x45   :  { %362 = vmatpush1.bf16.msra.mxu0 %v3382_v35  ;;  %435 = vmatpush1.bf16.msra.mxu1 %v3384_v36  ;;  %6039 = vst [vmem:[#allocation22_spill] sm:$0xff] %v4083_v18  ;;  %v748_v23 = vld [vmem:[#allocation10 + $0x168] sm:$0xff]  ;;  %6041 = vst [vmem:[#allocation24_spill] sm:$0xff] %v4092_v24  ;;  %v4098_v26 = vcombine.high %v743_v20, %v747_v21  ;;  %v735_v28 = vld [vmem:[#allocation10 + $0x100] sm:$0xff]  ;;  %v4106_v32 = vcombine.low %v743_v20, %v747_v21  ;;  %v5769_v21 = vmov 0.0|0.0  }
  0x46   :  { %501 = vmatprep.subr.bf16.mxu0 %v3411_v37  ;;  %574 = vmatprep.subr.bf16.mxu1 %v3413_v38  ;;  %6040 = vst [vmem:[#allocation23_spill] sm:$0xff] %v4085_v19  ;;  %6042 = vst [vmem:[#allocation25_spill] sm:$0xff] %v4096_v25  ;;  %v4101_v27 = vcombine.high %v744_v22, %v748_v23  ;;  %v739_v29 = vld [vmem:[#allocation10 + $0x120] sm:$0xff]  ;;  %v736_v30 = vld [vmem:[#allocation10 + $0x108] sm:$0xff]  ;;  %v4110_v33 = vcombine.low %v744_v22, %v748_v23 }
  0x47   :  { %6043 = vst [vmem:[#allocation26_spill] sm:$0xff] %v4098_v26  ;;  %v740_v31 = vld [vmem:[#allocation10 + $0x128] sm:$0xff]  ;;  %6045 = vst [vmem:[#allocation28_spill] sm:$0xff] %v4106_v32  ;;  %v4112_v34 = vcombine.high %v735_v28, %v739_v29  ;;  %v727_v36 = vld [vmem:[#allocation10 + $0xc0] sm:$0xff]  ;;  %v4120_v40 = vcombine.low %v735_v28, %v739_v29 }
  0x48   :  { %3414 = vmatmul.mubr.msk.bf16.vlgmr.msra.gmra.mxu0 %vm334_vm0, %v4041_v39  ;;  %3418 = vmatmul.mubr.msk.bf16.vlgmr.msra.gmra.mxu1 %vm334_vm0, %v4041_v39  ;;  %6044 = vst [vmem:[#allocation27_spill] sm:$0xff] %v4101_v27  ;;  %6046 = vst [vmem:[#allocation29_spill] sm:$0xff] %v4110_v33  ;;  %v4115_v35 = vcombine.high %v736_v30, %v740_v31  ;;  %v731_v37 = vld [vmem:[#allocation10 + $0xe0] sm:$0xff]  ;;  %v728_v38 = vld [vmem:[#allocation10 + $0xc8] sm:$0xff]  ;;  %v4126_v41 = vcombine.low %v736_v30, %v740_v31 }
  0x49   :  { %502 = vmatpush1.bf16.msra.mxu0 %v3410_v42  ;;  %389 = vmatprep.mubr.bf16.mxu0 %v3993_v0  ;;  %6047 = vst [vmem:[#allocation30_spill] sm:$0xff] %v4112_v34  ;;  %6049 = vst [vmem:[#allocation32_spill] sm:$0xff] %v4120_v40  ;;  %v4128_v42 = vcombine.high %v727_v36, %v731_v37  ;;  %v719_v44 = vld [vmem:[#allocation10 + $0x80] sm:$0xff]  ;;  %v724_v47 = vld [vmem:[#allocation10 + $0xa8] sm:$0xff]  ;;  %v4136_v48 = vcombine.low %v727_v36, %v731_v37 }
  0x4a   :  { %462 = vmatprep.mubr.bf16.mxu1 %v3993_v0  ;;  %503 = vmatprep.subr.bf16.mxu0 %v3403_v45  ;;  %6048 = vst [vmem:[#allocation31_spill] sm:$0xff] %v4115_v35  ;;  %6050 = vst [vmem:[#allocation33_spill] sm:$0xff] %v4126_v41  ;;  %v723_v45 = vld [vmem:[#allocation10 + $0xa0] sm:$0xff]  ;;  %v816_v22 = vld [vmem:[#allocation10 + $0x388] sm:$0xff] }
  0x4b   :  { %575 = vmatpush1.bf16.msra.mxu1 %v3412_v46  ;;  %6051 = vst [vmem:[#allocation34_spill] sm:$0xff] %v4128_v42  ;;  %v720_v46 = vld [vmem:[#allocation10 + $0x88] sm:$0xff]  ;;  %6053 = vst [vmem:[#allocation36_spill] sm:$0xff] %v4136_v48  ;;  %v711_v52 = vld [vmem:[#allocation10 + $0x40] sm:$0xff] }
  0x4c   :  { %576 = vmatprep.subr.bf16.mxu1 %v3405_v49  ;;  %v4145_v51 = vcombine.high %v720_v46, %v724_v47  ;;  %v4156_v57 = vcombine.low %v720_v46, %v724_v47  ;;  %v703_v60 = vld [vmem:[#allocation10] sm:$0xff]  ;;  %v820_v23 = vld [vmem:[#allocation10 + $0x3a8] sm:$0xff] }
  0x4d   :  { %504 = vmatpush1.bf16.msra.mxu0 %v3402_v50  ;;  %v4142_v50 = vcombine.high %v719_v44, %v723_v45  ;;  %v823_v5 = vld [vmem:[#allocation10 + $0x3c0] sm:$0xff]  ;;  %v4205_v30 = vcombine.high %v816_v22, %v820_v23  ;;  %v808_v37 = vld [vmem:[#allocation10 + $0x348] sm:$0xff] }
  0x4e   :  { %505 = vmatprep.subr.bf16.mxu0 %v3395_v53  ;;  %6056 = vst [vmem:[#allocation39_spill] sm:$0xff] %v4145_v51  ;;  %v715_v53 = vld [vmem:[#allocation10 + $0x60] sm:$0xff]  ;;  %6058 = vst [vmem:[#allocation41_spill] sm:$0xff] %v4156_v57 }
  0x4f   :  { %577 = vmatpush1.bf16.msra.mxu1 %v3404_v54  ;;  %6055 = vst [vmem:[#allocation38_spill] sm:$0xff] %v4142_v50  ;;  %v712_v54 = vld [vmem:[#allocation10 + $0x48] sm:$0xff]  ;;  %v4158_v58 = vcombine.high %v711_v52, %v715_v53  ;;  %v815_v15 = vld [vmem:[#allocation10 + $0x380] sm:$0xff]  ;;  %6072 = vst [vmem:[#allocation55_spill] sm:$0xff] %v4205_v30 }
  0x50   :  { %3415 = vmatmul.mubr.msk.bf16.gmra.mxu0 %vm334_vm0, %v4049_v55  ;;  %578 = vmatprep.subr.bf16.mxu1 %v3397_v56  ;;  %v4150_v56 = vcombine.low %v719_v44, %v723_v45  ;;  %v819_v20 = vld [vmem:[#allocation10 + $0x3a0] sm:$0xff]  ;;  %v4212_v44 = vcombine.low %v816_v22, %v820_v23 }
  0x51   :  { %3419 = vmatmul.mubr.msk.bf16.gmra.mxu1 %vm334_vm0, %v4049_v55  ;;  %399 = vmatprep.mubr.bf16.mxu0 %v3993_v0  ;;  %6059 = vst [vmem:[#allocation42_spill] sm:$0xff] %v4158_v58  ;;  %v4202_v29 = vcombine.high %v815_v15, %v819_v20  ;;  %v807_v31 = vld [vmem:[#allocation10 + $0x340] sm:$0xff] }
  0x52   :  { %472 = vmatprep.mubr.bf16.mxu1 %v3993_v0  ;;  %506 = vmatpush1.bf16.msra.mxu0 %v3394_v61  ;;  %6057 = vst [vmem:[#allocation40_spill] sm:$0xff] %v4150_v56  ;;  %v707_v61 = vld [vmem:[#allocation10 + $0x20] sm:$0xff]  ;;  %6074 = vst [vmem:[#allocation57_spill] sm:$0xff] %v4212_v44 }
  0x53   :  { %507 = vmatprep.subr.bf16.mxu0 %v3387_v63  ;;  %579 = vmatpush1.bf16.msra.mxu1 %v3396_v62  ;;  %v704_v62 = vld [vmem:[#allocation10 + $0x8] sm:$0xff]  ;;  %v4172_v3 = vcombine.high %v703_v60, %v707_v61  ;;  %6071 = vst [vmem:[#allocation54_spill] sm:$0xff] %v4202_v29  ;;  %v811_v36 = vld [vmem:[#allocation10 + $0x360] sm:$0xff] }
  0x54   :  { %580 = vmatprep.subr.bf16.mxu1 %v3389_v1  ;;  %v708_v63 = vld [vmem:[#allocation10 + $0x28] sm:$0xff]  ;;  %v4166_v1 = vcombine.low %v711_v52, %v715_v53  ;;  %v4214_v45 = vcombine.high %v807_v31, %v811_v36  ;;  %v799_v47 = vld [vmem:[#allocation10 + $0x300] sm:$0xff] }
  0x55   :  { %6063 = vst [vmem:[#allocation46_spill] sm:$0xff] %v4172_v3  ;;  %v4175_v4 = vcombine.high %v704_v62, %v708_v63  ;;  %v4186_v12 = vcombine.low %v704_v62, %v708_v63  ;;  %v803_v52 = vld [vmem:[#allocation10 + $0x320] sm:$0xff]  ;;  %v800_v53 = vld [vmem:[#allocation10 + $0x308] sm:$0xff] }
  0x56   :  { %508 = vmatpush1.bf16.msra.mxu0 %v3386_v6  ;;  %6061 = vst [vmem:[#allocation44_spill] sm:$0xff] %v4166_v1  ;;  %v827_v6 = vld [vmem:[#allocation10 + $0x3e0] sm:$0xff]  ;;  %6075 = vst [vmem:[#allocation58_spill] sm:$0xff] %v4214_v45 }
  0x57   :  { %581 = vmatpush1.bf16.msra.mxu1 %v3388_v7  ;;  %1486 = vmatprep.subr.bf16.mxu0 %v4057_v8  ;;  %6064 = vst [vmem:[#allocation47_spill] sm:$0xff] %v4175_v4  ;;  %v824_v7 = vld [vmem:[#allocation10 + $0x3c8] sm:$0xff]  ;;  %6066 = vst [vmem:[#allocation49_spill] sm:$0xff] %v4186_v12  ;;  %v4188_v13 = vcombine.high %v823_v5, %v827_v6  ;;  %v791_v63 = vld [vmem:[#allocation10 + $0x2c0] sm:$0xff] }
  0x58   :  { %3416 = vmatmul.mubr.msk.bf16.gmra.mxu0 %vm334_vm0, %v4059_v9  ;;  %1527 = vmatprep.subr.bf16.mxu1 %v4061_v10  ;;  %v783_v23 = vld [vmem:[#allocation10 + $0x280] sm:$0xff] }
  0x59   :  { %3420 = vmatmul.mubr.msk.bf16.gmra.mxu1 %vm334_vm0, %v4059_v9  ;;  %409 = vmatprep.mubr.bf16.mxu0 %v3993_v0  ;;  %6067 = vst [vmem:[#allocation50_spill] sm:$0xff] %v4188_v13 }
  0x5a   :  { %482 = vmatprep.mubr.bf16.mxu1 %v3993_v0 }
  0x60   :  { %3417 = vmatmul.mubr.msk.bf16.gmra.mxu0 %vm334_vm0, %v4071_v11 }
  0x61   :  { %3421 = vmatmul.mubr.msk.bf16.gmra.mxu1 %vm334_vm0, %v4071_v11  ;;  %525 = vmatprep.mubr.bf16.mxu0 %v3993_v0 }
  0x62   :  { %598 = vmatprep.mubr.bf16.mxu1 %v3993_v0 }
  0x68   :  { %3422 = vmatmul.mubr.msk.bf16.vlgmr.msra.gmra.mxu0 %vm334_vm0, %v4041_v39 }
  0x69   :  { %3426 = vmatmul.mubr.msk.bf16.vlgmr.msra.gmra.mxu1 %vm334_vm0, %v4041_v39  ;;  %1487 = vmatpush1.bf16.msra.mxu0 %v4079_v16  ;;  %v732_v39 = vld [vmem:[#allocation10 + $0xe8] sm:$0xff] }
  0x6a   :  { %1528 = vmatpush1.bf16.msra.mxu1 %v4081_v17  ;;  %1488 = vmatprep.subr.bf16.mxu0 %v4083_v18  ;;  %v4131_v43 = vcombine.high %v728_v38, %v732_v39  ;;  %v4140_v49 = vcombine.low %v728_v38, %v732_v39  ;;  %v812_v38 = vld [vmem:[#allocation10 + $0x368] sm:$0xff]  ;;  %v4208_v39 = vcombine.low %v815_v15, %v819_v20 }
  0x6b   :  { %1529 = vmatprep.subr.bf16.mxu1 %v4085_v19  ;;  %535 = vmatprep.mubr.bf16.mxu0 %v3993_v0  ;;  %v4217_v46 = vcombine.high %v808_v37, %v812_v38 }
  0x6c   :  { %608 = vmatprep.mubr.bf16.mxu1 %v3993_v0  ;;  %6052 = vst [vmem:[#allocation35_spill] sm:$0xff] %v4131_v43  ;;  %6054 = vst [vmem:[#allocation37_spill] sm:$0xff] %v4140_v49 }
  0x6d   :  { %1489 = vmatpush1.bf16.msra.mxu0 %v4092_v24  ;;  %6073 = vst [vmem:[#allocation56_spill] sm:$0xff] %v4208_v39  ;;  %6076 = vst [vmem:[#allocation59_spill] sm:$0xff] %v4217_v46 }
  0x6e   :  { %1530 = vmatpush1.bf16.msra.mxu1 %v4096_v25  ;;  %1490 = vmatprep.subr.bf16.mxu0 %v4098_v26 }
  0x6f   :  { %1531 = vmatprep.subr.bf16.mxu1 %v4101_v27 }
  0x70   :  { %3423 = vmatmul.mubr.msk.bf16.gmra.mxu0 %vm334_vm0, %v4049_v55 }
  0x71   :  { %1491 = vmatpush1.bf16.msra.mxu0 %v4106_v32  ;;  %3427 = vmatmul.mubr.msk.bf16.gmra.mxu1 %vm334_vm0, %v4049_v55  ;;  %v716_v55 = vld [vmem:[#allocation10 + $0x68] sm:$0xff] }
  0x72   :  { %1532 = vmatpush1.bf16.msra.mxu1 %v4110_v33  ;;  %1492 = vmatprep.subr.bf16.mxu0 %v4112_v34  ;;  %v4161_v59 = vcombine.high %v712_v54, %v716_v55  ;;  %v4170_v2 = vcombine.low %v712_v54, %v716_v55  ;;  %v804_v54 = vld [vmem:[#allocation10 + $0x328] sm:$0xff]  ;;  %v4220_v55 = vcombine.low %v807_v31, %v811_v36  ;;  %v787_v31 = vld [vmem:[#allocation10 + $0x2a0] sm:$0xff] }
  0x73   :  { %1533 = vmatprep.subr.bf16.mxu1 %v4115_v35  ;;  %545 = vmatprep.mubr.bf16.mxu0 %v3993_v0  ;;  %v4229_v62 = vcombine.high %v800_v53, %v804_v54  ;;  %v4236_v15 = vcombine.low %v800_v53, %v804_v54  ;;  %v784_v36 = vld [vmem:[#allocation10 + $0x288] sm:$0xff]  ;;  %v775_v54 = vld [vmem:[#allocation10 + $0x240] sm:$0xff] }
  0x74   :  { %618 = vmatprep.mubr.bf16.mxu1 %v3993_v0  ;;  %6060 = vst [vmem:[#allocation43_spill] sm:$0xff] %v4161_v59  ;;  %6062 = vst [vmem:[#allocation45_spill] sm:$0xff] %v4170_v2 }
  0x75   :  { %1493 = vmatpush1.bf16.msra.mxu0 %v4120_v40  ;;  %6077 = vst [vmem:[#allocation60_spill] sm:$0xff] %v4220_v55  ;;  %6080 = vst [vmem:[#allocation63_spill] sm:$0xff] %v4229_v62 }
  0x76   :  { %1534 = vmatpush1.bf16.msra.mxu1 %v4126_v41  ;;  %1494 = vmatprep.subr.bf16.mxu0 %v4128_v42  ;;  %6082 = vst [vmem:[#allocation65_spill] sm:$0xff] %v4236_v15 }
  0x77   :  { %1535 = vmatprep.subr.bf16.mxu1 %v4131_v43 }
  0x78   :  { %3424 = vmatmul.mubr.msk.bf16.gmra.mxu0 %vm334_vm0, %v4059_v9 }
  0x79   :  { %1495 = vmatpush1.bf16.msra.mxu0 %v4136_v48  ;;  %3428 = vmatmul.mubr.msk.bf16.gmra.mxu1 %vm334_vm0, %v4059_v9  ;;  %v4180_v9 = vcombine.low %v703_v60, %v707_v61  ;;  %v4224_v60 = vcombine.low %v808_v37, %v812_v38  ;;  %v4226_v61 = vcombine.high %v799_v47, %v803_v52  ;;  %v788_v37 = vld [vmem:[#allocation10 + $0x2a8] sm:$0xff] }
  0x7a   :  { %1536 = vmatpush1.bf16.msra.mxu1 %v4140_v49  ;;  %1496 = vmatprep.subr.bf16.mxu0 %v4142_v50  ;;  %v4253_v53 = vcombine.high %v784_v36, %v788_v37 }
  0x7b   :  { %1537 = vmatprep.subr.bf16.mxu1 %v4145_v51  ;;  %555 = vmatprep.mubr.bf16.mxu0 %v3993_v0  ;;  %6065 = vst [vmem:[#allocation48_spill] sm:$0xff] %v4180_v9  ;;  %6078 = vst [vmem:[#allocation61_spill] sm:$0xff] %v4224_v60 }
  0x7c   :  { %628 = vmatprep.mubr.bf16.mxu1 %v3993_v0  ;;  %v828_v0 = vld [vmem:[#allocation10 + $0x3e8] sm:$0xff]  ;;  %6079 = vst [vmem:[#allocation62_spill] sm:$0xff] %v4226_v61  ;;  %6088 = vst [vmem:[#allocation71_spill] sm:$0xff] %v4253_v53 }
  0x7d   :  { %1497 = vmatpush1.bf16.msra.mxu0 %v4150_v56  ;;  %v4191_v14 = vcombine.high %v824_v7, %v828_v0  ;;  %v4200_v28 = vcombine.low %v824_v7, %v828_v0  ;;  %v796_v7 = vld [vmem:[#allocation10 + $0x2e8] sm:$0xff]  ;;  %v4232_v0 = vcombine.low %v799_v47, %v803_v52  ;;  %v4250_v52 = vcombine.high %v783_v23, %v787_v31 }
  0x7e   :  { %1538 = vmatpush1.bf16.msra.mxu1 %v4156_v57  ;;  %1498 = vmatprep.subr.bf16.mxu0 %v4158_v58 }
  0x7f   :  { %1539 = vmatprep.subr.bf16.mxu1 %v4161_v59  ;;  %6068 = vst [vmem:[#allocation51_spill] sm:$0xff] %v4191_v14  ;;  %6070 = vst [vmem:[#allocation53_spill] sm:$0xff] %v4200_v28 }
  0x80   :  { %3425 = vmatmul.mubr.msk.bf16.gmra.mxu0 %vm334_vm0, %v4071_v11  ;;  %6081 = vst [vmem:[#allocation64_spill] sm:$0xff] %v4232_v0  ;;  %6087 = vst [vmem:[#allocation70_spill] sm:$0xff] %v4250_v52 }
  0x81   :  { %1499 = vmatpush1.bf16.msra.mxu0 %v4166_v1  ;;  %3429 = vmatmul.mubr.msk.bf16.gmra.mxu1 %vm334_vm0, %v4071_v11  ;;  %v4196_v11 = vcombine.low %v823_v5, %v827_v6  ;;  %v795_v5 = vld [vmem:[#allocation10 + $0x2e0] sm:$0xff]  ;;  %v792_v6 = vld [vmem:[#allocation10 + $0x2c8] sm:$0xff] }
  0x82   :  { %1540 = vmatpush1.bf16.msra.mxu1 %v4170_v2  ;;  %1500 = vmatprep.subr.bf16.mxu0 %v4172_v3  ;;  %v4238_v20 = vcombine.high %v791_v63, %v795_v5  ;;  %v4241_v22 = vcombine.high %v792_v6, %v796_v7  ;;  %v4244_v38 = vcombine.low %v791_v63, %v795_v5 }
  0x83   :  { %1541 = vmatprep.subr.bf16.mxu1 %v4175_v4  ;;  %1518 = vmatprep.mubr.bf16.mxu0 %v5769_v21  ;;  %6069 = vst [vmem:[#allocation52_spill] sm:$0xff] %v4196_v11  ;;  %v4248_v47 = vcombine.low %v792_v6, %v796_v7  ;;  %v4256_v63 = vcombine.low %v783_v23, %v787_v31 }
  0x84   :  { %1559 = vmatprep.mubr.bf16.mxu1 %v5769_v21  ;;  %6083 = vst [vmem:[#allocation66_spill] sm:$0xff] %v4238_v20  ;;  %6084 = vst [vmem:[#allocation67_spill] sm:$0xff] %v4241_v22  ;;  %v779_v21 = vld [vmem:[#allocation10 + $0x260] sm:$0xff]  ;;  %v4260_v5 = vcombine.low %v784_v36, %v788_v37 }
  0x85   :  { %1501 = vmatpush1.bf16.msra.mxu0 %v4180_v9  ;;  %6085 = vst [vmem:[#allocation68_spill] sm:$0xff] %v4244_v38  ;;  %6086 = vst [vmem:[#allocation69_spill] sm:$0xff] %v4248_v47  ;;  %v4262_v6 = vcombine.high %v775_v54, %v779_v21  ;;  %v4268_v23 = vcombine.low %v775_v54, %v779_v21 }
  0x86   :  { %1542 = vmatpush1.bf16.msra.mxu1 %v4186_v12  ;;  %1502 = vmatprep.subr.bf16.mxu0 %v4188_v13  ;;  %6089 = vst [vmem:[#allocation72_spill] sm:$0xff] %v4256_v63  ;;  %6090 = vst [vmem:[#allocation73_spill] sm:$0xff] %v4260_v5 }
  0x87   :  { %1543 = vmatprep.subr.bf16.mxu1 %v4191_v14  ;;  %6091 = vst [vmem:[#allocation74_spill] sm:$0xff] %v4262_v6  ;;  %6093 = vst [vmem:[#allocation76_spill] sm:$0xff] %v4268_v23 }
  0x89   :  { %1503 = vmatpush2.bf16.msra.mxu0 %v4196_v11 }
  0x8a   :  { %1544 = vmatpush2.bf16.msra.mxu1 %v4200_v28  ;;  %1504 = vmatprep.subr.bf16.mxu0 %v4202_v29 }
  0x8b   :  { %1545 = vmatprep.subr.bf16.mxu1 %v4205_v30 }
  0x8d   :  { %1505 = vmatpush2.bf16.msra.mxu0 %v4208_v39 }
  0x8e   :  { %1546 = vmatpush2.bf16.msra.mxu1 %v4212_v44  ;;  %1506 = vmatprep.subr.bf16.mxu0 %v4214_v45 }
  0x8f   :  { %1547 = vmatprep.subr.bf16.mxu1 %v4217_v46 }
  0x91   :  { %1507 = vmatpush2.bf16.msra.mxu0 %v4220_v55 }
  0x92   :  { %1548 = vmatpush2.bf16.msra.mxu1 %v4224_v60  ;;  %1508 = vmatprep.subr.bf16.mxu0 %v4226_v61  ;;  %v780_v61 = vld [vmem:[#allocation10 + $0x268] sm:$0xff]  ;;  %v734_v60 = vld [vmem:[#allocation10 + $0xf8] sm:$0xff] }
  0x93   :  { %1549 = vmatprep.subr.bf16.mxu1 %v4229_v62  ;;  %v776_v62 = vld [vmem:[#allocation10 + $0x248] sm:$0xff] }
  0x94   :  { %v4265_v7 = vcombine.high %v776_v62, %v780_v61  ;;  %v4272_v31 = vcombine.low %v776_v62, %v780_v61 }
  0x95   :  { %1509 = vmatpush2.bf16.msra.mxu0 %v4232_v0  ;;  %v772_v0 = vld [vmem:[#allocation10 + $0x228] sm:$0xff] }
  0x96   :  { %1550 = vmatpush2.bf16.msra.mxu1 %v4236_v15  ;;  %1510 = vmatprep.subr.bf16.mxu0 %v4238_v20  ;;  %6092 = vst [vmem:[#allocation75_spill] sm:$0xff] %v4265_v7  ;;  %v771_v20 = vld [vmem:[#allocation10 + $0x220] sm:$0xff]  ;;  %v768_v15 = vld [vmem:[#allocation10 + $0x208] sm:$0xff]  ;;  %6094 = vst [vmem:[#allocation77_spill] sm:$0xff] %v4272_v31 }
  0x97   :  { %1551 = vmatprep.subr.bf16.mxu1 %v4241_v22  ;;  %v767_v22 = vld [vmem:[#allocation10 + $0x200] sm:$0xff]  ;;  %v4277_v37 = vcombine.high %v768_v15, %v772_v0  ;;  %v4284_v61 = vcombine.low %v768_v15, %v772_v0 }
  0x98   :  { %v4274_v36 = vcombine.high %v767_v22, %v771_v20  ;;  %v4280_v21 = vcombine.low %v767_v22, %v771_v20 }
  0x99   :  { %1511 = vmatpush2.bf16.msra.mxu0 %v4244_v38  ;;  %6096 = vst [vmem:[#allocation79_spill] sm:$0xff] %v4277_v37  ;;  %v766_v38 = vld [vmem:[#allocation10 + $0x1f8] sm:$0xff]  ;;  %6098 = vst [vmem:[#allocation81_spill] sm:$0xff] %v4284_v61 }
  0x9a   :  { %1552 = vmatpush2.bf16.msra.mxu1 %v4248_v47  ;;  %1512 = vmatprep.subr.bf16.mxu0 %v4250_v52  ;;  %6095 = vst [vmem:[#allocation78_spill] sm:$0xff] %v4274_v36  ;;  %v765_v52 = vld [vmem:[#allocation10 + $0x1f0] sm:$0xff]  ;;  %v762_v47 = vld [vmem:[#allocation10 + $0x1d8] sm:$0xff]  ;;  %6097 = vst [vmem:[#allocation80_spill] sm:$0xff] %v4280_v21 }
  0x9b   :  { %1553 = vmatprep.subr.bf16.mxu1 %v4253_v53  ;;  %v761_v53 = vld [vmem:[#allocation10 + $0x1d0] sm:$0xff]  ;;  %v4289_v54 = vcombine.high %v762_v47, %v766_v38  ;;  %v4296_v0 = vcombine.low %v762_v47, %v766_v38 }
  0x9c   :  { %v4286_v62 = vcombine.high %v761_v53, %v765_v52  ;;  %v4292_v20 = vcombine.low %v761_v53, %v765_v52 }
  0x9d   :  { %1513 = vmatpush2.bf16.msra.mxu0 %v4256_v63  ;;  %6100 = vst [vmem:[#allocation83_spill] sm:$0xff] %v4289_v54  ;;  %v758_v63 = vld [vmem:[#allocation10 + $0x1b8] sm:$0xff]  ;;  %6102 = vst [vmem:[#allocation85_spill] sm:$0xff] %v4296_v0 }
  0x9e   :  { %1554 = vmatpush2.bf16.msra.mxu1 %v4260_v5  ;;  %1514 = vmatprep.subr.bf16.mxu0 %v4262_v6  ;;  %6099 = vst [vmem:[#allocation82_spill] sm:$0xff] %v4286_v62  ;;  %v757_v6 = vld [vmem:[#allocation10 + $0x1b0] sm:$0xff]  ;;  %v754_v5 = vld [vmem:[#allocation10 + $0x198] sm:$0xff]  ;;  %6101 = vst [vmem:[#allocation84_spill] sm:$0xff] %v4292_v20 }
  0x9f   :  { %1555 = vmatprep.subr.bf16.mxu1 %v4265_v7  ;;  %v753_v7 = vld [vmem:[#allocation10 + $0x190] sm:$0xff]  ;;  %v4301_v22 = vcombine.high %v754_v5, %v758_v63  ;;  %v4310_v38 = vcombine.low %v754_v5, %v758_v63 }
  0xa0   :  { %v4298_v15 = vcombine.high %v753_v7, %v757_v6  ;;  %v4306_v52 = vcombine.low %v753_v7, %v757_v6 }
  0xa1   :  { %1515 = vmatpush2.bf16.msra.mxu0 %v4268_v23  ;;  %6104 = vst [vmem:[#allocation87_spill] sm:$0xff] %v4301_v22  ;;  %v746_v23 = vld [vmem:[#allocation10 + $0x158] sm:$0xff]  ;;  %6107 = vst [vmem:[#allocation89_spill] sm:$0xff] %v4310_v38 }
  0xa2   :  { %1556 = vmatpush2.bf16.msra.mxu1 %v4272_v31  ;;  %1516 = vmatprep.subr.bf16.mxu0 %v4274_v36  ;;  %6103 = vst [vmem:[#allocation86_spill] sm:$0xff] %v4298_v15  ;;  %v749_v36 = vld [vmem:[#allocation10 + $0x170] sm:$0xff]  ;;  %v6105_v31 = vmov 0.0|0.0   ;;  %6106 = vst [vmem:[#allocation88_spill] sm:$0xff] %v4306_v52 }
  0xa3   :  { %1557 = vmatprep.subr.bf16.mxu1 %v4277_v37  ;;  %v745_v37 = vld [vmem:[#allocation10 + $0x150] sm:$0xff] }
  0xa4   :  { %v4312_v47 = vcombine.high %v745_v37, %v749_v36  ;;  %v4320_v6 = vcombine.low %v745_v37, %v749_v36 }
  0xa5   :  { %1517 = vmatpush2.bf16.msra.mxu0 %v4280_v21  ;;  %v750_v21 = vld [vmem:[#allocation10 + $0x178] sm:$0xff] }
  0xa6   :  { %1558 = vmatpush2.bf16.msra.mxu1 %v4284_v61  ;;  %1568 = vmatprep.subr.bf16.mxu0 %v4286_v62  ;;  %6108 = vst [vmem:[#allocation90_spill] sm:$0xff] %v4312_v47  ;;  %v4315_v53 = vcombine.high %v746_v23, %v750_v21  ;;  %v741_v62 = vld [vmem:[#allocation10 + $0x130] sm:$0xff]  ;;  %v738_v61 = vld [vmem:[#allocation10 + $0x118] sm:$0xff]  ;;  %6110 = vst [vmem:[#allocation92_spill] sm:$0xff] %v4320_v6  ;;  %v4324_v63 = vcombine.low %v746_v23, %v750_v21 }
  0xa7   :  { %1609 = vmatprep.subr.bf16.mxu1 %v4289_v54  ;;  %v737_v54 = vld [vmem:[#allocation10 + $0x110] sm:$0xff] }
  0xa8   :  { %1519 = vmatmul.mubr.bf16.vlgmr.msra.gmra.mxu0 %v6105_v31  ;;  %6109 = vst [vmem:[#allocation91_spill] sm:$0xff] %v4315_v53  ;;  %6111 = vst [vmem:[#allocation93_spill] sm:$0xff] %v4324_v63  ;;  %v4326_v5 = vcombine.high %v737_v54, %v741_v62  ;;  %v4332_v36 = vcombine.low %v737_v54, %v741_v62 }
  0xa9   :  { %1560 = vmatmul.mubr.bf16.vlgmr.msra.gmra.mxu1 %v6105_v31  ;;  %1569 = vmatpush1.bf16.msra.mxu0 %v4292_v20  ;;  %v742_v20 = vld [vmem:[#allocation10 + $0x138] sm:$0xff] }
  0xaa   :  { %1610 = vmatpush1.bf16.msra.mxu1 %v4296_v0  ;;  %1570 = vmatprep.subr.bf16.mxu0 %v4298_v15  ;;  %6112 = vst [vmem:[#allocation94_spill] sm:$0xff] %v4326_v5  ;;  %v4329_v7 = vcombine.high %v738_v61, %v742_v20  ;;  %v733_v15 = vld [vmem:[#allocation10 + $0xf0] sm:$0xff]  ;;  %v730_v0 = vld [vmem:[#allocation10 + $0xd8] sm:$0xff]  ;;  %6114 = vst [vmem:[#allocation96_spill] sm:$0xff] %v4332_v36  ;;  %v4336_v23 = vcombine.low %v738_v61, %v742_v20 }
  0xab   :  { %1611 = vmatprep.subr.bf16.mxu1 %v4301_v22  ;;  %1600 = vmatprep.mubr.bf16.mxu0 %v6105_v31  ;;  %v729_v22 = vld [vmem:[#allocation10 + $0xd0] sm:$0xff]  ;;  %v4341_v21 = vcombine.high %v730_v0, %v734_v60  ;;  %v4348_v61 = vcombine.low %v730_v0, %v734_v60 }
  0xac   :  { %1641 = vmatprep.mubr.bf16.mxu1 %v6105_v31  ;;  %6113 = vst [vmem:[#allocation95_spill] sm:$0xff] %v4329_v7  ;;  %6115 = vst [vmem:[#allocation97_spill] sm:$0xff] %v4336_v23  ;;  %v4338_v37 = vcombine.high %v729_v22, %v733_v15  ;;  %v4344_v62 = vcombine.low %v729_v22, %v733_v15 }
  0xad   :  { %1571 = vmatpush1.bf16.msra.mxu0 %v4306_v52  ;;  %6117 = vst [vmem:[#allocation99_spill] sm:$0xff] %v4341_v21  ;;  %v726_v52 = vld [vmem:[#allocation10 + $0xb8] sm:$0xff]  ;;  %6119 = vst [vmem:[#allocation101_spill] sm:$0xff] %v4348_v61 }
  0xae   :  { %1612 = vmatpush1.bf16.msra.mxu1 %v4310_v38  ;;  %1572 = vmatprep.subr.bf16.mxu0 %v4312_v47  ;;  %6116 = vst [vmem:[#allocation98_spill] sm:$0xff] %v4338_v37  ;;  %v725_v47 = vld [vmem:[#allocation10 + $0xb0] sm:$0xff]  ;;  %v722_v38 = vld [vmem:[#allocation10 + $0x98] sm:$0xff]  ;;  %6118 = vst [vmem:[#allocation100_spill] sm:$0xff] %v4344_v62 }
  0xaf   :  { %1613 = vmatprep.subr.bf16.mxu1 %v4315_v53  ;;  %v721_v53 = vld [vmem:[#allocation10 + $0x90] sm:$0xff]  ;;  %v4353_v20 = vcombine.high %v722_v38, %v726_v52  ;;  %v4360_v60 = vcombine.low %v722_v38, %v726_v52 }
  0xb0   :  { %v4350_v54 = vcombine.high %v721_v53, %v725_v47  ;;  %v4356_v15 = vcombine.low %v721_v53, %v725_v47 }
  0xb1   :  { %1573 = vmatpush1.bf16.msra.mxu0 %v4320_v6  ;;  %6121 = vst [vmem:[#allocation103_spill] sm:$0xff] %v4353_v20  ;;  %v718_v6 = vld [vmem:[#allocation10 + $0x78] sm:$0xff]  ;;  %6123 = vst [vmem:[#allocation105_spill] sm:$0xff] %v4360_v60 }
  0xb2   :  { %1614 = vmatpush1.bf16.msra.mxu1 %v4324_v63  ;;  %1574 = vmatprep.subr.bf16.mxu0 %v4326_v5  ;;  %6120 = vst [vmem:[#allocation102_spill] sm:$0xff] %v4350_v54  ;;  %v717_v5 = vld [vmem:[#allocation10 + $0x70] sm:$0xff]  ;;  %v714_v63 = vld [vmem:[#allocation10 + $0x58] sm:$0xff]  ;;  %6122 = vst [vmem:[#allocation104_spill] sm:$0xff] %v4356_v15 }
  0xb3   :  { %1615 = vmatprep.subr.bf16.mxu1 %v4329_v7  ;;  %v713_v7 = vld [vmem:[#allocation10 + $0x50] sm:$0xff]  ;;  %v4365_v22 = vcombine.high %v714_v63, %v718_v6  ;;  %v4372_v52 = vcombine.low %v714_v63, %v718_v6 }
  0xb4   :  { %v4362_v0 = vcombine.high %v713_v7, %v717_v5  ;;  %v4368_v47 = vcombine.low %v713_v7, %v717_v5 }
  0xb5   :  { %1575 = vmatpush1.bf16.msra.mxu0 %v4332_v36  ;;  %6125 = vst [vmem:[#allocation107_spill] sm:$0xff] %v4365_v22  ;;  %v710_v36 = vld [vmem:[#allocation10 + $0x38] sm:$0xff]  ;;  %6127 = vst [vmem:[#allocation109_spill] sm:$0xff] %v4372_v52 }
  0xb6   :  { %1616 = vmatpush1.bf16.msra.mxu1 %v4336_v23  ;;  %1576 = vmatprep.subr.bf16.mxu0 %v4338_v37  ;;  %6124 = vst [vmem:[#allocation106_spill] sm:$0xff] %v4362_v0  ;;  %v709_v37 = vld [vmem:[#allocation10 + $0x30] sm:$0xff]  ;;  %v706_v23 = vld [vmem:[#allocation10 + $0x18] sm:$0xff]  ;;  %6126 = vst [vmem:[#allocation108_spill] sm:$0xff] %v4368_v47 }
  0xb7   :  { %1617 = vmatprep.subr.bf16.mxu1 %v4341_v21  ;;  %v705_v21 = vld [vmem:[#allocation10 + $0x10] sm:$0xff]  ;;  %v4377_v53 = vcombine.high %v706_v23, %v710_v36  ;;  %v4384_v6 = vcombine.low %v706_v23, %v710_v36 }
  0xb8   :  { %v4374_v38 = vcombine.high %v705_v21, %v709_v37  ;;  %v4380_v5 = vcombine.low %v705_v21, %v709_v37 }
  0xb9   :  { %1577 = vmatpush1.bf16.msra.mxu0 %v4344_v62  ;;  %6129 = vst [vmem:[#allocation111_spill] sm:$0xff] %v4377_v53  ;;  %v830_v62 = vld [vmem:[#allocation10 + $0x3f8] sm:$0xff]  ;;  %6131 = vst [vmem:[#allocation113_spill] sm:$0xff] %v4384_v6 }
  0xba   :  { %1618 = vmatpush1.bf16.msra.mxu1 %v4348_v61  ;;  %1578 = vmatprep.subr.bf16.mxu0 %v4350_v54  ;;  %6128 = vst [vmem:[#allocation110_spill] sm:$0xff] %v4374_v38  ;;  %v829_v54 = vld [vmem:[#allocation10 + $0x3f0] sm:$0xff]  ;;  %v826_v61 = vld [vmem:[#allocation10 + $0x3d8] sm:$0xff]  ;;  %6130 = vst [vmem:[#allocation112_spill] sm:$0xff] %v4380_v5 }
  0xbb   :  { %1619 = vmatprep.subr.bf16.mxu1 %v4353_v20  ;;  %v825_v20 = vld [vmem:[#allocation10 + $0x3d0] sm:$0xff]  ;;  %v4389_v7 = vcombine.high %v826_v61, %v830_v62  ;;  %v4396_v36 = vcombine.low %v826_v61, %v830_v62 }
  0xbc   :  { %v4386_v63 = vcombine.high %v825_v20, %v829_v54  ;;  %v4392_v37 = vcombine.low %v825_v20, %v829_v54 }
  0xbd   :  { %1579 = vmatpush1.bf16.msra.mxu0 %v4356_v15  ;;  %6133 = vst [vmem:[#allocation115_spill] sm:$0xff] %v4389_v7  ;;  %v822_v15 = vld [vmem:[#allocation10 + $0x3b8] sm:$0xff]  ;;  %6135 = vst [vmem:[#allocation117_spill] sm:$0xff] %v4396_v36 }
  0xbe   :  { %1620 = vmatpush1.bf16.msra.mxu1 %v4360_v60  ;;  %1580 = vmatprep.subr.bf16.mxu0 %v4362_v0  ;;  %6132 = vst [vmem:[#allocation114_spill] sm:$0xff] %v4386_v63  ;;  %v821_v0 = vld [vmem:[#allocation10 + $0x3b0] sm:$0xff]  ;;  %v818_v60 = vld [vmem:[#allocation10 + $0x398] sm:$0xff]  ;;  %6134 = vst [vmem:[#allocation116_spill] sm:$0xff] %v4392_v37 }
  0xbf   :  { %1621 = vmatprep.subr.bf16.mxu1 %v4365_v22  ;;  %v817_v22 = vld [vmem:[#allocation10 + $0x390] sm:$0xff]  ;;  %v4401_v21 = vcombine.high %v818_v60, %v822_v15  ;;  %v4408_v62 = vcombine.low %v818_v60, %v822_v15 }
  0xc0   :  { %v4398_v23 = vcombine.high %v817_v22, %v821_v0  ;;  %v4404_v54 = vcombine.low %v817_v22, %v821_v0 }
  0xc1   :  { %1581 = vmatpush1.bf16.msra.mxu0 %v4368_v47  ;;  %6137 = vst [vmem:[#allocation119_spill] sm:$0xff] %v4401_v21  ;;  %v814_v47 = vld [vmem:[#allocation10 + $0x378] sm:$0xff]  ;;  %6139 = vst [vmem:[#allocation121_spill] sm:$0xff] %v4408_v62 }
  0xc2   :  { %1622 = vmatpush1.bf16.msra.mxu1 %v4372_v52  ;;  %1582 = vmatprep.subr.bf16.mxu0 %v4374_v38  ;;  %6136 = vst [vmem:[#allocation118_spill] sm:$0xff] %v4398_v23  ;;  %v813_v38 = vld [vmem:[#allocation10 + $0x370] sm:$0xff]  ;;  %v810_v52 = vld [vmem:[#allocation10 + $0x358] sm:$0xff]  ;;  %6138 = vst [vmem:[#allocation120_spill] sm:$0xff] %v4404_v54 }
  0xc3   :  { %1623 = vmatprep.subr.bf16.mxu1 %v4377_v53  ;;  %v809_v53 = vld [vmem:[#allocation10 + $0x350] sm:$0xff]  ;;  %v4413_v20 = vcombine.high %v810_v52, %v814_v47  ;;  %v4420_v15 = vcombine.low %v810_v52, %v814_v47 }
  0xc4   :  { %v4410_v61 = vcombine.high %v809_v53, %v813_v38  ;;  %v4416_v0 = vcombine.low %v809_v53, %v813_v38 }
  0xc5   :  { %1583 = vmatpush1.bf16.msra.mxu0 %v4380_v5  ;;  %6141 = vst [vmem:[#allocation123_spill] sm:$0xff] %v4413_v20  ;;  %v806_v5 = vld [vmem:[#allocation10 + $0x338] sm:$0xff]  ;;  %6143 = vst [vmem:[#allocation125_spill] sm:$0xff] %v4420_v15 }
  0xc6   :  { %1624 = vmatpush1.bf16.msra.mxu1 %v4384_v6  ;;  %1584 = vmatprep.subr.bf16.mxu0 %v4386_v63  ;;  %6140 = vst [vmem:[#allocation122_spill] sm:$0xff] %v4410_v61  ;;  %v805_v63 = vld [vmem:[#allocation10 + $0x330] sm:$0xff]  ;;  %v802_v6 = vld [vmem:[#allocation10 + $0x318] sm:$0xff]  ;;  %6142 = vst [vmem:[#allocation124_spill] sm:$0xff] %v4416_v0 }
  0xc7   :  { %1625 = vmatprep.subr.bf16.mxu1 %v4389_v7  ;;  %v801_v7 = vld [vmem:[#allocation10 + $0x310] sm:$0xff]  ;;  %v4425_v22 = vcombine.high %v802_v6, %v806_v5  ;;  %v4432_v47 = vcombine.low %v802_v6, %v806_v5 }
  0xc8   :  { %v4422_v60 = vcombine.high %v801_v7, %v805_v63  ;;  %v4428_v38 = vcombine.low %v801_v7, %v805_v63 }
  0xc9   :  { %1585 = vmatpush2.bf16.msra.mxu0 %v4392_v37  ;;  %6145 = vst [vmem:[#allocation127_spill] sm:$0xff] %v4425_v22  ;;  %v798_v37 = vld [vmem:[#allocation10 + $0x2f8] sm:$0xff]  ;;  %6147 = vst [vmem:[#allocation129_spill] sm:$0xff] %v4432_v47 }
  0xca   :  { %1626 = vmatpush2.bf16.msra.mxu1 %v4396_v36  ;;  %1586 = vmatprep.subr.bf16.mxu0 %v4398_v23  ;;  %6144 = vst [vmem:[#allocation126_spill] sm:$0xff] %v4422_v60  ;;  %v797_v23 = vld [vmem:[#allocation10 + $0x2f0] sm:$0xff]  ;;  %v794_v36 = vld [vmem:[#allocation10 + $0x2d8] sm:$0xff]  ;;  %6146 = vst [vmem:[#allocation128_spill] sm:$0xff] %v4428_v38 }
  0xcb   :  { %1627 = vmatprep.subr.bf16.mxu1 %v4401_v21  ;;  %v793_v21 = vld [vmem:[#allocation10 + $0x2d0] sm:$0xff]  ;;  %v4437_v53 = vcombine.high %v794_v36, %v798_v37  ;;  %v4444_v5 = vcombine.low %v794_v36, %v798_v37 }
  0xcc   :  { %v4434_v52 = vcombine.high %v793_v21, %v797_v23  ;;  %v4440_v63 = vcombine.low %v793_v21, %v797_v23 }
  0xcd   :  { %1587 = vmatpush2.bf16.msra.mxu0 %v4404_v54  ;;  %6149 = vst [vmem:[#allocation131_spill] sm:$0xff] %v4437_v53  ;;  %v790_v54 = vld [vmem:[#allocation10 + $0x2b8] sm:$0xff]  ;;  %6151 = vst [vmem:[#allocation133_spill] sm:$0xff] %v4444_v5 }
  0xce   :  { %1628 = vmatpush2.bf16.msra.mxu1 %v4408_v62  ;;  %1588 = vmatprep.subr.bf16.mxu0 %v4410_v61  ;;  %6148 = vst [vmem:[#allocation130_spill] sm:$0xff] %v4434_v52  ;;  %v789_v61 = vld [vmem:[#allocation10 + $0x2b0] sm:$0xff]  ;;  %v786_v62 = vld [vmem:[#allocation10 + $0x298] sm:$0xff]  ;;  %6150 = vst [vmem:[#allocation132_spill] sm:$0xff] %v4440_v63 }
  0xcf   :  { %1629 = vmatprep.subr.bf16.mxu1 %v4413_v20  ;;  %v785_v20 = vld [vmem:[#allocation10 + $0x290] sm:$0xff]  ;;  %v4449_v7 = vcombine.high %v786_v62, %v790_v54  ;;  %v4456_v37 = vcombine.low %v786_v62, %v790_v54 }
  0xd0   :  { %v4446_v6 = vcombine.high %v785_v20, %v789_v61  ;;  %v4452_v23 = vcombine.low %v785_v20, %v789_v61 }
  0xd1   :  { %1589 = vmatpush2.bf16.msra.mxu0 %v4416_v0  ;;  %6153 = vst [vmem:[#allocation135_spill] sm:$0xff] %v4449_v7  ;;  %v782_v0 = vld [vmem:[#allocation10 + $0x278] sm:$0xff]  ;;  %6155 = vst [vmem:[#allocation137_spill] sm:$0xff] %v4456_v37 }
  0xd2   :  { %1630 = vmatpush2.bf16.msra.mxu1 %v4420_v15  ;;  %1590 = vmatprep.subr.bf16.mxu0 %v4422_v60  ;;  %6152 = vst [vmem:[#allocation134_spill] sm:$0xff] %v4446_v6  ;;  %v781_v60 = vld [vmem:[#allocation10 + $0x270] sm:$0xff]  ;;  %v778_v15 = vld [vmem:[#allocation10 + $0x258] sm:$0xff]  ;;  %6154 = vst [vmem:[#allocation136_spill] sm:$0xff] %v4452_v23 }
  0xd3   :  { %1631 = vmatprep.subr.bf16.mxu1 %v4425_v22  ;;  %v777_v22 = vld [vmem:[#allocation10 + $0x250] sm:$0xff]  ;;  %v4461_v21 = vcombine.high %v778_v15, %v782_v0  ;;  %v4468_v54 = vcombine.low %v778_v15, %v782_v0 }
  0xd4   :  { %v4458_v36 = vcombine.high %v777_v22, %v781_v60  ;;  %v4464_v61 = vcombine.low %v777_v22, %v781_v60 }
  0xd5   :  { %1591 = vmatpush2.bf16.msra.mxu0 %v4428_v38  ;;  %6157 = vst [vmem:[#allocation139_spill] sm:$0xff] %v4461_v21  ;;  %v774_v38 = vld [vmem:[#allocation10 + $0x238] sm:$0xff]  ;;  %6159 = vst [vmem:[#allocation141_spill] sm:$0xff] %v4468_v54 }
  0xd6   :  { %1632 = vmatpush2.bf16.msra.mxu1 %v4432_v47  ;;  %1592 = vmatprep.subr.bf16.mxu0 %v4434_v52  ;;  %6156 = vst [vmem:[#allocation138_spill] sm:$0xff] %v4458_v36  ;;  %v773_v52 = vld [vmem:[#allocation10 + $0x230] sm:$0xff]  ;;  %v770_v47 = vld [vmem:[#allocation10 + $0x218] sm:$0xff]  ;;  %6158 = vst [vmem:[#allocation140_spill] sm:$0xff] %v4464_v61 }
  0xd7   :  { %1633 = vmatprep.subr.bf16.mxu1 %v4437_v53  ;;  %v769_v53 = vld [vmem:[#allocation10 + $0x210] sm:$0xff]  ;;  %v4473_v20 = vcombine.high %v770_v47, %v774_v38  ;;  %v4480_v60 = vcombine.low %v770_v47, %v774_v38  ;;  %v4525_v38 = vld [vmem:[#allocation11] sm:$0xff] }
  0xd8   :  { %v4470_v62 = vcombine.high %v769_v53, %v773_v52 }
  0xd9   :  { %1593 = vmatpush2.bf16.msra.mxu0 %v4440_v63  ;;  %6161 = vst [vmem:[#allocation143_spill] sm:$0xff] %v4473_v20  ;;  %6163 = vst [vmem:[#allocation145_spill] sm:$0xff] %v4480_v60 }
  0xda   :  { %1634 = vmatpush2.bf16.msra.mxu1 %v4444_v5  ;;  %1594 = vmatprep.subr.bf16.mxu0 %v4446_v6  ;;  %6160 = vst [vmem:[#allocation142_spill] sm:$0xff] %v4470_v62 }
  0xdb   :  { %1635 = vmatprep.subr.bf16.mxu1 %v4449_v7  ;;  %v4476_v7 = vcombine.low %v769_v53, %v773_v52 }
  0xdd   :  { %1595 = vmatpush2.bf16.msra.mxu0 %v4452_v23  ;;  %6162 = vst [vmem:[#allocation144_spill] sm:$0xff] %v4476_v7 }
  0xde   :  { %1636 = vmatpush2.bf16.msra.mxu1 %v4456_v37  ;;  %1596 = vmatprep.subr.bf16.mxu0 %v4458_v36 }
  0xdf   :  { %1637 = vmatprep.subr.bf16.mxu1 %v4461_v21 }
  0xe1   :  { %1597 = vmatpush2.bf16.msra.mxu0 %v4464_v61 }
  0xe2   :  { %1638 = vmatpush2.bf16.msra.mxu1 %v4468_v54  ;;  %1598 = vmatprep.subr.bf16.mxu0 %v4470_v62 }
  0xe3   :  { %1639 = vmatprep.subr.bf16.mxu1 %v4473_v20 }
  0xe5   :  { %1599 = vmatpush2.bf16.msra.mxu0 %v4476_v7 }
  0xe6   :  { %1640 = vmatpush2.bf16.msra.mxu1 %v4480_v60  ;;  %1722 = vmatprep.subr.bf16.mxu0 %v4057_v8 }
  0xe7   :  { %1763 = vmatprep.subr.bf16.mxu1 %v4061_v10 }
  0xe8   :  { %1601 = vmatmul.mubr.bf16.vlgmr.msra.gmra.mxu0 %v6105_v31 }
  0xe9   :  { %1642 = vmatmul.mubr.bf16.vlgmr.msra.gmra.mxu1 %v6105_v31  ;;  %1723 = vmatpush1.bf16.msra.mxu0 %v4079_v16  ;;  %v114_v31 = vlaneseq }
  0xea   :  { %1764 = vmatpush1.bf16.msra.mxu1 %v4081_v17  ;;  %1724 = vmatprep.subr.bf16.mxu0 %v4083_v18 }
  0xeb   :  { %1765 = vmatprep.subr.bf16.mxu1 %v4085_v19  ;;  %v4516_v0 = vshrl.u32 %v114_v31, 7 }
  0xed   :  { %1725 = vmatpush1.bf16.msra.mxu0 %v4092_v24  ;;  %v124_v15 = vsub.s32 2, %v4516_v0  ;;  %v116_v22 = vsub.s32 0, %v4516_v0  ;;  %v128_v52 = vsub.s32 3, %v4516_v0  ;;  %v120_v53 = vsub.s32 1, %v4516_v0 }
  0xee   :  { %1766 = vmatpush1.bf16.msra.mxu1 %v4096_v25  ;;  %1726 = vmatprep.subr.bf16.mxu0 %v4098_v26 }
  0xef   :  { %1767 = vmatprep.subr.bf16.mxu1 %v4101_v27 }
  0xf1   :  { %1727 = vmatpush1.bf16.msra.mxu0 %v4106_v32 }
  0xf2   :  { %1768 = vmatpush1.bf16.msra.mxu1 %v4110_v33  ;;  %1728 = vmatprep.subr.bf16.mxu0 %v4112_v34 }
  0xf3   :  { %1769 = vmatprep.subr.bf16.mxu1 %v4115_v35 }
  0xf5   :  { %1729 = vmatpush1.bf16.msra.mxu0 %v4120_v40 }
  0xf6   :  { %1770 = vmatpush1.bf16.msra.mxu1 %v4126_v41  ;;  %1730 = vmatprep.subr.bf16.mxu0 %v4128_v42 }
  0xf7   :  { %1771 = vmatprep.subr.bf16.mxu1 %v4131_v43 }
  0xf9   :  { %1731 = vmatpush1.bf16.msra.mxu0 %v4136_v48 }
  0xfa   :  { %1772 = vmatpush1.bf16.msra.mxu1 %v4140_v49  ;;  %1732 = vmatprep.subr.bf16.mxu0 %v4142_v50 }
  0xfb   :  { %1773 = vmatprep.subr.bf16.mxu1 %v4145_v51 }
  0xfd   :  { %1733 = vmatpush1.bf16.msra.mxu0 %v4150_v56 }
  0xfe   :  { %1774 = vmatpush1.bf16.msra.mxu1 %v4156_v57  ;;  %1734 = vmatprep.subr.bf16.mxu0 %v4158_v58 }
  0xff   :  { %1775 = vmatprep.subr.bf16.mxu1 %v4161_v59 }
 0x101   :  { %1735 = vmatpush1.bf16.msra.mxu0 %v4166_v1 }
 0x102   :  { %1776 = vmatpush1.bf16.msra.mxu1 %v4170_v2  ;;  %1736 = vmatprep.subr.bf16.mxu0 %v4172_v3  ;;  %v4548_v3 = vrot.slane %v4525_v38, %v128_v52 }
 0x103   :  { %1777 = vmatprep.subr.bf16.mxu1 %v4175_v4 }
 0x105   :  { %1737 = vmatpush1.bf16.msra.mxu0 %v4180_v9 }
 0x106   :  { %1778 = vmatpush1.bf16.msra.mxu1 %v4186_v12  ;;  %1738 = vmatprep.subr.bf16.mxu0 %v4188_v13  ;;  %v4537_v13 = vrot.slane %v4525_v38, %v124_v15 }
 0x107   :  { %1779 = vmatprep.subr.bf16.mxu1 %v4191_v14  ;;  %v4542_v14 = vrot.slane %v4525_v38, %v116_v22 }
 0x108   :  { %v4527_v47 = vpop.f32.mrf.mxu0  ;;  %v4531_v31 = vpop.f32.mrf.mxu1 }
 0x109   :  { %1739 = vmatpush2.bf16.msra.mxu0 %v4196_v11  ;;  %v4551_v11 = vrot.slane %v4525_v38, %v120_v53 }
 0x10a   :  { %v4534_v9 = vpop.f32.mrf.mxu0  ;;  %1780 = vmatpush2.bf16.msra.mxu1 %v4200_v28  ;;  %1740 = vmatprep.subr.bf16.mxu0 %v4202_v29  ;;  %v4544_v12 = vpop.f32.mrf.mxu1 }
 0x10b   :  { %1781 = vmatprep.subr.bf16.mxu1 %v4205_v30 }
 0x10c   :  { %v385_v4 = vpop.f32.mrf.mxu0  ;;  %v458_v28 = vpop.f32.mrf.mxu1 }
 0x10d   :  { %v4554_v15 = vadd.f32 %v385_v4, %v4542_v14  ;;  %1741 = vmatpush2.bf16.msra.mxu0 %v4208_v39  ;;  %v4558_v22 = vadd.f32 %v458_v28, %v4537_v13 }
 0x10e   :  { %v387_v29 = vpop.f32.mrf.mxu0  ;;  %1782 = vmatpush2.bf16.msra.mxu1 %v4212_v44  ;;  %1742 = vmatprep.subr.bf16.mxu0 %v4214_v45  ;;  %v460_v30 = vpop.f32.mrf.mxu1  ;;  %v6170_v45 = vld [vmem:[#allocation61_spill] sm:$0xff] }
 0x10f   :  { %6164 = vst [vmem:[#allocation146_spill] sm:$0xff] %v4554_v15  ;;  %6165 = vst [vmem:[#allocation147_spill] sm:$0xff] %v4558_v22  ;;  %v4563_v52 = vadd.f32 %v387_v29, %v4551_v11  ;;  %1783 = vmatprep.subr.bf16.mxu1 %v4217_v46  ;;  %v4567_v4 = vadd.f32 %v460_v30, %v4548_v3  ;;  %v6171_v29 = vld [vmem:[#allocation62_spill] sm:$0xff]  ;;  %v6173_v30 = vld [vmem:[#allocation63_spill] sm:$0xff] }
 0x110   :  { %v391_v53 = vpop.f32.mrf.mxu0 }
 0x111   :  { %6166 = vst [vmem:[#allocation148_spill] sm:$0xff] %v4563_v52  ;;  %6167 = vst [vmem:[#allocation149_spill] sm:$0xff] %v4567_v4  ;;  %v4570_v15 = vadd.f32 %v391_v53, %v4542_v14  ;;  %v464_v39 = vpop.f32.mrf.mxu1  ;;  %1743 = vmatpush2.bf16.msra.mxu0 %v4220_v55 }
 0x112   :  { %v393_v28 = vpop.f32.mrf.mxu0  ;;  %v4574_v22 = vadd.f32 %v464_v39, %v4537_v13  ;;  %1784 = vmatpush2.bf16.msra.mxu1 %v6170_v45  ;;  %1744 = vmatprep.subr.bf16.mxu0 %v6171_v29  ;;  %v6176_v39 = vld [vmem:[#allocation64_spill] sm:$0xff]  ;;  %v6178_v29 = vld [vmem:[#allocation65_spill] sm:$0xff] }
 0x113   :  { %6168 = vst [vmem:[#allocation150_spill] sm:$0xff] %v4570_v15  ;;  %v4579_v52 = vadd.f32 %v393_v28, %v4551_v11  ;;  %v466_v46 = vpop.f32.mrf.mxu1  ;;  %1785 = vmatprep.subr.bf16.mxu1 %v6173_v30  ;;  %v6179_v28 = vld [vmem:[#allocation66_spill] sm:$0xff] }
 0x114   :  { %6169 = vst [vmem:[#allocation151_spill] sm:$0xff] %v4574_v22  ;;  %v395_v4 = vpop.f32.mrf.mxu0  ;;  %v4583_v53 = vadd.f32 %v466_v46, %v4548_v3  ;;  %v6181_v46 = vld [vmem:[#allocation67_spill] sm:$0xff] }
 0x115   :  { %6172 = vst [vmem:[#allocation152_spill] sm:$0xff] %v4579_v52  ;;  %v4586_v15 = vadd.f32 %v395_v4, %v4542_v14  ;;  %v468_v55 = vpop.f32.mrf.mxu1  ;;  %1745 = vmatpush2.bf16.msra.mxu0 %v6176_v39 }
 0x116   :  { %6174 = vst [vmem:[#allocation153_spill] sm:$0xff] %v4583_v53  ;;  %v397_v22 = vpop.f32.mrf.mxu0  ;;  %v4590_v45 = vadd.f32 %v468_v55, %v4537_v13  ;;  %1786 = vmatpush2.bf16.msra.mxu1 %v6178_v29  ;;  %1746 = vmatprep.subr.bf16.mxu0 %v6179_v28  ;;  %v6184_v55 = vld [vmem:[#allocation68_spill] sm:$0xff]  ;;  %v6186_v28 = vld [vmem:[#allocation69_spill] sm:$0xff] }
 0x117   :  { %6175 = vst [vmem:[#allocation154_spill] sm:$0xff] %v4586_v15  ;;  %v4595_v52 = vadd.f32 %v397_v22, %v4551_v11  ;;  %v470_v30 = vpop.f32.mrf.mxu1  ;;  %1787 = vmatprep.subr.bf16.mxu1 %v6181_v46  ;;  %v6187_v22 = vld [vmem:[#allocation70_spill] sm:$0xff] }
 0x118   :  { %6177 = vst [vmem:[#allocation155_spill] sm:$0xff] %v4590_v45  ;;  %v401_v53 = vpop.f32.mrf.mxu0  ;;  %v4599_v4 = vadd.f32 %v470_v30, %v4548_v3  ;;  %v6189_v30 = vld [vmem:[#allocation71_spill] sm:$0xff] }
 0x119   :  { %6180 = vst [vmem:[#allocation156_spill] sm:$0xff] %v4595_v52  ;;  %v4602_v15 = vadd.f32 %v401_v53, %v4542_v14  ;;  %v474_v39 = vpop.f32.mrf.mxu1  ;;  %1747 = vmatpush2.bf16.msra.mxu0 %v6184_v55 }
 0x11a   :  { %6182 = vst [vmem:[#allocation157_spill] sm:$0xff] %v4599_v4  ;;  %v403_v45 = vpop.f32.mrf.mxu0  ;;  %v4606_v29 = vadd.f32 %v474_v39, %v4537_v13  ;;  %1788 = vmatpush2.bf16.msra.mxu1 %v6186_v28  ;;  %1748 = vmatprep.subr.bf16.mxu0 %v6187_v22  ;;  %v6192_v39 = vld [vmem:[#allocation72_spill] sm:$0xff]  ;;  %v6194_v22 = vld [vmem:[#allocation73_spill] sm:$0xff] }
 0x11b   :  { %6183 = vst [vmem:[#allocation158_spill] sm:$0xff] %v4602_v15  ;;  %v4611_v52 = vadd.f32 %v403_v45, %v4551_v11  ;;  %v476_v46 = vpop.f32.mrf.mxu1  ;;  %1789 = vmatprep.subr.bf16.mxu1 %v6189_v30  ;;  %v6195_v45 = vld [vmem:[#allocation74_spill] sm:$0xff] }
 0x11c   :  { %6185 = vst [vmem:[#allocation159_spill] sm:$0xff] %v4606_v29  ;;  %v405_v4 = vpop.f32.mrf.mxu0  ;;  %v4615_v53 = vadd.f32 %v476_v46, %v4548_v3  ;;  %v6197_v46 = vld [vmem:[#allocation75_spill] sm:$0xff] }
 0x11d   :  { %6188 = vst [vmem:[#allocation160_spill] sm:$0xff] %v4611_v52  ;;  %v4618_v15 = vadd.f32 %v405_v4, %v4542_v14  ;;  %v478_v55 = vpop.f32.mrf.mxu1  ;;  %1749 = vmatpush2.bf16.msra.mxu0 %v6192_v39  ;;  %v6200_v39 = vld [vmem:[#allocation76_spill] sm:$0xff] }
 0x11e   :  { %6190 = vst [vmem:[#allocation161_spill] sm:$0xff] %v4615_v53  ;;  %v407_v29 = vpop.f32.mrf.mxu0  ;;  %v4622_v28 = vadd.f32 %v478_v55, %v4537_v13  ;;  %1790 = vmatpush2.bf16.msra.mxu1 %v6194_v22  ;;  %1750 = vmatprep.subr.bf16.mxu0 %v6195_v45  ;;  %v132_v55 = vsub.s32 4, %v4516_v0 }
 0x11f   :  { %6191 = vst [vmem:[#allocation162_spill] sm:$0xff] %v4618_v15  ;;  %v4627_v52 = vadd.f32 %v407_v29, %v4551_v11  ;;  %v480_v30 = vpop.f32.mrf.mxu1  ;;  %1791 = vmatprep.subr.bf16.mxu1 %v6197_v46  ;;  %v140_v29 = vsub.s32 6, %v4516_v0  ;;  %v6203_v46 = vld [vmem:[#allocation78_spill] sm:$0xff] }
 0x120   :  { %6193 = vst [vmem:[#allocation163_spill] sm:$0xff] %v4622_v28  ;;  %v411_v53 = vpop.f32.mrf.mxu0  ;;  %v4631_v4 = vadd.f32 %v480_v30, %v4548_v3 }
 0x121   :  { %6196 = vst [vmem:[#allocation164_spill] sm:$0xff] %v4627_v52  ;;  %v4634_v15 = vadd.f32 %v411_v53, %v4542_v14  ;;  %v484_v28 = vpop.f32.mrf.mxu1  ;;  %1751 = vmatpush2.bf16.msra.mxu0 %v6200_v39  ;;  %v6202_v52 = vld [vmem:[#allocation77_spill] sm:$0xff]  ;;  %v136_v53 = vsub.s32 5, %v4516_v0 }
 0x122   :  { %6198 = vst [vmem:[#allocation165_spill] sm:$0xff] %v4631_v4  ;;  %v413_v22 = vpop.f32.mrf.mxu0  ;;  %v4639_v45 = vadd.f32 %v484_v28, %v4537_v13  ;;  %1792 = vmatpush2.bf16.msra.mxu1 %v6202_v52  ;;  %1752 = vmatprep.subr.bf16.mxu0 %v6203_v46  ;;  %v6205_v4 = vld [vmem:[#allocation79_spill] sm:$0xff]  ;;  %v144_v28 = vsub.s32 7, %v4516_v0  ;;  %v4657_v52 = vrot.slane %v4525_v38, %v132_v55 }
 0x123   :  { %6199 = vst [vmem:[#allocation166_spill] sm:$0xff] %v4634_v15  ;;  %v4645_v30 = vadd.f32 %v413_v22, %v4551_v11  ;;  %v486_v15 = vpop.f32.mrf.mxu1  ;;  %1793 = vmatprep.subr.bf16.mxu1 %v6205_v4  ;;  %v6208_v22 = vld [vmem:[#allocation80_spill] sm:$0xff]  ;;  %v4664_v4 = vrot.slane %v4525_v38, %v140_v29  ;;  %v4672_v0 = vrot.slane %v4525_v38, %v136_v53 }
 0x124   :  { %6201 = vst [vmem:[#allocation167_spill] sm:$0xff] %v4639_v45  ;;  %v415_v44 = vpop.f32.mrf.mxu0  ;;  %v4650_v39 = vadd.f32 %v486_v15, %v4548_v3  ;;  %v6210_v15 = vld [vmem:[#allocation81_spill] sm:$0xff]  ;;  %v4679_v29 = vrot.slane %v4525_v38, %v144_v28 }
 0x125   :  { %6204 = vst [vmem:[#allocation168_spill] sm:$0xff] %v4645_v30  ;;  %v4654_v45 = vadd.f32 %v415_v44, %v4542_v14  ;;  %v488_v46 = vpop.f32.mrf.mxu1  ;;  %1753 = vmatpush2.bf16.msra.mxu0 %v6208_v22 }
 0x126   :  { %6206 = vst [vmem:[#allocation169_spill] sm:$0xff] %v4650_v39  ;;  %v417_v30 = vpop.f32.mrf.mxu0  ;;  %v4661_v2 = vadd.f32 %v488_v46, %v4537_v13  ;;  %1794 = vmatpush2.bf16.msra.mxu1 %v6210_v15  ;;  %v6211_v39 = vld [vmem:[#allocation82_spill] sm:$0xff] }
 0x127   :  { %6207 = vst [vmem:[#allocation170_spill] sm:$0xff] %v4654_v45  ;;  %1804 = vmatprep.subr.bf16.mxu0 %v6211_v39  ;;  %v4669_v44 = vadd.f32 %v417_v30, %v4551_v11  ;;  %v490_v55 = vpop.f32.mrf.mxu1  ;;  %v6213_v45 = vld [vmem:[#allocation83_spill] sm:$0xff] }
 0x128   :  { %6209 = vst [vmem:[#allocation171_spill] sm:$0xff] %v4661_v2  ;;  %1845 = vmatprep.subr.bf16.mxu1 %v6213_v45  ;;  %v527_v22 = vpop.f32.mrf.mxu0  ;;  %v4676_v46 = vadd.f32 %v490_v55, %v4548_v3 }
 0x129   :  { %6212 = vst [vmem:[#allocation172_spill] sm:$0xff] %v4669_v44  ;;  %v4682_v2 = vadd.f32 %v527_v22, %v4657_v52  ;;  %v600_v39 = vpop.f32.mrf.mxu1 }
 0x12a   :  { %6214 = vst [vmem:[#allocation173_spill] sm:$0xff] %v4676_v46  ;;  %v529_v15 = vpop.f32.mrf.mxu0  ;;  %v4685_v30 = vadd.f32 %v600_v39, %v4664_v4 }
 0x12b   :  { %6215 = vst [vmem:[#allocation174_spill] sm:$0xff] %v4682_v2  ;;  %v4688_v53 = vadd.f32 %v529_v15, %v4672_v0  ;;  %v602_v44 = vpop.f32.mrf.mxu1 }
 0x12c   :  { %6216 = vst [vmem:[#allocation175_spill] sm:$0xff] %v4685_v30  ;;  %v531_v45 = vpop.f32.mrf.mxu0  ;;  %v4691_v1 = vadd.f32 %v602_v44, %v4679_v29 }
 0x12d   :  { %6217 = vst [vmem:[#allocation176_spill] sm:$0xff] %v4688_v53  ;;  %v4694_v55 = vadd.f32 %v531_v45, %v4657_v52  ;;  %v604_v38 = vpop.f32.mrf.mxu1 }
 0x12e   :  { %6218 = vst [vmem:[#allocation177_spill] sm:$0xff] %v4691_v1  ;;  %v533_v28 = vpop.f32.mrf.mxu0  ;;  %v4697_v22 = vadd.f32 %v604_v38, %v4664_v4 }
 0x12f   :  { %6219 = vst [vmem:[#allocation178_spill] sm:$0xff] %v4694_v55  ;;  %v4700_v2 = vadd.f32 %v533_v28, %v4672_v0  ;;  %v606_v39 = vpop.f32.mrf.mxu1 }
 0x130   :  { %6220 = vst [vmem:[#allocation179_spill] sm:$0xff] %v4697_v22  ;;  %v4703_v15 = vadd.f32 %v606_v39, %v4679_v29  ;;  %v537_v30 = vpop.f32.mrf.mxu0 }
 0x131   :  { %6221 = vst [vmem:[#allocation180_spill] sm:$0xff] %v4700_v2  ;;  %v4706_v53 = vadd.f32 %v537_v30, %v4657_v52  ;;  %v610_v44 = vpop.f32.mrf.mxu1 }
 0x132   :  { %6222 = vst [vmem:[#allocation181_spill] sm:$0xff] %v4703_v15  ;;  %v539_v1 = vpop.f32.mrf.mxu0  ;;  %v4709_v45 = vadd.f32 %v610_v44, %v4664_v4 }
 0x133   :  { %6223 = vst [vmem:[#allocation182_spill] sm:$0xff] %v4706_v53  ;;  %v4712_v46 = vadd.f32 %v539_v1, %v4672_v0  ;;  %v612_v38 = vpop.f32.mrf.mxu1 }
 0x134   :  { %6224 = vst [vmem:[#allocation183_spill] sm:$0xff] %v4709_v45  ;;  %v541_v22 = vpop.f32.mrf.mxu0  ;;  %v4715_v28 = vadd.f32 %v612_v38, %v4679_v29 }
 0x135   :  { %6225 = vst [vmem:[#allocation184_spill] sm:$0xff] %v4712_v46  ;;  %v4718_v39 = vadd.f32 %v541_v22, %v4657_v52  ;;  %v614_v15 = vpop.f32.mrf.mxu1 }
 0x136   :  { %6226 = vst [vmem:[#allocation185_spill] sm:$0xff] %v4715_v28  ;;  %v543_v2 = vpop.f32.mrf.mxu0  ;;  %v4721_v30 = vadd.f32 %v614_v15, %v4664_v4 }
 0x137   :  { %6227 = vst [vmem:[#allocation186_spill] sm:$0xff] %v4718_v39  ;;  %v4724_v55 = vadd.f32 %v543_v2, %v4672_v0  ;;  %v616_v44 = vpop.f32.mrf.mxu1 }
 0x138   :  { %6228 = vst [vmem:[#allocation187_spill] sm:$0xff] %v4721_v30  ;;  %v547_v45 = vpop.f32.mrf.mxu0  ;;  %v4727_v1 = vadd.f32 %v616_v44, %v4679_v29 }
 0x139   :  { %6229 = vst [vmem:[#allocation188_spill] sm:$0xff] %v4724_v55  ;;  %v4730_v46 = vadd.f32 %v547_v45, %v4657_v52  ;;  %v620_v38 = vpop.f32.mrf.mxu1 }
 0x13a   :  { %6230 = vst [vmem:[#allocation189_spill] sm:$0xff] %v4727_v1  ;;  %v549_v28 = vpop.f32.mrf.mxu0  ;;  %v4733_v22 = vadd.f32 %v620_v38, %v4664_v4 }
 0x13b   :  { %6231 = vst [vmem:[#allocation190_spill] sm:$0xff] %v4730_v46  ;;  %v4736_v53 = vadd.f32 %v549_v28, %v4672_v0  ;;  %v622_v15 = vpop.f32.mrf.mxu1 }
 0x13c   :  { %6232 = vst [vmem:[#allocation191_spill] sm:$0xff] %v4733_v22  ;;  %v551_v30 = vpop.f32.mrf.mxu0  ;;  %v4739_v2 = vadd.f32 %v622_v15, %v4679_v29 }
 0x13d   :  { %6233 = vst [vmem:[#allocation192_spill] sm:$0xff] %v4736_v53  ;;  %v4742_v55 = vadd.f32 %v551_v30, %v4657_v52  ;;  %v624_v44 = vpop.f32.mrf.mxu1 }
 0x13e   :  { %6234 = vst [vmem:[#allocation193_spill] sm:$0xff] %v4739_v2  ;;  %v553_v1 = vpop.f32.mrf.mxu0  ;;  %v4745_v45 = vadd.f32 %v624_v44, %v4664_v4 }
 0x13f   :  { %6235 = vst [vmem:[#allocation194_spill] sm:$0xff] %v4742_v55  ;;  %v4748_v39 = vadd.f32 %v553_v1, %v4672_v0  ;;  %v626_v38 = vpop.f32.mrf.mxu1 }
 0x140   :  { %6236 = vst [vmem:[#allocation195_spill] sm:$0xff] %v4745_v45  ;;  %v557_v22 = vpop.f32.mrf.mxu0  ;;  %v4751_v28 = vadd.f32 %v626_v38, %v4679_v29 }
 0x141   :  { %6237 = vst [vmem:[#allocation196_spill] sm:$0xff] %v4748_v39  ;;  %v4754_v53 = vadd.f32 %v557_v22, %v4657_v52  ;;  %v630_v15 = vpop.f32.mrf.mxu1  ;;  %v382_v22 = vadd.f32 %v4527_v47, %v4542_v14 }
 0x142   :  { %6238 = vst [vmem:[#allocation197_spill] sm:$0xff] %v4751_v28  ;;  %v559_v2 = vpop.f32.mrf.mxu0  ;;  %v4757_v30 = vadd.f32 %v630_v15, %v4664_v4  ;;  %v455_v28 = vadd.f32 %v4531_v31, %v4537_v13  ;;  %v384_v15 = vadd.f32 %v4534_v9, %v4551_v11 }
 0x143   :  { %6239 = vst [vmem:[#allocation198_spill] sm:$0xff] %v4754_v53  ;;  %v4760_v46 = vadd.f32 %v559_v2, %v4672_v0  ;;  %v632_v44 = vpop.f32.mrf.mxu1 }
 0x144   :  { %6240 = vst [vmem:[#allocation199_spill] sm:$0xff] %v4757_v30  ;;  %v4763_v1 = vadd.f32 %v632_v44, %v4679_v29  ;;  %v561_v39 = vpop.f32.mrf.mxu0  ;;  %v457_v44 = vadd.f32 %v4544_v12, %v4548_v3 }
 0x145   :  { %6241 = vst [vmem:[#allocation200_spill] sm:$0xff] %v4760_v46  ;;  %v634_v45 = vpop.f32.mrf.mxu1 }
 0x146   :  { %6242 = vst [vmem:[#allocation201_spill] sm:$0xff] %v4763_v1  ;;  %v563_v38 = vpop.f32.mrf.mxu0 }
 0x147   :  { %v636_v55 = vpop.f32.mrf.mxu1 }
 0x168   :  { %v1520_v53 = vpop.f32.mrf.mxu0 }
 0x169   :  { %v1650_v2 = vadd.f32 %v1520_v53, %v382_v22  ;;  %v1561_v30 = vpop.f32.mrf.mxu1 }
 0x16a   :  { %v1652_v1 = vadd.f32 %v1561_v30, %v455_v28  ;;  %v1522_v46 = vpop.f32.mrf.mxu0 }
 0x16b   :  { %v3558_v59 = vmul.f32 -1.442695, %v1650_v2  ;;  %v1651_v58 = vadd.f32 %v1522_v46, %v384_v15  ;;  %v1563_v57 = vpop.f32.mrf.mxu1 }
 0x16c   :  { %v1653_v56 = vadd.f32 %v1563_v57, %v457_v44  ;;  %v1524_v51 = vpop.f32.mrf.mxu0 }
 0x16d   :  { %3621 = vpow2.f32 %v3558_v59  ;;  %v3559_v14 = vmul.f32 -1.442695, %v1651_v58  ;;  %v1565_v47 = vpop.f32.mrf.mxu1  ;;  %v562_v51 = vadd.f32 %v561_v39, %v4657_v52  ;;  %v564_v59 = vadd.f32 %v563_v38, %v4672_v0 }
 0x16e   :  { %v1525_v13 = vpop.f32.mrf.mxu0  ;;  %v637_v52 = vadd.f32 %v636_v55, %v4679_v29  ;;  %v3560_v39 = vmul.f32 -1.442695, %v1652_v1 }
 0x16f   :  { %3623 = vpow2.f32 %v3559_v14  ;;  %v1566_v31 = vpop.f32.mrf.mxu1 }
 0x170   :  { %3625 = vtanh.f32 %v1653_v56 }
 0x17a   :  { %v3622_v50 = vpop.eup %3621 }
 0x17b   :  { %v1667_v9 = vadd.f32 1.0, %v3622_v50 }
 0x17c   :  { %v3624_v11 = vpop.eup %3623 }
 0x17d   :  { %3627 = vrcp.f32 %v1667_v9  ;;  %v1668_v53 = vadd.f32 1.0, %v3624_v11  ;;  %v3626_v3 = vpop.eup %3625  ;;  %v635_v11 = vadd.f32 %v634_v45, %v4664_v4 }
 0x17f   :  { %3629 = vrcp.f32 %v1668_v53 }
 0x18a   :  { %v3628_v12 = vpop.eup %3627 }
 0x18b   :  { %v1678_v28 = vmul.f32 %v3628_v12, %v3626_v3 }
 0x18c   :  { %v3630_v46 = vpop.eup %3629 }
 0x18d   :  { %v1677_v30 = vmul.f32 0.0, %v3630_v46 }
 0x18f   :  { %v4773_v57 = vadd.f32 %v1678_v28, %v1677_v30 }
 0x1a8   :  { %v1602_v58 = vpop.f32.mrf.mxu0 }
 0x1a9   :  { %v1654_v22 = vadd.f32 %v1602_v58, %v562_v51  ;;  %v1643_v15 = vpop.f32.mrf.mxu1 }
 0x1aa   :  { %v1604_v50 = vpop.f32.mrf.mxu0  ;;  %v1656_v53 = vadd.f32 %v1643_v15, %v635_v11  ;;  %v6245_v11 = vld [vmem:[#allocation86_spill] sm:$0xff] }
 0x1ab   :  { %v3561_v2 = vmul.f32 -1.442695, %v1654_v22  ;;  %v1655_v56 = vadd.f32 %v1604_v50, %v564_v59  ;;  %v1645_v44 = vpop.f32.mrf.mxu1 }
 0x1ac   :  { %v1606_v14 = vpop.f32.mrf.mxu0  ;;  %v3563_v0 = vmul.f32 -1.442695, %v1656_v53  ;;  %v1657_v38 = vadd.f32 %v1645_v44, %v637_v52  ;;  %v6246_v53 = vld [vmem:[#allocation87_spill] sm:$0xff]  ;;  %v6247_v52 = vld [vmem:[#allocation88_spill] sm:$0xff] }
 0x1ad   :  { %3631 = vpow2.f32 %v3561_v2  ;;  %v3562_v47 = vmul.f32 -1.442695, %v1655_v56  ;;  %v1647_v13 = vpop.f32.mrf.mxu1 }
 0x1ae   :  { %v1607_v31 = vpop.f32.mrf.mxu0 }
 0x1af   :  { %3633 = vpow2.f32 %v3562_v47  ;;  %v1648_v9 = vpop.f32.mrf.mxu1  ;;  %v6243_v31 = vld [vmem:[#allocation84_spill] sm:$0xff] }
 0x1b0   :  { %3635 = vpow2.f32 %v3560_v39  ;;  %v6244_v9 = vld [vmem:[#allocation85_spill] sm:$0xff] }
 0x1b1   :  { %3637 = vpow2.f32 %v3563_v0  ;;  %v6248_v39 = vld [vmem:[#allocation89_spill] sm:$0xff]  ;;  %v6249_v0 = vld [vmem:[#allocation90_spill] sm:$0xff] }
 0x1b2   :  { %3639 = vtanh.f32 %v1657_v38  ;;  %v6250_v38 = vld [vmem:[#allocation91_spill] sm:$0xff] }
 0x1ba   :  { %v3632_v3 = vpop.eup %3631 }
 0x1bb   :  { %v1691_v12 = vadd.f32 1.0, %v3632_v3  ;;  %v6251_v3 = vld [vmem:[#allocation92_spill] sm:$0xff] }
 0x1bc   :  { %v3634_v28 = vpop.eup %3633 }
 0x1bd   :  { %3641 = vrcp.f32 %v1691_v12  ;;  %v1692_v46 = vadd.f32 1.0, %v3634_v28  ;;  %v3636_v30 = vpop.eup %3635  ;;  %v6252_v12 = vld [vmem:[#allocation93_spill] sm:$0xff]  ;;  %v6253_v28 = vld [vmem:[#allocation94_spill] sm:$0xff] }
 0x1be   :  { %v3638_v51 = vpop.eup %3637  ;;  %v1669_v4 = vadd.f32 1.0, %v3636_v30  ;;  %v6255_v30 = vld [vmem:[#allocation96_spill] sm:$0xff] }
 0x1bf   :  { %3643 = vrcp.f32 %v1692_v46  ;;  %v3640_v58 = vpop.eup %3639  ;;  %v1693_v29 = vadd.f32 1.0, %v3638_v51  ;;  %v6254_v46 = vld [vmem:[#allocation95_spill] sm:$0xff]  ;;  %v6256_v51 = vld [vmem:[#allocation97_spill] sm:$0xff] }
 0x1c0   :  { %3645 = vtanh.f32 %v4773_v57 }
 0x1c1   :  { %3647 = vrcp.f32 %v1669_v4  ;;  %v6259_v4 = vld [vmem:[#allocation100_spill] sm:$0xff] }
 0x1c2   :  { %3649 = vrcp.f32 %v1693_v29  ;;  %v6262_v29 = vld [vmem:[#allocation103_spill] sm:$0xff] }
 0x1ca   :  { %v3642_v59 = vpop.eup %3641 }
 0x1cb   :  { %v1702_v45 = vmul.f32 %v3642_v59, %v3640_v58  ;;  %v6257_v58 = vld [vmem:[#allocation98_spill] sm:$0xff]  ;;  %v6258_v59 = vld [vmem:[#allocation99_spill] sm:$0xff] }
 0x1cc   :  { %v3644_v22 = vpop.eup %3643 }
 0x1cd   :  { %v1701_v55 = vmul.f32 0.0, %v3644_v22  ;;  %v3646_v15 = vpop.eup %3645  ;;  %v6261_v22 = vld [vmem:[#allocation102_spill] sm:$0xff] }
 0x1ce   :  { %v3648_v50 = vpop.eup %3647 }
 0x1cf   :  { %v4780_v1 = vadd.f32 %v1702_v45, %v1701_v55  ;;  %v3650_v2 = vpop.eup %3649  ;;  %v1681_v44 = vmul.f32 %v3648_v50, %v3646_v15  ;;  %v6260_v45 = vld [vmem:[#allocation101_spill] sm:$0xff]  ;;  %v6263_v55 = vld [vmem:[#allocation104_spill] sm:$0xff]  ;;  %v6265_v50 = vld [vmem:[#allocation106_spill] sm:$0xff] }
 0x1d0   :  { %v6264_v15 = vld [vmem:[#allocation105_spill] sm:$0xff] }
 0x1d1   :  { %3651 = vtanh.f32 %v4780_v1  ;;  %v4783_v13 = vpack.c.bf16 %v1681_v44, %v1681_v44  ;;  %v6268_v44 = vld [vmem:[#allocation109_spill] sm:$0xff] }
 0x1de   :  { %v3652_v56 = vpop.eup %3651 }
 0x1df   :  { %v1705_v14 = vmul.f32 %v3652_v56, %v3650_v2  ;;  %v6266_v2 = vld [vmem:[#allocation107_spill] sm:$0xff]  ;;  %v6267_v56 = vld [vmem:[#allocation108_spill] sm:$0xff] }
 0x1e1   :  { %v1721_v47 = vpack.c.bf16 %v1705_v14, %v1705_v14  ;;  %v6269_v14 = vld [vmem:[#allocation110_spill] sm:$0xff] }
 0x1e3   :  { %1754 = vmatprep.mubr.bf16.mxu0 %v1721_v47  ;;  %1795 = vmatprep.mubr.bf16.mxu1 %v1721_v47 }
 0x1e4   :  { %1755 = vmatmul.mubr.bf16.vlgmr.msra.gmra.mxu0 %v4783_v13  ;;  %1796 = vmatmul.mubr.bf16.vlgmr.msra.gmra.mxu1 %v4783_v13 }
 0x1e5   :  { %1805 = vmatpush1.bf16.msra.mxu0 %v6243_v31  ;;  %1846 = vmatpush1.bf16.msra.mxu1 %v6244_v9 }
 0x1e6   :  { %1836 = vmatprep.mubr.bf16.mxu0 %v1721_v47  ;;  %1877 = vmatprep.mubr.bf16.mxu1 %v1721_v47  ;;  %v6270_v47 = vld [vmem:[#allocation111_spill] sm:$0xff] }
 0x1e7   :  { %1806 = vmatprep.subr.bf16.mxu0 %v6245_v11  ;;  %1847 = vmatprep.subr.bf16.mxu1 %v6246_v53 }
 0x1e9   :  { %1807 = vmatpush1.bf16.msra.mxu0 %v6247_v52  ;;  %1848 = vmatpush1.bf16.msra.mxu1 %v6248_v39 }
 0x1ea   :  { %1808 = vmatprep.subr.bf16.mxu0 %v6249_v0  ;;  %1849 = vmatprep.subr.bf16.mxu1 %v6250_v38 }
 0x1ed   :  { %1809 = vmatpush1.bf16.msra.mxu0 %v6251_v3  ;;  %1850 = vmatpush1.bf16.msra.mxu1 %v6252_v12 }
 0x1ee   :  { %1810 = vmatprep.subr.bf16.mxu0 %v6253_v28  ;;  %1851 = vmatprep.subr.bf16.mxu1 %v6254_v46 }
 0x1f1   :  { %1811 = vmatpush1.bf16.msra.mxu0 %v6255_v30  ;;  %1852 = vmatpush1.bf16.msra.mxu1 %v6256_v51 }
 0x1f2   :  { %1812 = vmatprep.subr.bf16.mxu0 %v6257_v58  ;;  %1853 = vmatprep.subr.bf16.mxu1 %v6258_v59 }
 0x1f5   :  { %1813 = vmatpush1.bf16.msra.mxu0 %v6259_v4  ;;  %1854 = vmatpush1.bf16.msra.mxu1 %v6260_v45  ;;  %v6271_v45 = vld [vmem:[#allocation112_spill] sm:$0xff] }
 0x1f6   :  { %1814 = vmatprep.subr.bf16.mxu0 %v6261_v22  ;;  %1855 = vmatprep.subr.bf16.mxu1 %v6262_v29  ;;  %v6272_v22 = vld [vmem:[#allocation113_spill] sm:$0xff]  ;;  %v6273_v29 = vld [vmem:[#allocation114_spill] sm:$0xff] }
 0x1f9   :  { %1815 = vmatpush1.bf16.msra.mxu0 %v6263_v55  ;;  %1856 = vmatpush1.bf16.msra.mxu1 %v6264_v15  ;;  %v6274_v55 = vld [vmem:[#allocation115_spill] sm:$0xff]  ;;  %v6275_v15 = vld [vmem:[#allocation116_spill] sm:$0xff] }
 0x1fa   :  { %1816 = vmatprep.subr.bf16.mxu0 %v6265_v50  ;;  %1857 = vmatprep.subr.bf16.mxu1 %v6266_v2  ;;  %v6276_v50 = vld [vmem:[#allocation117_spill] sm:$0xff]  ;;  %v6277_v2 = vld [vmem:[#allocation118_spill] sm:$0xff] }
 0x1fd   :  { %1817 = vmatpush1.bf16.msra.mxu0 %v6267_v56  ;;  %1858 = vmatpush1.bf16.msra.mxu1 %v6268_v44  ;;  %v6278_v56 = vld [vmem:[#allocation119_spill] sm:$0xff]  ;;  %v6279_v44 = vld [vmem:[#allocation120_spill] sm:$0xff] }
 0x1fe   :  { %1818 = vmatprep.subr.bf16.mxu0 %v6269_v14  ;;  %1859 = vmatprep.subr.bf16.mxu1 %v6270_v47  ;;  %v6280_v14 = vld [vmem:[#allocation121_spill] sm:$0xff]  ;;  %v6281_v47 = vld [vmem:[#allocation122_spill] sm:$0xff] }
 0x201   :  { %1819 = vmatpush1.bf16.msra.mxu0 %v6271_v45  ;;  %1860 = vmatpush1.bf16.msra.mxu1 %v6272_v22  ;;  %v6282_v45 = vld [vmem:[#allocation123_spill] sm:$0xff]  ;;  %v6283_v22 = vld [vmem:[#allocation124_spill] sm:$0xff] }
 0x202   :  { %1820 = vmatprep.subr.bf16.mxu0 %v6273_v29  ;;  %1861 = vmatprep.subr.bf16.mxu1 %v6274_v55  ;;  %v6284_v29 = vld [vmem:[#allocation125_spill] sm:$0xff]  ;;  %v6285_v55 = vld [vmem:[#allocation126_spill] sm:$0xff] }
 0x205   :  { %1821 = vmatpush2.bf16.msra.mxu0 %v6275_v15  ;;  %1862 = vmatpush2.bf16.msra.mxu1 %v6276_v50  ;;  %v6286_v15 = vld [vmem:[#allocation127_spill] sm:$0xff]  ;;  %v6287_v50 = vld [vmem:[#allocation128_spill] sm:$0xff] }
 0x206   :  { %1822 = vmatprep.subr.bf16.mxu0 %v6277_v2  ;;  %1863 = vmatprep.subr.bf16.mxu1 %v6278_v56  ;;  %v6288_v2 = vld [vmem:[#allocation129_spill] sm:$0xff]  ;;  %v6289_v56 = vld [vmem:[#allocation130_spill] sm:$0xff] }
 0x209   :  { %1823 = vmatpush2.bf16.msra.mxu0 %v6279_v44  ;;  %1864 = vmatpush2.bf16.msra.mxu1 %v6280_v14  ;;  %v6290_v44 = vld [vmem:[#allocation131_spill] sm:$0xff] }
 0x20a   :  { %1824 = vmatprep.subr.bf16.mxu0 %v6281_v47  ;;  %1865 = vmatprep.subr.bf16.mxu1 %v6282_v45 }
 0x20d   :  { %1825 = vmatpush2.bf16.msra.mxu0 %v6283_v22  ;;  %1866 = vmatpush2.bf16.msra.mxu1 %v6284_v29  ;;  %v6291_v22 = vld [vmem:[#allocation135_spill] sm:$0xff] }
 0x20e   :  { %1826 = vmatprep.subr.bf16.mxu0 %v6285_v55  ;;  %1867 = vmatprep.subr.bf16.mxu1 %v6286_v15 }
 0x211   :  { %1827 = vmatpush2.bf16.msra.mxu0 %v6287_v50  ;;  %1868 = vmatpush2.bf16.msra.mxu1 %v6288_v2 }
 0x212   :  { %1828 = vmatprep.subr.bf16.mxu0 %v6289_v56  ;;  %1869 = vmatprep.subr.bf16.mxu1 %v6290_v44 }
 0x215   :  { %1829 = vmatpush2.bf16.msra.mxu0 %v4440_v63  ;;  %1870 = vmatpush2.bf16.msra.mxu1 %v4444_v5 }
 0x216   :  { %1830 = vmatprep.subr.bf16.mxu0 %v4446_v6  ;;  %1871 = vmatprep.subr.bf16.mxu1 %v6291_v22 }
 0x219   :  { %1831 = vmatpush2.bf16.msra.mxu0 %v4452_v23  ;;  %1872 = vmatpush2.bf16.msra.mxu1 %v4456_v37 }
 0x21a   :  { %1832 = vmatprep.subr.bf16.mxu0 %v4458_v36  ;;  %1873 = vmatprep.subr.bf16.mxu1 %v4461_v21 }
 0x21d   :  { %1833 = vmatpush2.bf16.msra.mxu0 %v4464_v61  ;;  %1874 = vmatpush2.bf16.msra.mxu1 %v4468_v54 }
 0x21e   :  { %1834 = vmatprep.subr.bf16.mxu0 %v4470_v62  ;;  %1875 = vmatprep.subr.bf16.mxu1 %v4473_v20 }
 0x221   :  { %1835 = vmatpush2.bf16.msra.mxu0 %v4476_v7  ;;  %1876 = vmatpush2.bf16.msra.mxu1 %v4480_v60 }
 0x222   :  { %1958 = vmatprep.subr.bf16.mxu0 %v4057_v8  ;;  %1999 = vmatprep.subr.bf16.mxu1 %v4061_v10 }
 0x224   :  { %1837 = vmatmul.mubr.bf16.vlgmr.msra.gmra.mxu0 %v4783_v13  ;;  %1878 = vmatmul.mubr.bf16.vlgmr.msra.gmra.mxu1 %v4783_v13  ;;  %v6292_v13 = vld [vmem:[#allocation38_spill] sm:$0xff] }
 0x225   :  { %1959 = vmatpush1.bf16.msra.mxu0 %v4079_v16  ;;  %2000 = vmatpush1.bf16.msra.mxu1 %v4081_v17 }
 0x226   :  { %1960 = vmatprep.subr.bf16.mxu0 %v4083_v18  ;;  %2001 = vmatprep.subr.bf16.mxu1 %v4085_v19 }
 0x229   :  { %1961 = vmatpush1.bf16.msra.mxu0 %v4092_v24  ;;  %2002 = vmatpush1.bf16.msra.mxu1 %v4096_v25 }
 0x22a   :  { %1962 = vmatprep.subr.bf16.mxu0 %v4098_v26  ;;  %2003 = vmatprep.subr.bf16.mxu1 %v4101_v27  ;;  %v6338_v27 = vld [vmem:[#allocation146_spill] sm:$0xff]  ;;  %v6339_v26 = vld [vmem:[#allocation147_spill] sm:$0xff] }
 0x22d   :  { %1963 = vmatpush1.bf16.msra.mxu0 %v4106_v32  ;;  %2004 = vmatpush1.bf16.msra.mxu1 %v4110_v33  ;;  %v6293_v32 = vld [vmem:[#allocation39_spill] sm:$0xff]  ;;  %v6294_v33 = vld [vmem:[#allocation40_spill] sm:$0xff] }
 0x22e   :  { %1964 = vmatprep.subr.bf16.mxu0 %v4112_v34  ;;  %2005 = vmatprep.subr.bf16.mxu1 %v4115_v35  ;;  %v6295_v34 = vld [vmem:[#allocation41_spill] sm:$0xff]  ;;  %v6296_v35 = vld [vmem:[#allocation42_spill] sm:$0xff] }
 0x231   :  { %1965 = vmatpush1.bf16.msra.mxu0 %v4120_v40  ;;  %2006 = vmatpush1.bf16.msra.mxu1 %v4126_v41  ;;  %v6297_v40 = vld [vmem:[#allocation43_spill] sm:$0xff]  ;;  %v6298_v41 = vld [vmem:[#allocation44_spill] sm:$0xff] }
 0x232   :  { %1966 = vmatprep.subr.bf16.mxu0 %v4128_v42  ;;  %2007 = vmatprep.subr.bf16.mxu1 %v4131_v43  ;;  %v6299_v42 = vld [vmem:[#allocation45_spill] sm:$0xff]  ;;  %v6300_v43 = vld [vmem:[#allocation46_spill] sm:$0xff] }
 0x235   :  { %1967 = vmatpush1.bf16.msra.mxu0 %v4136_v48  ;;  %2008 = vmatpush1.bf16.msra.mxu1 %v4140_v49  ;;  %v6301_v48 = vld [vmem:[#allocation47_spill] sm:$0xff]  ;;  %v6302_v49 = vld [vmem:[#allocation48_spill] sm:$0xff] }
 0x236   :  { %1968 = vmatprep.subr.bf16.mxu0 %v6292_v13  ;;  %2009 = vmatprep.subr.bf16.mxu1 %v6293_v32  ;;  %v6303_v13 = vld [vmem:[#allocation49_spill] sm:$0xff]  ;;  %v6304_v32 = vld [vmem:[#allocation50_spill] sm:$0xff] }
 0x239   :  { %1969 = vmatpush1.bf16.msra.mxu0 %v6294_v33  ;;  %2010 = vmatpush1.bf16.msra.mxu1 %v6295_v34  ;;  %v6305_v33 = vld [vmem:[#allocation51_spill] sm:$0xff]  ;;  %v6306_v34 = vld [vmem:[#allocation52_spill] sm:$0xff] }
 0x23a   :  { %1970 = vmatprep.subr.bf16.mxu0 %v6296_v35  ;;  %2011 = vmatprep.subr.bf16.mxu1 %v6297_v40  ;;  %v6307_v35 = vld [vmem:[#allocation53_spill] sm:$0xff]  ;;  %v6308_v40 = vld [vmem:[#allocation54_spill] sm:$0xff] }
 0x23d   :  { %1971 = vmatpush1.bf16.msra.mxu0 %v6298_v41  ;;  %2012 = vmatpush1.bf16.msra.mxu1 %v6299_v42  ;;  %v6309_v41 = vld [vmem:[#allocation55_spill] sm:$0xff]  ;;  %v6310_v42 = vld [vmem:[#allocation56_spill] sm:$0xff] }
 0x23e   :  { %1972 = vmatprep.subr.bf16.mxu0 %v6300_v43  ;;  %2013 = vmatprep.subr.bf16.mxu1 %v6301_v48  ;;  %v6311_v43 = vld [vmem:[#allocation57_spill] sm:$0xff]  ;;  %v6312_v48 = vld [vmem:[#allocation58_spill] sm:$0xff] }
 0x241   :  { %1973 = vmatpush1.bf16.msra.mxu0 %v6302_v49  ;;  %2014 = vmatpush1.bf16.msra.mxu1 %v6303_v13  ;;  %v6313_v49 = vld [vmem:[#allocation59_spill] sm:$0xff]  ;;  %v6314_v13 = vld [vmem:[#allocation60_spill] sm:$0xff] }
 0x242   :  { %1974 = vmatprep.subr.bf16.mxu0 %v6304_v32  ;;  %2015 = vmatprep.subr.bf16.mxu1 %v6305_v33  ;;  %v6315_v32 = vld [vmem:[#allocation61_spill] sm:$0xff]  ;;  %v6316_v33 = vld [vmem:[#allocation62_spill] sm:$0xff] }
 0x245   :  { %1975 = vmatpush2.bf16.msra.mxu0 %v6306_v34  ;;  %2016 = vmatpush2.bf16.msra.mxu1 %v6307_v35  ;;  %v6317_v34 = vld [vmem:[#allocation63_spill] sm:$0xff]  ;;  %v6318_v35 = vld [vmem:[#allocation64_spill] sm:$0xff] }
 0x246   :  { %1976 = vmatprep.subr.bf16.mxu0 %v6308_v40  ;;  %2017 = vmatprep.subr.bf16.mxu1 %v6309_v41  ;;  %v6319_v40 = vld [vmem:[#allocation65_spill] sm:$0xff]  ;;  %v6320_v41 = vld [vmem:[#allocation66_spill] sm:$0xff] }
 0x249   :  { %1977 = vmatpush2.bf16.msra.mxu0 %v6310_v42  ;;  %2018 = vmatpush2.bf16.msra.mxu1 %v6311_v43  ;;  %v6321_v42 = vld [vmem:[#allocation67_spill] sm:$0xff]  ;;  %v6322_v43 = vld [vmem:[#allocation68_spill] sm:$0xff] }
 0x24a   :  { %1978 = vmatprep.subr.bf16.mxu0 %v6312_v48  ;;  %2019 = vmatprep.subr.bf16.mxu1 %v6313_v49  ;;  %v6323_v48 = vld [vmem:[#allocation69_spill] sm:$0xff]  ;;  %v6324_v49 = vld [vmem:[#allocation70_spill] sm:$0xff] }
 0x24d   :  { %1979 = vmatpush2.bf16.msra.mxu0 %v6314_v13  ;;  %2020 = vmatpush2.bf16.msra.mxu1 %v6315_v32  ;;  %v6325_v13 = vld [vmem:[#allocation71_spill] sm:$0xff]  ;;  %v6326_v32 = vld [vmem:[#allocation72_spill] sm:$0xff] }
 0x24e   :  { %1980 = vmatprep.subr.bf16.mxu0 %v6316_v33  ;;  %2021 = vmatprep.subr.bf16.mxu1 %v6317_v34  ;;  %v6327_v33 = vld [vmem:[#allocation73_spill] sm:$0xff]  ;;  %v6328_v34 = vld [vmem:[#allocation74_spill] sm:$0xff] }
 0x251   :  { %1981 = vmatpush2.bf16.msra.mxu0 %v6318_v35  ;;  %2022 = vmatpush2.bf16.msra.mxu1 %v6319_v40  ;;  %v6329_v35 = vld [vmem:[#allocation75_spill] sm:$0xff]  ;;  %v6330_v40 = vld [vmem:[#allocation76_spill] sm:$0xff] }
 0x252   :  { %1982 = vmatprep.subr.bf16.mxu0 %v6320_v41  ;;  %2023 = vmatprep.subr.bf16.mxu1 %v6321_v42  ;;  %v6331_v41 = vld [vmem:[#allocation77_spill] sm:$0xff]  ;;  %v6332_v42 = vld [vmem:[#allocation78_spill] sm:$0xff] }
 0x255   :  { %1983 = vmatpush2.bf16.msra.mxu0 %v6322_v43  ;;  %2024 = vmatpush2.bf16.msra.mxu1 %v6323_v48  ;;  %v6333_v43 = vld [vmem:[#allocation79_spill] sm:$0xff]  ;;  %v6334_v48 = vld [vmem:[#allocation80_spill] sm:$0xff] }
 0x256   :  { %1984 = vmatprep.subr.bf16.mxu0 %v6324_v49  ;;  %2025 = vmatprep.subr.bf16.mxu1 %v6325_v13  ;;  %v6335_v49 = vld [vmem:[#allocation81_spill] sm:$0xff]  ;;  %v6336_v13 = vld [vmem:[#allocation82_spill] sm:$0xff] }
 0x259   :  { %1985 = vmatpush2.bf16.msra.mxu0 %v6326_v32  ;;  %2026 = vmatpush2.bf16.msra.mxu1 %v6327_v33  ;;  %v6337_v32 = vld [vmem:[#allocation83_spill] sm:$0xff] }
 0x25a   :  { %1986 = vmatprep.subr.bf16.mxu0 %v6328_v34  ;;  %2027 = vmatprep.subr.bf16.mxu1 %v6329_v35 }
 0x25d   :  { %1987 = vmatpush2.bf16.msra.mxu0 %v6330_v40  ;;  %2028 = vmatpush2.bf16.msra.mxu1 %v6331_v41 }
 0x25e   :  { %1988 = vmatprep.subr.bf16.mxu0 %v6332_v42  ;;  %2029 = vmatprep.subr.bf16.mxu1 %v6333_v43  ;;  %v6340_v42 = vld [vmem:[#allocation148_spill] sm:$0xff]  ;;  %v6341_v43 = vld [vmem:[#allocation149_spill] sm:$0xff] }
 0x261   :  { %1989 = vmatpush2.bf16.msra.mxu0 %v6334_v48  ;;  %2030 = vmatpush2.bf16.msra.mxu1 %v6335_v49 }
 0x262   :  { %2040 = vmatprep.subr.bf16.mxu0 %v6336_v13  ;;  %2081 = vmatprep.subr.bf16.mxu1 %v6337_v32 }
 0x2a4   :  { %v1756_v33 = vpop.f32.mrf.mxu0  ;;  %v1797_v34 = vpop.f32.mrf.mxu1 }
 0x2a5   :  { %v1886_v35 = vadd.f32 %v1756_v33, %v6338_v27  ;;  %v1888_v40 = vadd.f32 %v1797_v34, %v6339_v26 }
 0x2a6   :  { %v1758_v25 = vpop.f32.mrf.mxu0  ;;  %v1799_v41 = vpop.f32.mrf.mxu1 }
 0x2a7   :  { %v3564_v24 = vmul.f32 -1.442695, %v1886_v35  ;;  %v1887_v19 = vadd.f32 %v1758_v25, %v6340_v42  ;;  %v1889_v18 = vadd.f32 %v1799_v41, %v6341_v43 }
 0x2a8   :  { %v1760_v48 = vpop.f32.mrf.mxu0  ;;  %v1801_v17 = vpop.f32.mrf.mxu1 }
 0x2a9   :  { %3653 = vpow2.f32 %v3564_v24  ;;  %v3565_v49 = vmul.f32 -1.442695, %v1887_v19  ;;  %v6342_v24 = vld [vmem:[#allocation198_spill] sm:$0xff]  ;;  %v6343_v48 = vld [vmem:[#allocation200_spill] sm:$0xff] }
 0x2aa   :  { %v1761_v13 = vpop.f32.mrf.mxu0  ;;  %v1802_v16 = vpop.f32.mrf.mxu1 }
 0x2ab   :  { %3655 = vpow2.f32 %v3565_v49 }
 0x2ac   :  { %3657 = vtanh.f32 %v1889_v18 }
 0x2b6   :  { %v3654_v32 = vpop.eup %3653 }
 0x2b7   :  { %v1903_v10 = vadd.f32 1.0, %v3654_v32 }
 0x2b8   :  { %v3656_v8 = vpop.eup %3655 }
 0x2b9   :  { %3659 = vrcp.f32 %v1903_v10  ;;  %v1904_v26 = vadd.f32 1.0, %v3656_v8  ;;  %v3658_v27 = vpop.eup %3657 }
 0x2bb   :  { %3661 = vrcp.f32 %v1904_v26 }
 0x2c6   :  { %v3660_v33 = vpop.eup %3659 }
 0x2c7   :  { %v1914_v34 = vmul.f32 %v3660_v33, %v3658_v27  ;;  %v6344_v27 = vld [vmem:[#allocation199_spill] sm:$0xff]  ;;  %v3566_v33 = vmul.f32 -1.442695, %v1888_v40 }
 0x2c8   :  { %v3662_v25 = vpop.eup %3661 }
 0x2c9   :  { %v1913_v35 = vmul.f32 %v3662_v25, %v4773_v57  ;;  %v6345_v25 = vld [vmem:[#allocation201_spill] sm:$0xff] }
 0x2cb   :  { %v4922_v41 = vadd.f32 %v1914_v34, %v1913_v35 }
 0x2e4   :  { %v1838_v17 = vpop.f32.mrf.mxu0  ;;  %v1879_v19 = vpop.f32.mrf.mxu1 }
 0x2e5   :  { %v1890_v16 = vadd.f32 %v1838_v17, %v6342_v24  ;;  %v1892_v57 = vadd.f32 %v1879_v19, %v6344_v27 }
 0x2e6   :  { %v1840_v42 = vpop.f32.mrf.mxu0  ;;  %v1881_v43 = vpop.f32.mrf.mxu1 }
 0x2e7   :  { %v3567_v32 = vmul.f32 -1.442695, %v1890_v16  ;;  %v1891_v18 = vadd.f32 %v1840_v42, %v6343_v48  ;;  %v3569_v34 = vmul.f32 -1.442695, %v1892_v57  ;;  %v1893_v35 = vadd.f32 %v1881_v43, %v6345_v25 }
 0x2e8   :  { %v1842_v10 = vpop.f32.mrf.mxu0  ;;  %v1883_v8 = vpop.f32.mrf.mxu1 }
 0x2e9   :  { %3663 = vpow2.f32 %v3567_v32  ;;  %v3568_v49 = vmul.f32 -1.442695, %v1891_v18 }
 0x2ea   :  { %v1843_v13 = vpop.f32.mrf.mxu0  ;;  %v1884_v26 = vpop.f32.mrf.mxu1 }
 0x2eb   :  { %3665 = vpow2.f32 %v3568_v49 }
 0x2ec   :  { %3667 = vpow2.f32 %v3566_v33 }
 0x2ed   :  { %3669 = vpow2.f32 %v3569_v34 }
 0x2ee   :  { %3671 = vtanh.f32 %v1893_v35  ;;  %v6347_v35 = vld [vmem:[#allocation102_spill] sm:$0xff] }
 0x2f6   :  { %v3664_v60 = vpop.eup %3663 }
 0x2f7   :  { %v1927_v17 = vadd.f32 1.0, %v3664_v60 }
 0x2f8   :  { %v3666_v24 = vpop.eup %3665 }
 0x2f9   :  { %3673 = vrcp.f32 %v1927_v17  ;;  %v1928_v16 = vadd.f32 1.0, %v3666_v24  ;;  %v3668_v42 = vpop.eup %3667  ;;  %v6348_v17 = vld [vmem:[#allocation103_spill] sm:$0xff]  ;;  %v6349_v24 = vld [vmem:[#allocation104_spill] sm:$0xff] }
 0x2fa   :  { %v3670_v32 = vpop.eup %3669  ;;  %v1905_v10 = vadd.f32 1.0, %v3668_v42  ;;  %v6351_v42 = vld [vmem:[#allocation106_spill] sm:$0xff] }
 0x2fb   :  { %3675 = vrcp.f32 %v1928_v16  ;;  %v3672_v48 = vpop.eup %3671  ;;  %v1929_v40 = vadd.f32 1.0, %v3670_v32  ;;  %v6350_v16 = vld [vmem:[#allocation105_spill] sm:$0xff]  ;;  %v6352_v32 = vld [vmem:[#allocation107_spill] sm:$0xff] }
 0x2fc   :  { %3677 = vtanh.f32 %v4922_v41 }
 0x2fd   :  { %3679 = vrcp.f32 %v1905_v10  ;;  %v6355_v10 = vld [vmem:[#allocation110_spill] sm:$0xff] }
 0x2fe   :  { %3681 = vrcp.f32 %v1929_v40  ;;  %v6358_v40 = vld [vmem:[#allocation113_spill] sm:$0xff] }
 0x306   :  { %v3674_v18 = vpop.eup %3673 }
 0x307   :  { %v1938_v8 = vmul.f32 %v3674_v18, %v3672_v48  ;;  %v6353_v48 = vld [vmem:[#allocation108_spill] sm:$0xff]  ;;  %v6354_v18 = vld [vmem:[#allocation109_spill] sm:$0xff] }
 0x308   :  { %v3676_v19 = vpop.eup %3675 }
 0x309   :  { %v1937_v49 = vmul.f32 %v3676_v19, %v4780_v1  ;;  %v3678_v43 = vpop.eup %3677  ;;  %v6346_v1 = vld [vmem:[#allocation101_spill] sm:$0xff]  ;;  %v6357_v19 = vld [vmem:[#allocation112_spill] sm:$0xff] }
 0x30a   :  { %v3680_v13 = vpop.eup %3679 }
 0x30b   :  { %v4930_v60 = vadd.f32 %v1938_v8, %v1937_v49  ;;  %v3682_v26 = vpop.eup %3681  ;;  %v1917_v57 = vmul.f32 %v3680_v13, %v3678_v43  ;;  %v6356_v8 = vld [vmem:[#allocation111_spill] sm:$0xff]  ;;  %v6359_v49 = vld [vmem:[#allocation114_spill] sm:$0xff]  ;;  %v6361_v13 = vld [vmem:[#allocation116_spill] sm:$0xff] }
 0x30c   :  { %v6360_v43 = vld [vmem:[#allocation115_spill] sm:$0xff] }
 0x30d   :  { %3683 = vtanh.f32 %v4930_v60  ;;  %v4933_v25 = vpack.c.bf16 %v1917_v57, %v1917_v57  ;;  %v6364_v57 = vld [vmem:[#allocation119_spill] sm:$0xff] }
 0x31a   :  { %v3684_v27 = vpop.eup %3683 }
 0x31b   :  { %v1941_v33 = vmul.f32 %v3684_v27, %v3682_v26  ;;  %v6362_v26 = vld [vmem:[#allocation117_spill] sm:$0xff]  ;;  %v6363_v27 = vld [vmem:[#allocation118_spill] sm:$0xff] }
 0x31d   :  { %v1957_v34 = vpack.c.bf16 %v1941_v33, %v1941_v33  ;;  %v6365_v33 = vld [vmem:[#allocation120_spill] sm:$0xff] }
 0x31f   :  { %1990 = vmatprep.mubr.bf16.mxu0 %v1957_v34  ;;  %2031 = vmatprep.mubr.bf16.mxu1 %v1957_v34 }
 0x320   :  { %1991 = vmatmul.mubr.bf16.vlgmr.msra.gmra.mxu0 %v4933_v25  ;;  %2032 = vmatmul.mubr.bf16.vlgmr.msra.gmra.mxu1 %v4933_v25 }
 0x321   :  { %2041 = vmatpush1.bf16.msra.mxu0 %v6243_v31  ;;  %2082 = vmatpush1.bf16.msra.mxu1 %v6244_v9 }
 0x322   :  { %2072 = vmatprep.mubr.bf16.mxu0 %v1957_v34  ;;  %2113 = vmatprep.mubr.bf16.mxu1 %v1957_v34  ;;  %v6366_v34 = vld [vmem:[#allocation124_spill] sm:$0xff] }
 0x323   :  { %2042 = vmatprep.subr.bf16.mxu0 %v6245_v11  ;;  %2083 = vmatprep.subr.bf16.mxu1 %v6246_v53 }
 0x325   :  { %2043 = vmatpush1.bf16.msra.mxu0 %v6247_v52  ;;  %2084 = vmatpush1.bf16.msra.mxu1 %v6248_v39 }
 0x326   :  { %2044 = vmatprep.subr.bf16.mxu0 %v6249_v0  ;;  %2085 = vmatprep.subr.bf16.mxu1 %v6250_v38 }
 0x329   :  { %2045 = vmatpush1.bf16.msra.mxu0 %v6251_v3  ;;  %2086 = vmatpush1.bf16.msra.mxu1 %v6252_v12 }
 0x32a   :  { %2046 = vmatprep.subr.bf16.mxu0 %v6253_v28  ;;  %2087 = vmatprep.subr.bf16.mxu1 %v6254_v46 }
 0x32d   :  { %2047 = vmatpush1.bf16.msra.mxu0 %v6255_v30  ;;  %2088 = vmatpush1.bf16.msra.mxu1 %v6256_v51 }
 0x32e   :  { %2048 = vmatprep.subr.bf16.mxu0 %v6257_v58  ;;  %2089 = vmatprep.subr.bf16.mxu1 %v6258_v59 }
 0x331   :  { %2049 = vmatpush1.bf16.msra.mxu0 %v6259_v4  ;;  %2090 = vmatpush1.bf16.msra.mxu1 %v6346_v1 }
 0x332   :  { %2050 = vmatprep.subr.bf16.mxu0 %v6347_v35  ;;  %2091 = vmatprep.subr.bf16.mxu1 %v6348_v17 }
 0x335   :  { %2051 = vmatpush1.bf16.msra.mxu0 %v6349_v24  ;;  %2092 = vmatpush1.bf16.msra.mxu1 %v6350_v16 }
 0x336   :  { %2052 = vmatprep.subr.bf16.mxu0 %v6351_v42  ;;  %2093 = vmatprep.subr.bf16.mxu1 %v6352_v32 }
 0x339   :  { %2053 = vmatpush1.bf16.msra.mxu0 %v6353_v48  ;;  %2094 = vmatpush1.bf16.msra.mxu1 %v6354_v18 }
 0x33a   :  { %2054 = vmatprep.subr.bf16.mxu0 %v6355_v10  ;;  %2095 = vmatprep.subr.bf16.mxu1 %v6356_v8 }
 0x33d   :  { %2055 = vmatpush1.bf16.msra.mxu0 %v6357_v19  ;;  %2096 = vmatpush1.bf16.msra.mxu1 %v6358_v40 }
 0x33e   :  { %2056 = vmatprep.subr.bf16.mxu0 %v6359_v49  ;;  %2097 = vmatprep.subr.bf16.mxu1 %v6360_v43 }
 0x341   :  { %2057 = vmatpush2.bf16.msra.mxu0 %v6361_v13  ;;  %2098 = vmatpush2.bf16.msra.mxu1 %v6362_v26 }
 0x342   :  { %2058 = vmatprep.subr.bf16.mxu0 %v6363_v27  ;;  %2099 = vmatprep.subr.bf16.mxu1 %v6364_v57 }
 0x345   :  { %2059 = vmatpush2.bf16.msra.mxu0 %v6365_v33  ;;  %2100 = vmatpush2.bf16.msra.mxu1 %v6280_v14 }
 0x346   :  { %2060 = vmatprep.subr.bf16.mxu0 %v6281_v47  ;;  %2101 = vmatprep.subr.bf16.mxu1 %v6282_v45 }
 0x349   :  { %2061 = vmatpush2.bf16.msra.mxu0 %v6366_v34  ;;  %2102 = vmatpush2.bf16.msra.mxu1 %v6284_v29 }
 0x34a   :  { %2062 = vmatprep.subr.bf16.mxu0 %v6285_v55  ;;  %2103 = vmatprep.subr.bf16.mxu1 %v6286_v15 }
 0x34d   :  { %2063 = vmatpush2.bf16.msra.mxu0 %v6287_v50  ;;  %2104 = vmatpush2.bf16.msra.mxu1 %v6288_v2 }
 0x34e   :  { %2064 = vmatprep.subr.bf16.mxu0 %v6289_v56  ;;  %2105 = vmatprep.subr.bf16.mxu1 %v6290_v44 }
 0x351   :  { %2065 = vmatpush2.bf16.msra.mxu0 %v4440_v63  ;;  %2106 = vmatpush2.bf16.msra.mxu1 %v4444_v5  ;;  %v6435_v5 = vld [vmem:[#allocation151_spill] sm:$0xff] }
 0x352   :  { %2066 = vmatprep.subr.bf16.mxu0 %v4446_v6  ;;  %2107 = vmatprep.subr.bf16.mxu1 %v6291_v22  ;;  %v6367_v6 = vld [vmem:[#allocation145_spill] sm:$0xff]  ;;  %v6368_v22 = vld [vmem:[#allocation18_spill] sm:$0xff] }
 0x355   :  { %2067 = vmatpush2.bf16.msra.mxu0 %v4452_v23  ;;  %2108 = vmatpush2.bf16.msra.mxu1 %v4456_v37  ;;  %v6369_v23 = vld [vmem:[#allocation19_spill] sm:$0xff]  ;;  %v6434_v37 = vld [vmem:[#allocation150_spill] sm:$0xff] }
 0x356   :  { %2068 = vmatprep.subr.bf16.mxu0 %v4458_v36  ;;  %2109 = vmatprep.subr.bf16.mxu1 %v4461_v21  ;;  %v6370_v21 = vld [vmem:[#allocation20_spill] sm:$0xff]  ;;  %v6379_v36 = vld [vmem:[#allocation29_spill] sm:$0xff] }
 0x359   :  { %2069 = vmatpush2.bf16.msra.mxu0 %v4464_v61  ;;  %2110 = vmatpush2.bf16.msra.mxu1 %v4468_v54  ;;  %v6371_v61 = vld [vmem:[#allocation21_spill] sm:$0xff]  ;;  %v6372_v54 = vld [vmem:[#allocation22_spill] sm:$0xff] }
 0x35a   :  { %2070 = vmatprep.subr.bf16.mxu0 %v4470_v62  ;;  %2111 = vmatprep.subr.bf16.mxu1 %v4473_v20  ;;  %v6373_v62 = vld [vmem:[#allocation23_spill] sm:$0xff]  ;;  %v6374_v20 = vld [vmem:[#allocation24_spill] sm:$0xff] }
 0x35d   :  { %2071 = vmatpush2.bf16.msra.mxu0 %v4476_v7  ;;  %2112 = vmatpush2.bf16.msra.mxu1 %v6367_v6  ;;  %v6375_v7 = vld [vmem:[#allocation25_spill] sm:$0xff]  ;;  %v6376_v6 = vld [vmem:[#allocation26_spill] sm:$0xff] }
 0x35e   :  { %2194 = vmatprep.subr.bf16.mxu0 %v6368_v22  ;;  %2235 = vmatprep.subr.bf16.mxu1 %v6369_v23  ;;  %v6377_v22 = vld [vmem:[#allocation27_spill] sm:$0xff]  ;;  %v6378_v23 = vld [vmem:[#allocation28_spill] sm:$0xff] }
 0x360   :  { %2073 = vmatmul.mubr.bf16.vlgmr.msra.gmra.mxu0 %v4933_v25  ;;  %2114 = vmatmul.mubr.bf16.vlgmr.msra.gmra.mxu1 %v4933_v25  ;;  %v6380_v25 = vld [vmem:[#allocation30_spill] sm:$0xff] }
 0x361   :  { %2195 = vmatpush1.bf16.msra.mxu0 %v6370_v21  ;;  %2236 = vmatpush1.bf16.msra.mxu1 %v6371_v61  ;;  %v6381_v21 = vld [vmem:[#allocation31_spill] sm:$0xff]  ;;  %v6382_v61 = vld [vmem:[#allocation32_spill] sm:$0xff] }
 0x362   :  { %2196 = vmatprep.subr.bf16.mxu0 %v6372_v54  ;;  %2237 = vmatprep.subr.bf16.mxu1 %v6373_v62  ;;  %v6383_v54 = vld [vmem:[#allocation33_spill] sm:$0xff]  ;;  %v6384_v62 = vld [vmem:[#allocation34_spill] sm:$0xff] }
 0x365   :  { %2197 = vmatpush1.bf16.msra.mxu0 %v6374_v20  ;;  %2238 = vmatpush1.bf16.msra.mxu1 %v6375_v7  ;;  %v6385_v20 = vld [vmem:[#allocation35_spill] sm:$0xff]  ;;  %v6386_v7 = vld [vmem:[#allocation36_spill] sm:$0xff] }
 0x366   :  { %2198 = vmatprep.subr.bf16.mxu0 %v6376_v6  ;;  %2239 = vmatprep.subr.bf16.mxu1 %v6377_v22  ;;  %v6387_v6 = vld [vmem:[#allocation37_spill] sm:$0xff]  ;;  %v6388_v22 = vld [vmem:[#allocation38_spill] sm:$0xff] }
 0x369   :  { %2199 = vmatpush1.bf16.msra.mxu0 %v6378_v23  ;;  %2240 = vmatpush1.bf16.msra.mxu1 %v6379_v36  ;;  %v6389_v23 = vld [vmem:[#allocation39_spill] sm:$0xff]  ;;  %v6390_v36 = vld [vmem:[#allocation40_spill] sm:$0xff] }
 0x36a   :  { %2200 = vmatprep.subr.bf16.mxu0 %v6380_v25  ;;  %2241 = vmatprep.subr.bf16.mxu1 %v6381_v21  ;;  %v6391_v25 = vld [vmem:[#allocation41_spill] sm:$0xff]  ;;  %v6392_v21 = vld [vmem:[#allocation42_spill] sm:$0xff] }
 0x36d   :  { %2201 = vmatpush1.bf16.msra.mxu0 %v6382_v61  ;;  %2242 = vmatpush1.bf16.msra.mxu1 %v6383_v54  ;;  %v6393_v61 = vld [vmem:[#allocation43_spill] sm:$0xff]  ;;  %v6394_v54 = vld [vmem:[#allocation44_spill] sm:$0xff] }
 0x36e   :  { %2202 = vmatprep.subr.bf16.mxu0 %v6384_v62  ;;  %2243 = vmatprep.subr.bf16.mxu1 %v6385_v20  ;;  %v6395_v62 = vld [vmem:[#allocation45_spill] sm:$0xff]  ;;  %v6396_v20 = vld [vmem:[#allocation46_spill] sm:$0xff] }
 0x371   :  { %2203 = vmatpush1.bf16.msra.mxu0 %v6386_v7  ;;  %2244 = vmatpush1.bf16.msra.mxu1 %v6387_v6  ;;  %v6397_v7 = vld [vmem:[#allocation47_spill] sm:$0xff]  ;;  %v6398_v6 = vld [vmem:[#allocation48_spill] sm:$0xff] }
 0x372   :  { %2204 = vmatprep.subr.bf16.mxu0 %v6388_v22  ;;  %2245 = vmatprep.subr.bf16.mxu1 %v6389_v23  ;;  %v6399_v22 = vld [vmem:[#allocation49_spill] sm:$0xff]  ;;  %v6400_v23 = vld [vmem:[#allocation50_spill] sm:$0xff] }
 0x375   :  { %2205 = vmatpush1.bf16.msra.mxu0 %v6390_v36  ;;  %2246 = vmatpush1.bf16.msra.mxu1 %v6391_v25  ;;  %v6401_v36 = vld [vmem:[#allocation51_spill] sm:$0xff]  ;;  %v6402_v25 = vld [vmem:[#allocation52_spill] sm:$0xff] }
 0x376   :  { %2206 = vmatprep.subr.bf16.mxu0 %v6392_v21  ;;  %2247 = vmatprep.subr.bf16.mxu1 %v6393_v61  ;;  %v6403_v21 = vld [vmem:[#allocation53_spill] sm:$0xff]  ;;  %v6404_v61 = vld [vmem:[#allocation54_spill] sm:$0xff] }
 0x379   :  { %2207 = vmatpush1.bf16.msra.mxu0 %v6394_v54  ;;  %2248 = vmatpush1.bf16.msra.mxu1 %v6395_v62  ;;  %v6405_v54 = vld [vmem:[#allocation55_spill] sm:$0xff]  ;;  %v6406_v62 = vld [vmem:[#allocation56_spill] sm:$0xff] }
 0x37a   :  { %2208 = vmatprep.subr.bf16.mxu0 %v6396_v20  ;;  %2249 = vmatprep.subr.bf16.mxu1 %v6397_v7  ;;  %v6407_v20 = vld [vmem:[#allocation57_spill] sm:$0xff]  ;;  %v6408_v7 = vld [vmem:[#allocation58_spill] sm:$0xff] }
 0x37d   :  { %2209 = vmatpush1.bf16.msra.mxu0 %v6398_v6  ;;  %2250 = vmatpush1.bf16.msra.mxu1 %v6399_v22  ;;  %v6409_v6 = vld [vmem:[#allocation59_spill] sm:$0xff]  ;;  %v6410_v22 = vld [vmem:[#allocation60_spill] sm:$0xff] }
 0x37e   :  { %2210 = vmatprep.subr.bf16.mxu0 %v6400_v23  ;;  %2251 = vmatprep.subr.bf16.mxu1 %v6401_v36  ;;  %v6411_v23 = vld [vmem:[#allocation61_spill] sm:$0xff]  ;;  %v6412_v36 = vld [vmem:[#allocation62_spill] sm:$0xff] }
 0x381   :  { %2211 = vmatpush2.bf16.msra.mxu0 %v6402_v25  ;;  %2252 = vmatpush2.bf16.msra.mxu1 %v6403_v21  ;;  %v6413_v25 = vld [vmem:[#allocation63_spill] sm:$0xff]  ;;  %v6414_v21 = vld [vmem:[#allocation64_spill] sm:$0xff] }
 0x382   :  { %2212 = vmatprep.subr.bf16.mxu0 %v6404_v61  ;;  %2253 = vmatprep.subr.bf16.mxu1 %v6405_v54  ;;  %v6415_v61 = vld [vmem:[#allocation65_spill] sm:$0xff]  ;;  %v6416_v54 = vld [vmem:[#allocation66_spill] sm:$0xff] }
 0x385   :  { %2213 = vmatpush2.bf16.msra.mxu0 %v6406_v62  ;;  %2254 = vmatpush2.bf16.msra.mxu1 %v6407_v20  ;;  %v6417_v62 = vld [vmem:[#allocation67_spill] sm:$0xff]  ;;  %v6418_v20 = vld [vmem:[#allocation68_spill] sm:$0xff] }
 0x386   :  { %2214 = vmatprep.subr.bf16.mxu0 %v6408_v7  ;;  %2255 = vmatprep.subr.bf16.mxu1 %v6409_v6  ;;  %v6419_v7 = vld [vmem:[#allocation69_spill] sm:$0xff]  ;;  %v6420_v6 = vld [vmem:[#allocation70_spill] sm:$0xff] }
 0x389   :  { %2215 = vmatpush2.bf16.msra.mxu0 %v6410_v22  ;;  %2256 = vmatpush2.bf16.msra.mxu1 %v6411_v23  ;;  %v6421_v22 = vld [vmem:[#allocation71_spill] sm:$0xff]  ;;  %v6422_v23 = vld [vmem:[#allocation72_spill] sm:$0xff] }
 0x38a   :  { %2216 = vmatprep.subr.bf16.mxu0 %v6412_v36  ;;  %2257 = vmatprep.subr.bf16.mxu1 %v6413_v25  ;;  %v6423_v36 = vld [vmem:[#allocation73_spill] sm:$0xff]  ;;  %v6424_v25 = vld [vmem:[#allocation74_spill] sm:$0xff] }
 0x38d   :  { %2217 = vmatpush2.bf16.msra.mxu0 %v6414_v21  ;;  %2258 = vmatpush2.bf16.msra.mxu1 %v6415_v61  ;;  %v6425_v21 = vld [vmem:[#allocation75_spill] sm:$0xff]  ;;  %v6426_v61 = vld [vmem:[#allocation76_spill] sm:$0xff] }
 0x38e   :  { %2218 = vmatprep.subr.bf16.mxu0 %v6416_v54  ;;  %2259 = vmatprep.subr.bf16.mxu1 %v6417_v62  ;;  %v6427_v54 = vld [vmem:[#allocation77_spill] sm:$0xff]  ;;  %v6428_v62 = vld [vmem:[#allocation78_spill] sm:$0xff] }
 0x391   :  { %2219 = vmatpush2.bf16.msra.mxu0 %v6418_v20  ;;  %2260 = vmatpush2.bf16.msra.mxu1 %v6419_v7  ;;  %v6429_v20 = vld [vmem:[#allocation79_spill] sm:$0xff]  ;;  %v6430_v7 = vld [vmem:[#allocation80_spill] sm:$0xff] }
 0x392   :  { %2220 = vmatprep.subr.bf16.mxu0 %v6420_v6  ;;  %2261 = vmatprep.subr.bf16.mxu1 %v6421_v22  ;;  %v6431_v6 = vld [vmem:[#allocation81_spill] sm:$0xff]  ;;  %v6432_v22 = vld [vmem:[#allocation82_spill] sm:$0xff] }
 0x395   :  { %2221 = vmatpush2.bf16.msra.mxu0 %v6422_v23  ;;  %2262 = vmatpush2.bf16.msra.mxu1 %v6423_v36  ;;  %v6433_v23 = vld [vmem:[#allocation83_spill] sm:$0xff] }
 0x396   :  { %2222 = vmatprep.subr.bf16.mxu0 %v6424_v25  ;;  %2263 = vmatprep.subr.bf16.mxu1 %v6425_v21 }
 0x399   :  { %2223 = vmatpush2.bf16.msra.mxu0 %v6426_v61  ;;  %2264 = vmatpush2.bf16.msra.mxu1 %v6427_v54 }
 0x39a   :  { %2224 = vmatprep.subr.bf16.mxu0 %v6428_v62  ;;  %2265 = vmatprep.subr.bf16.mxu1 %v6429_v20  ;;  %v6436_v62 = vld [vmem:[#allocation152_spill] sm:$0xff]  ;;  %v6437_v20 = vld [vmem:[#allocation153_spill] sm:$0xff] }
 0x39d   :  { %2225 = vmatpush2.bf16.msra.mxu0 %v6430_v7  ;;  %2266 = vmatpush2.bf16.msra.mxu1 %v6431_v6 }
 0x39e   :  { %2276 = vmatprep.subr.bf16.mxu0 %v6432_v22  ;;  %2317 = vmatprep.subr.bf16.mxu1 %v6433_v23 }
 0x3e0   :  { %v1992_v36 = vpop.f32.mrf.mxu0  ;;  %v2033_v25 = vpop.f32.mrf.mxu1 }
 0x3e1   :  { %v2122_v21 = vadd.f32 %v1992_v36, %v6434_v37  ;;  %v2124_v61 = vadd.f32 %v2033_v25, %v6435_v5 }
 0x3e2   :  { %v1994_v63 = vpop.f32.mrf.mxu0  ;;  %v2035_v54 = vpop.f32.mrf.mxu1 }
 0x3e3   :  { %v3570_v44 = vmul.f32 -1.442695, %v2122_v21  ;;  %v2123_v56 = vadd.f32 %v1994_v63, %v6436_v62  ;;  %v2125_v2 = vadd.f32 %v2035_v54, %v6437_v20 }
 0x3e4   :  { %v1996_v7 = vpop.f32.mrf.mxu0  ;;  %v2037_v50 = vpop.f32.mrf.mxu1 }
 0x3e5   :  { %3685 = vpow2.f32 %v3570_v44  ;;  %v3571_v6 = vmul.f32 -1.442695, %v2123_v56  ;;  %v6439_v56 = vld [vmem:[#allocation196_spill] sm:$0xff] }
 0x3e6   :  { %v1997_v22 = vpop.f32.mrf.mxu0  ;;  %v2038_v15 = vpop.f32.mrf.mxu1 }
 0x3e7   :  { %3687 = vpow2.f32 %v3571_v6  ;;  %v6438_v22 = vld [vmem:[#allocation194_spill] sm:$0xff] }
 0x3e8   :  { %3689 = vtanh.f32 %v2125_v2 }
 0x3f2   :  { %v3686_v23 = vpop.eup %3685 }
 0x3f3   :  { %v2139_v55 = vadd.f32 1.0, %v3686_v23 }
 0x3f4   :  { %v3688_v29 = vpop.eup %3687 }
 0x3f5   :  { %3691 = vrcp.f32 %v2139_v55  ;;  %v2140_v5 = vadd.f32 1.0, %v3688_v29  ;;  %v3690_v37 = vpop.eup %3689 }
 0x3f7   :  { %3693 = vrcp.f32 %v2140_v5 }
 0x402   :  { %v3692_v36 = vpop.eup %3691 }
 0x403   :  { %v2150_v21 = vmul.f32 %v3692_v36, %v3690_v37  ;;  %v6440_v37 = vld [vmem:[#allocation195_spill] sm:$0xff]  ;;  %v3572_v36 = vmul.f32 -1.442695, %v2124_v61 }
 0x404   :  { %v3694_v63 = vpop.eup %3693 }
 0x405   :  { %v2149_v54 = vmul.f32 %v3694_v63, %v4922_v41  ;;  %v6441_v63 = vld [vmem:[#allocation197_spill] sm:$0xff] }
 0x407   :  { %v5072_v7 = vadd.f32 %v2150_v21, %v2149_v54 }
 0x420   :  { %v2074_v62 = vpop.f32.mrf.mxu0  ;;  %v2115_v20 = vpop.f32.mrf.mxu1 }
 0x421   :  { %v2126_v15 = vadd.f32 %v2074_v62, %v6438_v22  ;;  %v2128_v41 = vadd.f32 %v2115_v20, %v6440_v37 }
 0x422   :  { %v2076_v6 = vpop.f32.mrf.mxu0  ;;  %v2117_v50 = vpop.f32.mrf.mxu1 }
 0x423   :  { %v3573_v23 = vmul.f32 -1.442695, %v2126_v15  ;;  %v2127_v2 = vadd.f32 %v2076_v6, %v6439_v56  ;;  %v3575_v21 = vmul.f32 -1.442695, %v2128_v41  ;;  %v2129_v54 = vadd.f32 %v2117_v50, %v6441_v63 }
 0x424   :  { %v2078_v55 = vpop.f32.mrf.mxu0  ;;  %v2119_v29 = vpop.f32.mrf.mxu1 }
 0x425   :  { %3695 = vpow2.f32 %v3573_v23  ;;  %v3574_v44 = vmul.f32 -1.442695, %v2127_v2 }
 0x426   :  { %v2079_v25 = vpop.f32.mrf.mxu0  ;;  %v2120_v5 = vpop.f32.mrf.mxu1 }
 0x427   :  { %3697 = vpow2.f32 %v3574_v44 }
 0x428   :  { %3699 = vpow2.f32 %v3572_v36 }
 0x429   :  { %3701 = vpow2.f32 %v3575_v21 }
 0x42a   :  { %3703 = vtanh.f32 %v2129_v54  ;;  %v6443_v54 = vld [vmem:[#allocation125_spill] sm:$0xff] }
 0x432   :  { %v3696_v34 = vpop.eup %3695 }
 0x433   :  { %v2163_v62 = vadd.f32 1.0, %v3696_v34 }
 0x434   :  { %v3698_v22 = vpop.eup %3697 }
 0x435   :  { %3705 = vrcp.f32 %v2163_v62  ;;  %v2164_v15 = vadd.f32 1.0, %v3698_v22  ;;  %v3700_v6 = vpop.eup %3699  ;;  %v6444_v62 = vld [vmem:[#allocation126_spill] sm:$0xff]  ;;  %v6445_v22 = vld [vmem:[#allocation127_spill] sm:$0xff] }
 0x436   :  { %v3702_v23 = vpop.eup %3701  ;;  %v2141_v55 = vadd.f32 1.0, %v3700_v6  ;;  %v6447_v6 = vld [vmem:[#allocation129_spill] sm:$0xff] }
 0x437   :  { %3707 = vrcp.f32 %v2164_v15  ;;  %v3704_v56 = vpop.eup %3703  ;;  %v2165_v61 = vadd.f32 1.0, %v3702_v23  ;;  %v6446_v15 = vld [vmem:[#allocation128_spill] sm:$0xff]  ;;  %v6448_v23 = vld [vmem:[#allocation130_spill] sm:$0xff] }
 0x438   :  { %3709 = vtanh.f32 %v5072_v7 }
 0x439   :  { %3711 = vrcp.f32 %v2141_v55  ;;  %v6451_v55 = vld [vmem:[#allocation133_spill] sm:$0xff] }
 0x43a   :  { %3713 = vrcp.f32 %v2165_v61  ;;  %v6454_v61 = vld [vmem:[#allocation136_spill] sm:$0xff] }
 0x442   :  { %v3706_v2 = vpop.eup %3705 }
 0x443   :  { %v2174_v29 = vmul.f32 %v3706_v2, %v3704_v56  ;;  %v6449_v56 = vld [vmem:[#allocation131_spill] sm:$0xff]  ;;  %v6450_v2 = vld [vmem:[#allocation132_spill] sm:$0xff] }
 0x444   :  { %v3708_v20 = vpop.eup %3707 }
 0x445   :  { %v2173_v44 = vmul.f32 %v3708_v20, %v4930_v60  ;;  %v3710_v50 = vpop.eup %3709  ;;  %v6442_v60 = vld [vmem:[#allocation124_spill] sm:$0xff]  ;;  %v6453_v20 = vld [vmem:[#allocation135_spill] sm:$0xff] }
 0x446   :  { %v3712_v25 = vpop.eup %3711 }
 0x447   :  { %v5080_v34 = vadd.f32 %v2174_v29, %v2173_v44  ;;  %v3714_v5 = vpop.eup %3713  ;;  %v2153_v41 = vmul.f32 %v3712_v25, %v3710_v50  ;;  %v6452_v29 = vld [vmem:[#allocation134_spill] sm:$0xff]  ;;  %v6455_v44 = vld [vmem:[#allocation137_spill] sm:$0xff]  ;;  %v6457_v25 = vld [vmem:[#allocation139_spill] sm:$0xff] }
 0x448   :  { %v6456_v50 = vld [vmem:[#allocation138_spill] sm:$0xff] }
 0x449   :  { %3715 = vtanh.f32 %v5080_v34  ;;  %v5083_v63 = vpack.c.bf16 %v2153_v41, %v2153_v41  ;;  %v6460_v41 = vld [vmem:[#allocation142_spill] sm:$0xff] }
 0x456   :  { %v3716_v37 = vpop.eup %3715 }
 0x457   :  { %v2177_v36 = vmul.f32 %v3716_v37, %v3714_v5  ;;  %v6458_v5 = vld [vmem:[#allocation140_spill] sm:$0xff]  ;;  %v6459_v37 = vld [vmem:[#allocation141_spill] sm:$0xff] }
 0x459   :  { %v2193_v21 = vpack.c.bf16 %v2177_v36, %v2177_v36  ;;  %v6461_v36 = vld [vmem:[#allocation143_spill] sm:$0xff] }
 0x45b   :  { %2226 = vmatprep.mubr.bf16.mxu0 %v2193_v21  ;;  %2267 = vmatprep.mubr.bf16.mxu1 %v2193_v21 }
 0x45c   :  { %2227 = vmatmul.mubr.bf16.vlgmr.msra.gmra.mxu0 %v5083_v63  ;;  %2268 = vmatmul.mubr.bf16.vlgmr.msra.gmra.mxu1 %v5083_v63 }
 0x45d   :  { %2277 = vmatpush1.bf16.msra.mxu0 %v6243_v31  ;;  %2318 = vmatpush1.bf16.msra.mxu1 %v6244_v9 }
 0x45e   :  { %2308 = vmatprep.mubr.bf16.mxu0 %v2193_v21  ;;  %2349 = vmatprep.mubr.bf16.mxu1 %v2193_v21  ;;  %v6462_v21 = vld [vmem:[#allocation144_spill] sm:$0xff] }
 0x45f   :  { %2278 = vmatprep.subr.bf16.mxu0 %v6245_v11  ;;  %2319 = vmatprep.subr.bf16.mxu1 %v6246_v53 }
 0x461   :  { %2279 = vmatpush1.bf16.msra.mxu0 %v6247_v52  ;;  %2320 = vmatpush1.bf16.msra.mxu1 %v6248_v39 }
 0x462   :  { %2280 = vmatprep.subr.bf16.mxu0 %v6249_v0  ;;  %2321 = vmatprep.subr.bf16.mxu1 %v6250_v38 }
 0x465   :  { %2281 = vmatpush1.bf16.msra.mxu0 %v6251_v3  ;;  %2322 = vmatpush1.bf16.msra.mxu1 %v6252_v12 }
 0x466   :  { %2282 = vmatprep.subr.bf16.mxu0 %v6253_v28  ;;  %2323 = vmatprep.subr.bf16.mxu1 %v6254_v46 }
 0x469   :  { %2283 = vmatpush1.bf16.msra.mxu0 %v6255_v30  ;;  %2324 = vmatpush1.bf16.msra.mxu1 %v6256_v51 }
 0x46a   :  { %2284 = vmatprep.subr.bf16.mxu0 %v6257_v58  ;;  %2325 = vmatprep.subr.bf16.mxu1 %v6258_v59 }
 0x46d   :  { %2285 = vmatpush1.bf16.msra.mxu0 %v6259_v4  ;;  %2326 = vmatpush1.bf16.msra.mxu1 %v6346_v1 }
 0x46e   :  { %2286 = vmatprep.subr.bf16.mxu0 %v6347_v35  ;;  %2327 = vmatprep.subr.bf16.mxu1 %v6348_v17 }
 0x471   :  { %2287 = vmatpush1.bf16.msra.mxu0 %v6349_v24  ;;  %2328 = vmatpush1.bf16.msra.mxu1 %v6350_v16 }
 0x472   :  { %2288 = vmatprep.subr.bf16.mxu0 %v6351_v42  ;;  %2329 = vmatprep.subr.bf16.mxu1 %v6352_v32 }
 0x475   :  { %2289 = vmatpush1.bf16.msra.mxu0 %v6353_v48  ;;  %2330 = vmatpush1.bf16.msra.mxu1 %v6354_v18 }
 0x476   :  { %2290 = vmatprep.subr.bf16.mxu0 %v6355_v10  ;;  %2331 = vmatprep.subr.bf16.mxu1 %v6356_v8 }
 0x479   :  { %2291 = vmatpush1.bf16.msra.mxu0 %v6357_v19  ;;  %2332 = vmatpush1.bf16.msra.mxu1 %v6358_v40 }
 0x47a   :  { %2292 = vmatprep.subr.bf16.mxu0 %v6359_v49  ;;  %2333 = vmatprep.subr.bf16.mxu1 %v6360_v43 }
 0x47d   :  { %2293 = vmatpush2.bf16.msra.mxu0 %v6361_v13  ;;  %2334 = vmatpush2.bf16.msra.mxu1 %v6362_v26 }
 0x47e   :  { %2294 = vmatprep.subr.bf16.mxu0 %v6363_v27  ;;  %2335 = vmatprep.subr.bf16.mxu1 %v6364_v57 }
 0x481   :  { %2295 = vmatpush2.bf16.msra.mxu0 %v6365_v33  ;;  %2336 = vmatpush2.bf16.msra.mxu1 %v6280_v14 }
 0x482   :  { %2296 = vmatprep.subr.bf16.mxu0 %v6281_v47  ;;  %2337 = vmatprep.subr.bf16.mxu1 %v6282_v45 }
 0x485   :  { %2297 = vmatpush2.bf16.msra.mxu0 %v6442_v60  ;;  %2338 = vmatpush2.bf16.msra.mxu1 %v6443_v54 }
 0x486   :  { %2298 = vmatprep.subr.bf16.mxu0 %v6444_v62  ;;  %2339 = vmatprep.subr.bf16.mxu1 %v6445_v22 }
 0x489   :  { %2299 = vmatpush2.bf16.msra.mxu0 %v6446_v15  ;;  %2340 = vmatpush2.bf16.msra.mxu1 %v6447_v6 }
 0x48a   :  { %2300 = vmatprep.subr.bf16.mxu0 %v6448_v23  ;;  %2341 = vmatprep.subr.bf16.mxu1 %v6449_v56 }
 0x48d   :  { %2301 = vmatpush2.bf16.msra.mxu0 %v6450_v2  ;;  %2342 = vmatpush2.bf16.msra.mxu1 %v6451_v55  ;;  %v6531_v55 = vld [vmem:[#allocation155_spill] sm:$0xff] }
 0x48e   :  { %2302 = vmatprep.subr.bf16.mxu0 %v6452_v29  ;;  %2343 = vmatprep.subr.bf16.mxu1 %v6453_v20  ;;  %v6463_v29 = vld [vmem:[#allocation145_spill] sm:$0xff]  ;;  %v6464_v20 = vld [vmem:[#allocation18_spill] sm:$0xff] }
 0x491   :  { %2303 = vmatpush2.bf16.msra.mxu0 %v6454_v61  ;;  %2344 = vmatpush2.bf16.msra.mxu1 %v6455_v44  ;;  %v6465_v61 = vld [vmem:[#allocation19_spill] sm:$0xff]  ;;  %v6530_v44 = vld [vmem:[#allocation154_spill] sm:$0xff] }
 0x492   :  { %2304 = vmatprep.subr.bf16.mxu0 %v6456_v50  ;;  %2345 = vmatprep.subr.bf16.mxu1 %v6457_v25  ;;  %v6466_v25 = vld [vmem:[#allocation20_spill] sm:$0xff]  ;;  %v6475_v50 = vld [vmem:[#allocation29_spill] sm:$0xff] }
 0x495   :  { %2305 = vmatpush2.bf16.msra.mxu0 %v6458_v5  ;;  %2346 = vmatpush2.bf16.msra.mxu1 %v6459_v37  ;;  %v6467_v5 = vld [vmem:[#allocation21_spill] sm:$0xff]  ;;  %v6468_v37 = vld [vmem:[#allocation22_spill] sm:$0xff] }
 0x496   :  { %2306 = vmatprep.subr.bf16.mxu0 %v6460_v41  ;;  %2347 = vmatprep.subr.bf16.mxu1 %v6461_v36  ;;  %v6469_v41 = vld [vmem:[#allocation23_spill] sm:$0xff]  ;;  %v6470_v36 = vld [vmem:[#allocation24_spill] sm:$0xff] }
 0x499   :  { %2307 = vmatpush2.bf16.msra.mxu0 %v6462_v21  ;;  %2348 = vmatpush2.bf16.msra.mxu1 %v6463_v29  ;;  %v6471_v21 = vld [vmem:[#allocation25_spill] sm:$0xff]  ;;  %v6472_v29 = vld [vmem:[#allocation26_spill] sm:$0xff] }
 0x49a   :  { %2430 = vmatprep.subr.bf16.mxu0 %v6464_v20  ;;  %2471 = vmatprep.subr.bf16.mxu1 %v6465_v61  ;;  %v6473_v20 = vld [vmem:[#allocation27_spill] sm:$0xff]  ;;  %v6474_v61 = vld [vmem:[#allocation28_spill] sm:$0xff] }
 0x49c   :  { %2309 = vmatmul.mubr.bf16.vlgmr.msra.gmra.mxu0 %v5083_v63  ;;  %2350 = vmatmul.mubr.bf16.vlgmr.msra.gmra.mxu1 %v5083_v63  ;;  %v6476_v63 = vld [vmem:[#allocation30_spill] sm:$0xff] }
 0x49d   :  { %2431 = vmatpush1.bf16.msra.mxu0 %v6466_v25  ;;  %2472 = vmatpush1.bf16.msra.mxu1 %v6467_v5  ;;  %v6477_v25 = vld [vmem:[#allocation31_spill] sm:$0xff]  ;;  %v6478_v5 = vld [vmem:[#allocation32_spill] sm:$0xff] }
 0x49e   :  { %2432 = vmatprep.subr.bf16.mxu0 %v6468_v37  ;;  %2473 = vmatprep.subr.bf16.mxu1 %v6469_v41  ;;  %v6479_v37 = vld [vmem:[#allocation33_spill] sm:$0xff]  ;;  %v6480_v41 = vld [vmem:[#allocation34_spill] sm:$0xff] }
 0x4a1   :  { %2433 = vmatpush1.bf16.msra.mxu0 %v6470_v36  ;;  %2474 = vmatpush1.bf16.msra.mxu1 %v6471_v21  ;;  %v6481_v36 = vld [vmem:[#allocation35_spill] sm:$0xff]  ;;  %v6482_v21 = vld [vmem:[#allocation36_spill] sm:$0xff] }
 0x4a2   :  { %2434 = vmatprep.subr.bf16.mxu0 %v6472_v29  ;;  %2475 = vmatprep.subr.bf16.mxu1 %v6473_v20  ;;  %v6483_v29 = vld [vmem:[#allocation37_spill] sm:$0xff]  ;;  %v6484_v20 = vld [vmem:[#allocation38_spill] sm:$0xff] }
 0x4a5   :  { %2435 = vmatpush1.bf16.msra.mxu0 %v6474_v61  ;;  %2476 = vmatpush1.bf16.msra.mxu1 %v6475_v50  ;;  %v6485_v61 = vld [vmem:[#allocation39_spill] sm:$0xff]  ;;  %v6486_v50 = vld [vmem:[#allocation40_spill] sm:$0xff] }
 0x4a6   :  { %2436 = vmatprep.subr.bf16.mxu0 %v6476_v63  ;;  %2477 = vmatprep.subr.bf16.mxu1 %v6477_v25  ;;  %v6487_v63 = vld [vmem:[#allocation41_spill] sm:$0xff]  ;;  %v6488_v25 = vld [vmem:[#allocation42_spill] sm:$0xff] }
 0x4a9   :  { %2437 = vmatpush1.bf16.msra.mxu0 %v6478_v5  ;;  %2478 = vmatpush1.bf16.msra.mxu1 %v6479_v37  ;;  %v6489_v5 = vld [vmem:[#allocation43_spill] sm:$0xff]  ;;  %v6490_v37 = vld [vmem:[#allocation44_spill] sm:$0xff] }
 0x4aa   :  { %2438 = vmatprep.subr.bf16.mxu0 %v6480_v41  ;;  %2479 = vmatprep.subr.bf16.mxu1 %v6481_v36  ;;  %v6491_v41 = vld [vmem:[#allocation45_spill] sm:$0xff]  ;;  %v6492_v36 = vld [vmem:[#allocation46_spill] sm:$0xff] }
 0x4ad   :  { %2439 = vmatpush1.bf16.msra.mxu0 %v6482_v21  ;;  %2480 = vmatpush1.bf16.msra.mxu1 %v6483_v29  ;;  %v6493_v21 = vld [vmem:[#allocation47_spill] sm:$0xff]  ;;  %v6494_v29 = vld [vmem:[#allocation48_spill] sm:$0xff] }
 0x4ae   :  { %2440 = vmatprep.subr.bf16.mxu0 %v6484_v20  ;;  %2481 = vmatprep.subr.bf16.mxu1 %v6485_v61  ;;  %v6495_v20 = vld [vmem:[#allocation49_spill] sm:$0xff]  ;;  %v6496_v61 = vld [vmem:[#allocation50_spill] sm:$0xff] }
 0x4b1   :  { %2441 = vmatpush1.bf16.msra.mxu0 %v6486_v50  ;;  %2482 = vmatpush1.bf16.msra.mxu1 %v6487_v63  ;;  %v6497_v50 = vld [vmem:[#allocation51_spill] sm:$0xff]  ;;  %v6498_v63 = vld [vmem:[#allocation52_spill] sm:$0xff] }
 0x4b2   :  { %2442 = vmatprep.subr.bf16.mxu0 %v6488_v25  ;;  %2483 = vmatprep.subr.bf16.mxu1 %v6489_v5  ;;  %v6499_v25 = vld [vmem:[#allocation53_spill] sm:$0xff]  ;;  %v6500_v5 = vld [vmem:[#allocation54_spill] sm:$0xff] }
 0x4b5   :  { %2443 = vmatpush1.bf16.msra.mxu0 %v6490_v37  ;;  %2484 = vmatpush1.bf16.msra.mxu1 %v6491_v41  ;;  %v6501_v37 = vld [vmem:[#allocation55_spill] sm:$0xff]  ;;  %v6502_v41 = vld [vmem:[#allocation56_spill] sm:$0xff] }
 0x4b6   :  { %2444 = vmatprep.subr.bf16.mxu0 %v6492_v36  ;;  %2485 = vmatprep.subr.bf16.mxu1 %v6493_v21  ;;  %v6503_v36 = vld [vmem:[#allocation57_spill] sm:$0xff]  ;;  %v6504_v21 = vld [vmem:[#allocation58_spill] sm:$0xff] }
 0x4b9   :  { %2445 = vmatpush1.bf16.msra.mxu0 %v6494_v29  ;;  %2486 = vmatpush1.bf16.msra.mxu1 %v6495_v20  ;;  %v6505_v29 = vld [vmem:[#allocation59_spill] sm:$0xff]  ;;  %v6506_v20 = vld [vmem:[#allocation60_spill] sm:$0xff] }
 0x4ba   :  { %2446 = vmatprep.subr.bf16.mxu0 %v6496_v61  ;;  %2487 = vmatprep.subr.bf16.mxu1 %v6497_v50  ;;  %v6507_v61 = vld [vmem:[#allocation61_spill] sm:$0xff]  ;;  %v6508_v50 = vld [vmem:[#allocation62_spill] sm:$0xff] }
 0x4bd   :  { %2447 = vmatpush2.bf16.msra.mxu0 %v6498_v63  ;;  %2488 = vmatpush2.bf16.msra.mxu1 %v6499_v25  ;;  %v6509_v63 = vld [vmem:[#allocation63_spill] sm:$0xff]  ;;  %v6510_v25 = vld [vmem:[#allocation64_spill] sm:$0xff] }
 0x4be   :  { %2448 = vmatprep.subr.bf16.mxu0 %v6500_v5  ;;  %2489 = vmatprep.subr.bf16.mxu1 %v6501_v37  ;;  %v6511_v5 = vld [vmem:[#allocation65_spill] sm:$0xff]  ;;  %v6512_v37 = vld [vmem:[#allocation66_spill] sm:$0xff] }
 0x4c1   :  { %2449 = vmatpush2.bf16.msra.mxu0 %v6502_v41  ;;  %2490 = vmatpush2.bf16.msra.mxu1 %v6503_v36  ;;  %v6513_v41 = vld [vmem:[#allocation67_spill] sm:$0xff]  ;;  %v6514_v36 = vld [vmem:[#allocation68_spill] sm:$0xff] }
 0x4c2   :  { %2450 = vmatprep.subr.bf16.mxu0 %v6504_v21  ;;  %2491 = vmatprep.subr.bf16.mxu1 %v6505_v29  ;;  %v6515_v21 = vld [vmem:[#allocation69_spill] sm:$0xff]  ;;  %v6516_v29 = vld [vmem:[#allocation70_spill] sm:$0xff] }
 0x4c5   :  { %2451 = vmatpush2.bf16.msra.mxu0 %v6506_v20  ;;  %2492 = vmatpush2.bf16.msra.mxu1 %v6507_v61  ;;  %v6517_v20 = vld [vmem:[#allocation71_spill] sm:$0xff]  ;;  %v6518_v61 = vld [vmem:[#allocation72_spill] sm:$0xff] }
 0x4c6   :  { %2452 = vmatprep.subr.bf16.mxu0 %v6508_v50  ;;  %2493 = vmatprep.subr.bf16.mxu1 %v6509_v63  ;;  %v6519_v50 = vld [vmem:[#allocation73_spill] sm:$0xff]  ;;  %v6520_v63 = vld [vmem:[#allocation74_spill] sm:$0xff] }
 0x4c9   :  { %2453 = vmatpush2.bf16.msra.mxu0 %v6510_v25  ;;  %2494 = vmatpush2.bf16.msra.mxu1 %v6511_v5  ;;  %v6521_v25 = vld [vmem:[#allocation75_spill] sm:$0xff]  ;;  %v6522_v5 = vld [vmem:[#allocation76_spill] sm:$0xff] }
 0x4ca   :  { %2454 = vmatprep.subr.bf16.mxu0 %v6512_v37  ;;  %2495 = vmatprep.subr.bf16.mxu1 %v6513_v41  ;;  %v6523_v37 = vld [vmem:[#allocation77_spill] sm:$0xff]  ;;  %v6524_v41 = vld [vmem:[#allocation78_spill] sm:$0xff] }
 0x4cd   :  { %2455 = vmatpush2.bf16.msra.mxu0 %v6514_v36  ;;  %2496 = vmatpush2.bf16.msra.mxu1 %v6515_v21  ;;  %v6525_v36 = vld [vmem:[#allocation79_spill] sm:$0xff]  ;;  %v6526_v21 = vld [vmem:[#allocation80_spill] sm:$0xff] }
 0x4ce   :  { %2456 = vmatprep.subr.bf16.mxu0 %v6516_v29  ;;  %2497 = vmatprep.subr.bf16.mxu1 %v6517_v20  ;;  %v6527_v29 = vld [vmem:[#allocation81_spill] sm:$0xff]  ;;  %v6528_v20 = vld [vmem:[#allocation82_spill] sm:$0xff] }
 0x4d1   :  { %2457 = vmatpush2.bf16.msra.mxu0 %v6518_v61  ;;  %2498 = vmatpush2.bf16.msra.mxu1 %v6519_v50  ;;  %v6529_v61 = vld [vmem:[#allocation83_spill] sm:$0xff] }
 0x4d2   :  { %2458 = vmatprep.subr.bf16.mxu0 %v6520_v63  ;;  %2499 = vmatprep.subr.bf16.mxu1 %v6521_v25 }
 0x4d5   :  { %2459 = vmatpush2.bf16.msra.mxu0 %v6522_v5  ;;  %2500 = vmatpush2.bf16.msra.mxu1 %v6523_v37 }
 0x4d6   :  { %2460 = vmatprep.subr.bf16.mxu0 %v6524_v41  ;;  %2501 = vmatprep.subr.bf16.mxu1 %v6525_v36  ;;  %v6532_v41 = vld [vmem:[#allocation156_spill] sm:$0xff]  ;;  %v6533_v36 = vld [vmem:[#allocation157_spill] sm:$0xff] }
 0x4d9   :  { %2461 = vmatpush2.bf16.msra.mxu0 %v6526_v21  ;;  %2502 = vmatpush2.bf16.msra.mxu1 %v6527_v29 }
 0x4da   :  { %2512 = vmatprep.subr.bf16.mxu0 %v6528_v20  ;;  %2553 = vmatprep.subr.bf16.mxu1 %v6529_v61 }
 0x51c   :  { %v2228_v50 = vpop.f32.mrf.mxu0  ;;  %v2269_v63 = vpop.f32.mrf.mxu1 }
 0x51d   :  { %v2358_v25 = vadd.f32 %v2228_v50, %v6530_v44  ;;  %v2360_v5 = vadd.f32 %v2269_v63, %v6531_v55 }
 0x51e   :  { %v2230_v2 = vpop.f32.mrf.mxu0  ;;  %v2271_v37 = vpop.f32.mrf.mxu1 }
 0x51f   :  { %v3576_v56 = vmul.f32 -1.442695, %v2358_v25  ;;  %v2359_v23 = vadd.f32 %v2230_v2, %v6532_v41  ;;  %v2361_v6 = vadd.f32 %v2271_v37, %v6533_v36  ;;  %v6535_v36 = vld [vmem:[#allocation192_spill] sm:$0xff] }
 0x520   :  { %v2232_v21 = vpop.f32.mrf.mxu0  ;;  %v2273_v15 = vpop.f32.mrf.mxu1 }
 0x521   :  { %3717 = vpow2.f32 %v3576_v56  ;;  %v3577_v29 = vmul.f32 -1.442695, %v2359_v23  ;;  %v6534_v56 = vld [vmem:[#allocation190_spill] sm:$0xff] }
 0x522   :  { %v2233_v20 = vpop.f32.mrf.mxu0  ;;  %v2274_v22 = vpop.f32.mrf.mxu1 }
 0x523   :  { %3719 = vpow2.f32 %v3577_v29 }
 0x524   :  { %3721 = vtanh.f32 %v2361_v6 }
 0x52e   :  { %v3718_v61 = vpop.eup %3717 }
 0x52f   :  { %v2375_v62 = vadd.f32 1.0, %v3718_v61 }
 0x530   :  { %v3720_v54 = vpop.eup %3719 }
 0x531   :  { %3723 = vrcp.f32 %v2375_v62  ;;  %v2376_v55 = vadd.f32 1.0, %v3720_v54  ;;  %v3722_v44 = vpop.eup %3721 }
 0x533   :  { %3725 = vrcp.f32 %v2376_v55 }
 0x53e   :  { %v3724_v50 = vpop.eup %3723 }
 0x53f   :  { %v2386_v25 = vmul.f32 %v3724_v50, %v3722_v44  ;;  %v6536_v44 = vld [vmem:[#allocation191_spill] sm:$0xff]  ;;  %v3578_v50 = vmul.f32 -1.442695, %v2360_v5 }
 0x540   :  { %v3726_v2 = vpop.eup %3725 }
 0x541   :  { %v2385_v37 = vmul.f32 %v3726_v2, %v5072_v7  ;;  %v6537_v2 = vld [vmem:[#allocation193_spill] sm:$0xff] }
 0x543   :  { %v5222_v41 = vadd.f32 %v2386_v25, %v2385_v37 }
 0x55c   :  { %v2310_v15 = vpop.f32.mrf.mxu0  ;;  %v2351_v23 = vpop.f32.mrf.mxu1 }
 0x55d   :  { %v2362_v22 = vadd.f32 %v2310_v15, %v6534_v56  ;;  %v2364_v7 = vadd.f32 %v2351_v23, %v6536_v44 }
 0x55e   :  { %v2312_v29 = vpop.f32.mrf.mxu0  ;;  %v2353_v20 = vpop.f32.mrf.mxu1 }
 0x55f   :  { %v3579_v61 = vmul.f32 -1.442695, %v2362_v22  ;;  %v2363_v6 = vadd.f32 %v2312_v29, %v6535_v36  ;;  %v3581_v25 = vmul.f32 -1.442695, %v2364_v7  ;;  %v2365_v37 = vadd.f32 %v2353_v20, %v6537_v2 }
 0x560   :  { %v2314_v62 = vpop.f32.mrf.mxu0  ;;  %v2355_v54 = vpop.f32.mrf.mxu1 }
 0x561   :  { %3727 = vpow2.f32 %v3579_v61  ;;  %v3580_v21 = vmul.f32 -1.442695, %v2363_v6 }
 0x562   :  { %v2315_v63 = vpop.f32.mrf.mxu0  ;;  %v2356_v55 = vpop.f32.mrf.mxu1 }
 0x563   :  { %3729 = vpow2.f32 %v3580_v21 }
 0x564   :  { %3731 = vpow2.f32 %v3578_v50 }
 0x565   :  { %3733 = vpow2.f32 %v3581_v25 }
 0x566   :  { %3735 = vtanh.f32 %v2365_v37  ;;  %v6539_v37 = vld [vmem:[#allocation125_spill] sm:$0xff] }
 0x56e   :  { %v3728_v60 = vpop.eup %3727 }
 0x56f   :  { %v2399_v15 = vadd.f32 1.0, %v3728_v60 }
 0x570   :  { %v3730_v56 = vpop.eup %3729 }
 0x571   :  { %3737 = vrcp.f32 %v2399_v15  ;;  %v2400_v22 = vadd.f32 1.0, %v3730_v56  ;;  %v3732_v29 = vpop.eup %3731  ;;  %v6540_v15 = vld [vmem:[#allocation126_spill] sm:$0xff]  ;;  %v6541_v56 = vld [vmem:[#allocation127_spill] sm:$0xff] }
 0x572   :  { %v3734_v61 = vpop.eup %3733  ;;  %v2377_v62 = vadd.f32 1.0, %v3732_v29  ;;  %v6543_v29 = vld [vmem:[#allocation129_spill] sm:$0xff] }
 0x573   :  { %3739 = vrcp.f32 %v2400_v22  ;;  %v3736_v36 = vpop.eup %3735  ;;  %v2401_v5 = vadd.f32 1.0, %v3734_v61  ;;  %v6542_v22 = vld [vmem:[#allocation128_spill] sm:$0xff]  ;;  %v6544_v61 = vld [vmem:[#allocation130_spill] sm:$0xff] }
 0x574   :  { %3741 = vtanh.f32 %v5222_v41 }
 0x575   :  { %3743 = vrcp.f32 %v2377_v62  ;;  %v6547_v62 = vld [vmem:[#allocation133_spill] sm:$0xff] }
 0x576   :  { %3745 = vrcp.f32 %v2401_v5  ;;  %v6550_v5 = vld [vmem:[#allocation136_spill] sm:$0xff] }
 0x57e   :  { %v3738_v6 = vpop.eup %3737 }
 0x57f   :  { %v2410_v54 = vmul.f32 %v3738_v6, %v3736_v36  ;;  %v6545_v36 = vld [vmem:[#allocation131_spill] sm:$0xff]  ;;  %v6546_v6 = vld [vmem:[#allocation132_spill] sm:$0xff] }
 0x580   :  { %v3740_v23 = vpop.eup %3739 }
 0x581   :  { %v2409_v21 = vmul.f32 %v3740_v23, %v5080_v34  ;;  %v3742_v20 = vpop.eup %3741  ;;  %v6538_v34 = vld [vmem:[#allocation124_spill] sm:$0xff]  ;;  %v6549_v23 = vld [vmem:[#allocation135_spill] sm:$0xff] }
 0x582   :  { %v3744_v63 = vpop.eup %3743 }
 0x583   :  { %v5230_v60 = vadd.f32 %v2410_v54, %v2409_v21  ;;  %v3746_v55 = vpop.eup %3745  ;;  %v2389_v7 = vmul.f32 %v3744_v63, %v3742_v20  ;;  %v6548_v54 = vld [vmem:[#allocation134_spill] sm:$0xff]  ;;  %v6551_v21 = vld [vmem:[#allocation137_spill] sm:$0xff]  ;;  %v6553_v63 = vld [vmem:[#allocation139_spill] sm:$0xff] }
 0x584   :  { %v6552_v20 = vld [vmem:[#allocation138_spill] sm:$0xff] }
 0x585   :  { %3747 = vtanh.f32 %v5230_v60  ;;  %v5233_v2 = vpack.c.bf16 %v2389_v7, %v2389_v7  ;;  %v6556_v7 = vld [vmem:[#allocation142_spill] sm:$0xff] }
 0x592   :  { %v3748_v44 = vpop.eup %3747 }
 0x593   :  { %v2413_v50 = vmul.f32 %v3748_v44, %v3746_v55  ;;  %v6554_v55 = vld [vmem:[#allocation140_spill] sm:$0xff]  ;;  %v6555_v44 = vld [vmem:[#allocation141_spill] sm:$0xff] }
 0x595   :  { %v2429_v25 = vpack.c.bf16 %v2413_v50, %v2413_v50  ;;  %v6557_v50 = vld [vmem:[#allocation143_spill] sm:$0xff] }
 0x597   :  { %2462 = vmatprep.mubr.bf16.mxu0 %v2429_v25  ;;  %2503 = vmatprep.mubr.bf16.mxu1 %v2429_v25 }
 0x598   :  { %2463 = vmatmul.mubr.bf16.vlgmr.msra.gmra.mxu0 %v5233_v2  ;;  %2504 = vmatmul.mubr.bf16.vlgmr.msra.gmra.mxu1 %v5233_v2 }
 0x599   :  { %2513 = vmatpush1.bf16.msra.mxu0 %v6243_v31  ;;  %2554 = vmatpush1.bf16.msra.mxu1 %v6244_v9 }
 0x59a   :  { %2544 = vmatprep.mubr.bf16.mxu0 %v2429_v25  ;;  %2585 = vmatprep.mubr.bf16.mxu1 %v2429_v25  ;;  %v6558_v25 = vld [vmem:[#allocation144_spill] sm:$0xff] }
 0x59b   :  { %2514 = vmatprep.subr.bf16.mxu0 %v6245_v11  ;;  %2555 = vmatprep.subr.bf16.mxu1 %v6246_v53 }
 0x59d   :  { %2515 = vmatpush1.bf16.msra.mxu0 %v6247_v52  ;;  %2556 = vmatpush1.bf16.msra.mxu1 %v6248_v39 }
 0x59e   :  { %2516 = vmatprep.subr.bf16.mxu0 %v6249_v0  ;;  %2557 = vmatprep.subr.bf16.mxu1 %v6250_v38 }
 0x5a1   :  { %2517 = vmatpush1.bf16.msra.mxu0 %v6251_v3  ;;  %2558 = vmatpush1.bf16.msra.mxu1 %v6252_v12 }
 0x5a2   :  { %2518 = vmatprep.subr.bf16.mxu0 %v6253_v28  ;;  %2559 = vmatprep.subr.bf16.mxu1 %v6254_v46 }
 0x5a5   :  { %2519 = vmatpush1.bf16.msra.mxu0 %v6255_v30  ;;  %2560 = vmatpush1.bf16.msra.mxu1 %v6256_v51 }
 0x5a6   :  { %2520 = vmatprep.subr.bf16.mxu0 %v6257_v58  ;;  %2561 = vmatprep.subr.bf16.mxu1 %v6258_v59 }
 0x5a9   :  { %2521 = vmatpush1.bf16.msra.mxu0 %v6259_v4  ;;  %2562 = vmatpush1.bf16.msra.mxu1 %v6346_v1 }
 0x5aa   :  { %2522 = vmatprep.subr.bf16.mxu0 %v6347_v35  ;;  %2563 = vmatprep.subr.bf16.mxu1 %v6348_v17 }
 0x5ad   :  { %2523 = vmatpush1.bf16.msra.mxu0 %v6349_v24  ;;  %2564 = vmatpush1.bf16.msra.mxu1 %v6350_v16 }
 0x5ae   :  { %2524 = vmatprep.subr.bf16.mxu0 %v6351_v42  ;;  %2565 = vmatprep.subr.bf16.mxu1 %v6352_v32 }
 0x5b1   :  { %2525 = vmatpush1.bf16.msra.mxu0 %v6353_v48  ;;  %2566 = vmatpush1.bf16.msra.mxu1 %v6354_v18 }
 0x5b2   :  { %2526 = vmatprep.subr.bf16.mxu0 %v6355_v10  ;;  %2567 = vmatprep.subr.bf16.mxu1 %v6356_v8 }
 0x5b5   :  { %2527 = vmatpush1.bf16.msra.mxu0 %v6357_v19  ;;  %2568 = vmatpush1.bf16.msra.mxu1 %v6358_v40 }
 0x5b6   :  { %2528 = vmatprep.subr.bf16.mxu0 %v6359_v49  ;;  %2569 = vmatprep.subr.bf16.mxu1 %v6360_v43 }
 0x5b9   :  { %2529 = vmatpush2.bf16.msra.mxu0 %v6361_v13  ;;  %2570 = vmatpush2.bf16.msra.mxu1 %v6362_v26 }
 0x5ba   :  { %2530 = vmatprep.subr.bf16.mxu0 %v6363_v27  ;;  %2571 = vmatprep.subr.bf16.mxu1 %v6364_v57 }
 0x5bd   :  { %2531 = vmatpush2.bf16.msra.mxu0 %v6365_v33  ;;  %2572 = vmatpush2.bf16.msra.mxu1 %v6280_v14 }
 0x5be   :  { %2532 = vmatprep.subr.bf16.mxu0 %v6281_v47  ;;  %2573 = vmatprep.subr.bf16.mxu1 %v6282_v45 }
 0x5c1   :  { %2533 = vmatpush2.bf16.msra.mxu0 %v6538_v34  ;;  %2574 = vmatpush2.bf16.msra.mxu1 %v6539_v37 }
 0x5c2   :  { %2534 = vmatprep.subr.bf16.mxu0 %v6540_v15  ;;  %2575 = vmatprep.subr.bf16.mxu1 %v6541_v56 }
 0x5c5   :  { %2535 = vmatpush2.bf16.msra.mxu0 %v6542_v22  ;;  %2576 = vmatpush2.bf16.msra.mxu1 %v6543_v29 }
 0x5c6   :  { %2536 = vmatprep.subr.bf16.mxu0 %v6544_v61  ;;  %2577 = vmatprep.subr.bf16.mxu1 %v6545_v36 }
 0x5c9   :  { %2537 = vmatpush2.bf16.msra.mxu0 %v6546_v6  ;;  %2578 = vmatpush2.bf16.msra.mxu1 %v6547_v62  ;;  %v6627_v62 = vld [vmem:[#allocation159_spill] sm:$0xff] }
 0x5ca   :  { %2538 = vmatprep.subr.bf16.mxu0 %v6548_v54  ;;  %2579 = vmatprep.subr.bf16.mxu1 %v6549_v23  ;;  %v6559_v54 = vld [vmem:[#allocation145_spill] sm:$0xff]  ;;  %v6560_v23 = vld [vmem:[#allocation18_spill] sm:$0xff] }
 0x5cd   :  { %2539 = vmatpush2.bf16.msra.mxu0 %v6550_v5  ;;  %2580 = vmatpush2.bf16.msra.mxu1 %v6551_v21  ;;  %v6561_v5 = vld [vmem:[#allocation19_spill] sm:$0xff]  ;;  %v6626_v21 = vld [vmem:[#allocation158_spill] sm:$0xff] }
 0x5ce   :  { %2540 = vmatprep.subr.bf16.mxu0 %v6552_v20  ;;  %2581 = vmatprep.subr.bf16.mxu1 %v6553_v63  ;;  %v6562_v63 = vld [vmem:[#allocation20_spill] sm:$0xff]  ;;  %v6571_v20 = vld [vmem:[#allocation29_spill] sm:$0xff] }
 0x5d1   :  { %2541 = vmatpush2.bf16.msra.mxu0 %v6554_v55  ;;  %2582 = vmatpush2.bf16.msra.mxu1 %v6555_v44  ;;  %v6563_v55 = vld [vmem:[#allocation21_spill] sm:$0xff]  ;;  %v6564_v44 = vld [vmem:[#allocation22_spill] sm:$0xff] }
 0x5d2   :  { %2542 = vmatprep.subr.bf16.mxu0 %v6556_v7  ;;  %2583 = vmatprep.subr.bf16.mxu1 %v6557_v50  ;;  %v6565_v7 = vld [vmem:[#allocation23_spill] sm:$0xff]  ;;  %v6566_v50 = vld [vmem:[#allocation24_spill] sm:$0xff] }
 0x5d5   :  { %2543 = vmatpush2.bf16.msra.mxu0 %v6558_v25  ;;  %2584 = vmatpush2.bf16.msra.mxu1 %v6559_v54  ;;  %v6567_v25 = vld [vmem:[#allocation25_spill] sm:$0xff]  ;;  %v6568_v54 = vld [vmem:[#allocation26_spill] sm:$0xff] }
 0x5d6   :  { %2666 = vmatprep.subr.bf16.mxu0 %v6560_v23  ;;  %2707 = vmatprep.subr.bf16.mxu1 %v6561_v5  ;;  %v6569_v23 = vld [vmem:[#allocation27_spill] sm:$0xff]  ;;  %v6570_v5 = vld [vmem:[#allocation28_spill] sm:$0xff] }
 0x5d8   :  { %2545 = vmatmul.mubr.bf16.vlgmr.msra.gmra.mxu0 %v5233_v2  ;;  %2586 = vmatmul.mubr.bf16.vlgmr.msra.gmra.mxu1 %v5233_v2  ;;  %v6572_v2 = vld [vmem:[#allocation30_spill] sm:$0xff] }
 0x5d9   :  { %2667 = vmatpush1.bf16.msra.mxu0 %v6562_v63  ;;  %2708 = vmatpush1.bf16.msra.mxu1 %v6563_v55  ;;  %v6573_v63 = vld [vmem:[#allocation31_spill] sm:$0xff]  ;;  %v6574_v55 = vld [vmem:[#allocation32_spill] sm:$0xff] }
 0x5da   :  { %2668 = vmatprep.subr.bf16.mxu0 %v6564_v44  ;;  %2709 = vmatprep.subr.bf16.mxu1 %v6565_v7  ;;  %v6575_v44 = vld [vmem:[#allocation33_spill] sm:$0xff]  ;;  %v6576_v7 = vld [vmem:[#allocation34_spill] sm:$0xff] }
 0x5dd   :  { %2669 = vmatpush1.bf16.msra.mxu0 %v6566_v50  ;;  %2710 = vmatpush1.bf16.msra.mxu1 %v6567_v25  ;;  %v6577_v50 = vld [vmem:[#allocation35_spill] sm:$0xff]  ;;  %v6578_v25 = vld [vmem:[#allocation36_spill] sm:$0xff] }
 0x5de   :  { %2670 = vmatprep.subr.bf16.mxu0 %v6568_v54  ;;  %2711 = vmatprep.subr.bf16.mxu1 %v6569_v23  ;;  %v6579_v54 = vld [vmem:[#allocation37_spill] sm:$0xff]  ;;  %v6580_v23 = vld [vmem:[#allocation38_spill] sm:$0xff] }
 0x5e1   :  { %2671 = vmatpush1.bf16.msra.mxu0 %v6570_v5  ;;  %2712 = vmatpush1.bf16.msra.mxu1 %v6571_v20  ;;  %v6581_v5 = vld [vmem:[#allocation39_spill] sm:$0xff]  ;;  %v6582_v20 = vld [vmem:[#allocation40_spill] sm:$0xff] }
 0x5e2   :  { %2672 = vmatprep.subr.bf16.mxu0 %v6572_v2  ;;  %2713 = vmatprep.subr.bf16.mxu1 %v6573_v63  ;;  %v6583_v2 = vld [vmem:[#allocation41_spill] sm:$0xff]  ;;  %v6584_v63 = vld [vmem:[#allocation42_spill] sm:$0xff] }
 0x5e5   :  { %2673 = vmatpush1.bf16.msra.mxu0 %v6574_v55  ;;  %2714 = vmatpush1.bf16.msra.mxu1 %v6575_v44  ;;  %v6585_v55 = vld [vmem:[#allocation43_spill] sm:$0xff]  ;;  %v6586_v44 = vld [vmem:[#allocation44_spill] sm:$0xff] }
 0x5e6   :  { %2674 = vmatprep.subr.bf16.mxu0 %v6576_v7  ;;  %2715 = vmatprep.subr.bf16.mxu1 %v6577_v50  ;;  %v6587_v7 = vld [vmem:[#allocation45_spill] sm:$0xff]  ;;  %v6588_v50 = vld [vmem:[#allocation46_spill] sm:$0xff] }
 0x5e9   :  { %2675 = vmatpush1.bf16.msra.mxu0 %v6578_v25  ;;  %2716 = vmatpush1.bf16.msra.mxu1 %v6579_v54  ;;  %v6589_v25 = vld [vmem:[#allocation47_spill] sm:$0xff]  ;;  %v6590_v54 = vld [vmem:[#allocation48_spill] sm:$0xff] }
 0x5ea   :  { %2676 = vmatprep.subr.bf16.mxu0 %v6580_v23  ;;  %2717 = vmatprep.subr.bf16.mxu1 %v6581_v5  ;;  %v6591_v23 = vld [vmem:[#allocation49_spill] sm:$0xff]  ;;  %v6592_v5 = vld [vmem:[#allocation50_spill] sm:$0xff] }
 0x5ed   :  { %2677 = vmatpush1.bf16.msra.mxu0 %v6582_v20  ;;  %2718 = vmatpush1.bf16.msra.mxu1 %v6583_v2  ;;  %v6593_v20 = vld [vmem:[#allocation51_spill] sm:$0xff]  ;;  %v6594_v2 = vld [vmem:[#allocation52_spill] sm:$0xff] }
 0x5ee   :  { %2678 = vmatprep.subr.bf16.mxu0 %v6584_v63  ;;  %2719 = vmatprep.subr.bf16.mxu1 %v6585_v55  ;;  %v6595_v63 = vld [vmem:[#allocation53_spill] sm:$0xff]  ;;  %v6596_v55 = vld [vmem:[#allocation54_spill] sm:$0xff] }
 0x5f1   :  { %2679 = vmatpush1.bf16.msra.mxu0 %v6586_v44  ;;  %2720 = vmatpush1.bf16.msra.mxu1 %v6587_v7  ;;  %v6597_v44 = vld [vmem:[#allocation55_spill] sm:$0xff]  ;;  %v6598_v7 = vld [vmem:[#allocation56_spill] sm:$0xff] }
 0x5f2   :  { %2680 = vmatprep.subr.bf16.mxu0 %v6588_v50  ;;  %2721 = vmatprep.subr.bf16.mxu1 %v6589_v25  ;;  %v6599_v50 = vld [vmem:[#allocation57_spill] sm:$0xff]  ;;  %v6600_v25 = vld [vmem:[#allocation58_spill] sm:$0xff] }
 0x5f5   :  { %2681 = vmatpush1.bf16.msra.mxu0 %v6590_v54  ;;  %2722 = vmatpush1.bf16.msra.mxu1 %v6591_v23  ;;  %v6601_v54 = vld [vmem:[#allocation59_spill] sm:$0xff]  ;;  %v6602_v23 = vld [vmem:[#allocation60_spill] sm:$0xff] }
 0x5f6   :  { %2682 = vmatprep.subr.bf16.mxu0 %v6592_v5  ;;  %2723 = vmatprep.subr.bf16.mxu1 %v6593_v20  ;;  %v6603_v5 = vld [vmem:[#allocation61_spill] sm:$0xff]  ;;  %v6604_v20 = vld [vmem:[#allocation62_spill] sm:$0xff] }
 0x5f9   :  { %2683 = vmatpush2.bf16.msra.mxu0 %v6594_v2  ;;  %2724 = vmatpush2.bf16.msra.mxu1 %v6595_v63  ;;  %v6605_v2 = vld [vmem:[#allocation63_spill] sm:$0xff]  ;;  %v6606_v63 = vld [vmem:[#allocation64_spill] sm:$0xff] }
 0x5fa   :  { %2684 = vmatprep.subr.bf16.mxu0 %v6596_v55  ;;  %2725 = vmatprep.subr.bf16.mxu1 %v6597_v44  ;;  %v6607_v55 = vld [vmem:[#allocation65_spill] sm:$0xff]  ;;  %v6608_v44 = vld [vmem:[#allocation66_spill] sm:$0xff] }
 0x5fd   :  { %2685 = vmatpush2.bf16.msra.mxu0 %v6598_v7  ;;  %2726 = vmatpush2.bf16.msra.mxu1 %v6599_v50  ;;  %v6609_v7 = vld [vmem:[#allocation67_spill] sm:$0xff]  ;;  %v6610_v50 = vld [vmem:[#allocation68_spill] sm:$0xff] }
 0x5fe   :  { %2686 = vmatprep.subr.bf16.mxu0 %v6600_v25  ;;  %2727 = vmatprep.subr.bf16.mxu1 %v6601_v54  ;;  %v6611_v25 = vld [vmem:[#allocation69_spill] sm:$0xff]  ;;  %v6612_v54 = vld [vmem:[#allocation70_spill] sm:$0xff] }
 0x601   :  { %2687 = vmatpush2.bf16.msra.mxu0 %v6602_v23  ;;  %2728 = vmatpush2.bf16.msra.mxu1 %v6603_v5  ;;  %v6613_v23 = vld [vmem:[#allocation71_spill] sm:$0xff]  ;;  %v6614_v5 = vld [vmem:[#allocation72_spill] sm:$0xff] }
 0x602   :  { %2688 = vmatprep.subr.bf16.mxu0 %v6604_v20  ;;  %2729 = vmatprep.subr.bf16.mxu1 %v6605_v2  ;;  %v6615_v20 = vld [vmem:[#allocation73_spill] sm:$0xff]  ;;  %v6616_v2 = vld [vmem:[#allocation74_spill] sm:$0xff] }
 0x605   :  { %2689 = vmatpush2.bf16.msra.mxu0 %v6606_v63  ;;  %2730 = vmatpush2.bf16.msra.mxu1 %v6607_v55  ;;  %v6617_v63 = vld [vmem:[#allocation75_spill] sm:$0xff]  ;;  %v6618_v55 = vld [vmem:[#allocation76_spill] sm:$0xff] }
 0x606   :  { %2690 = vmatprep.subr.bf16.mxu0 %v6608_v44  ;;  %2731 = vmatprep.subr.bf16.mxu1 %v6609_v7  ;;  %v6619_v44 = vld [vmem:[#allocation77_spill] sm:$0xff]  ;;  %v6620_v7 = vld [vmem:[#allocation78_spill] sm:$0xff] }
 0x609   :  { %2691 = vmatpush2.bf16.msra.mxu0 %v6610_v50  ;;  %2732 = vmatpush2.bf16.msra.mxu1 %v6611_v25  ;;  %v6621_v50 = vld [vmem:[#allocation79_spill] sm:$0xff]  ;;  %v6622_v25 = vld [vmem:[#allocation80_spill] sm:$0xff] }
 0x60a   :  { %2692 = vmatprep.subr.bf16.mxu0 %v6612_v54  ;;  %2733 = vmatprep.subr.bf16.mxu1 %v6613_v23  ;;  %v6623_v54 = vld [vmem:[#allocation81_spill] sm:$0xff]  ;;  %v6624_v23 = vld [vmem:[#allocation82_spill] sm:$0xff] }
 0x60d   :  { %2693 = vmatpush2.bf16.msra.mxu0 %v6614_v5  ;;  %2734 = vmatpush2.bf16.msra.mxu1 %v6615_v20  ;;  %v6625_v5 = vld [vmem:[#allocation83_spill] sm:$0xff] }
 0x60e   :  { %2694 = vmatprep.subr.bf16.mxu0 %v6616_v2  ;;  %2735 = vmatprep.subr.bf16.mxu1 %v6617_v63 }
 0x611   :  { %2695 = vmatpush2.bf16.msra.mxu0 %v6618_v55  ;;  %2736 = vmatpush2.bf16.msra.mxu1 %v6619_v44 }
 0x612   :  { %2696 = vmatprep.subr.bf16.mxu0 %v6620_v7  ;;  %2737 = vmatprep.subr.bf16.mxu1 %v6621_v50  ;;  %v6628_v7 = vld [vmem:[#allocation160_spill] sm:$0xff]  ;;  %v6629_v50 = vld [vmem:[#allocation161_spill] sm:$0xff] }
 0x615   :  { %2697 = vmatpush2.bf16.msra.mxu0 %v6622_v25  ;;  %2738 = vmatpush2.bf16.msra.mxu1 %v6623_v54 }
 0x616   :  { %2748 = vmatprep.subr.bf16.mxu0 %v6624_v23  ;;  %2789 = vmatprep.subr.bf16.mxu1 %v6625_v5 }
 0x658   :  { %v2464_v20 = vpop.f32.mrf.mxu0  ;;  %v2505_v2 = vpop.f32.mrf.mxu1 }
 0x659   :  { %v2594_v63 = vadd.f32 %v2464_v20, %v6626_v21  ;;  %v2596_v55 = vadd.f32 %v2505_v2, %v6627_v62 }
 0x65a   :  { %v2466_v6 = vpop.f32.mrf.mxu0  ;;  %v2507_v44 = vpop.f32.mrf.mxu1 }
 0x65b   :  { %v3582_v36 = vmul.f32 -1.442695, %v2594_v63  ;;  %v2595_v61 = vadd.f32 %v2466_v6, %v6628_v7  ;;  %v2597_v29 = vadd.f32 %v2507_v44, %v6629_v50  ;;  %v6631_v50 = vld [vmem:[#allocation188_spill] sm:$0xff] }
 0x65c   :  { %v2468_v25 = vpop.f32.mrf.mxu0  ;;  %v2509_v22 = vpop.f32.mrf.mxu1 }
 0x65d   :  { %3749 = vpow2.f32 %v3582_v36  ;;  %v3583_v54 = vmul.f32 -1.442695, %v2595_v61  ;;  %v6630_v36 = vld [vmem:[#allocation186_spill] sm:$0xff] }
 0x65e   :  { %v2469_v23 = vpop.f32.mrf.mxu0  ;;  %v2510_v56 = vpop.f32.mrf.mxu1 }
 0x65f   :  { %3751 = vpow2.f32 %v3583_v54 }
 0x660   :  { %3753 = vtanh.f32 %v2597_v29 }
 0x66a   :  { %v3750_v5 = vpop.eup %3749 }
 0x66b   :  { %v2611_v15 = vadd.f32 1.0, %v3750_v5 }
 0x66c   :  { %v3752_v37 = vpop.eup %3751 }
 0x66d   :  { %3755 = vrcp.f32 %v2611_v15  ;;  %v2612_v62 = vadd.f32 1.0, %v3752_v37  ;;  %v3754_v21 = vpop.eup %3753 }
 0x66f   :  { %3757 = vrcp.f32 %v2612_v62 }
 0x67a   :  { %v3756_v20 = vpop.eup %3755 }
 0x67b   :  { %v2622_v63 = vmul.f32 %v3756_v20, %v3754_v21  ;;  %v6632_v21 = vld [vmem:[#allocation187_spill] sm:$0xff]  ;;  %v3584_v20 = vmul.f32 -1.442695, %v2596_v55 }
 0x67c   :  { %v3758_v6 = vpop.eup %3757 }
 0x67d   :  { %v2621_v44 = vmul.f32 %v3758_v6, %v5222_v41  ;;  %v6633_v6 = vld [vmem:[#allocation189_spill] sm:$0xff] }
 0x67f   :  { %v5372_v7 = vadd.f32 %v2622_v63, %v2621_v44 }
 0x698   :  { %v2546_v22 = vpop.f32.mrf.mxu0  ;;  %v2587_v61 = vpop.f32.mrf.mxu1 }
 0x699   :  { %v2598_v56 = vadd.f32 %v2546_v22, %v6630_v36  ;;  %v2600_v41 = vadd.f32 %v2587_v61, %v6632_v21 }
 0x69a   :  { %v2548_v54 = vpop.f32.mrf.mxu0  ;;  %v2589_v23 = vpop.f32.mrf.mxu1 }
 0x69b   :  { %v3585_v5 = vmul.f32 -1.442695, %v2598_v56  ;;  %v2599_v29 = vadd.f32 %v2548_v54, %v6631_v50  ;;  %v3587_v63 = vmul.f32 -1.442695, %v2600_v41  ;;  %v2601_v44 = vadd.f32 %v2589_v23, %v6633_v6 }
 0x69c   :  { %v2550_v15 = vpop.f32.mrf.mxu0  ;;  %v2591_v37 = vpop.f32.mrf.mxu1 }
 0x69d   :  { %3759 = vpow2.f32 %v3585_v5  ;;  %v3586_v25 = vmul.f32 -1.442695, %v2599_v29 }
 0x69e   :  { %v2551_v2 = vpop.f32.mrf.mxu0  ;;  %v2592_v62 = vpop.f32.mrf.mxu1 }
 0x69f   :  { %3761 = vpow2.f32 %v3586_v25 }
 0x6a0   :  { %3763 = vpow2.f32 %v3584_v20 }
 0x6a1   :  { %3765 = vpow2.f32 %v3587_v63 }
 0x6a2   :  { %3767 = vtanh.f32 %v2601_v44  ;;  %v6635_v44 = vld [vmem:[#allocation125_spill] sm:$0xff] }
 0x6aa   :  { %v3760_v34 = vpop.eup %3759 }
 0x6ab   :  { %v2635_v22 = vadd.f32 1.0, %v3760_v34 }
 0x6ac   :  { %v3762_v36 = vpop.eup %3761 }
 0x6ad   :  { %3769 = vrcp.f32 %v2635_v22  ;;  %v2636_v56 = vadd.f32 1.0, %v3762_v36  ;;  %v3764_v54 = vpop.eup %3763  ;;  %v6636_v22 = vld [vmem:[#allocation126_spill] sm:$0xff]  ;;  %v6637_v36 = vld [vmem:[#allocation127_spill] sm:$0xff] }
 0x6ae   :  { %v3766_v5 = vpop.eup %3765  ;;  %v2613_v15 = vadd.f32 1.0, %v3764_v54  ;;  %v6639_v54 = vld [vmem:[#allocation129_spill] sm:$0xff] }
 0x6af   :  { %3771 = vrcp.f32 %v2636_v56  ;;  %v3768_v50 = vpop.eup %3767  ;;  %v2637_v55 = vadd.f32 1.0, %v3766_v5  ;;  %v6638_v56 = vld [vmem:[#allocation128_spill] sm:$0xff]  ;;  %v6640_v5 = vld [vmem:[#allocation130_spill] sm:$0xff] }
 0x6b0   :  { %3773 = vtanh.f32 %v5372_v7 }
 0x6b1   :  { %3775 = vrcp.f32 %v2613_v15  ;;  %v6643_v15 = vld [vmem:[#allocation133_spill] sm:$0xff] }
 0x6b2   :  { %3777 = vrcp.f32 %v2637_v55  ;;  %v6646_v55 = vld [vmem:[#allocation136_spill] sm:$0xff] }
 0x6ba   :  { %v3770_v29 = vpop.eup %3769 }
 0x6bb   :  { %v2646_v37 = vmul.f32 %v3770_v29, %v3768_v50  ;;  %v6641_v50 = vld [vmem:[#allocation131_spill] sm:$0xff]  ;;  %v6642_v29 = vld [vmem:[#allocation132_spill] sm:$0xff] }
 0x6bc   :  { %v3772_v61 = vpop.eup %3771 }
 0x6bd   :  { %v2645_v25 = vmul.f32 %v3772_v61, %v5230_v60  ;;  %v3774_v23 = vpop.eup %3773  ;;  %v6634_v60 = vld [vmem:[#allocation124_spill] sm:$0xff]  ;;  %v6645_v61 = vld [vmem:[#allocation135_spill] sm:$0xff] }
 0x6be   :  { %v3776_v2 = vpop.eup %3775 }
 0x6bf   :  { %v5380_v34 = vadd.f32 %v2646_v37, %v2645_v25  ;;  %v3778_v62 = vpop.eup %3777  ;;  %v2625_v41 = vmul.f32 %v3776_v2, %v3774_v23  ;;  %v6644_v37 = vld [vmem:[#allocation134_spill] sm:$0xff]  ;;  %v6647_v25 = vld [vmem:[#allocation137_spill] sm:$0xff]  ;;  %v6649_v2 = vld [vmem:[#allocation139_spill] sm:$0xff] }
 0x6c0   :  { %v6648_v23 = vld [vmem:[#allocation138_spill] sm:$0xff] }
 0x6c1   :  { %3779 = vtanh.f32 %v5380_v34  ;;  %v5383_v6 = vpack.c.bf16 %v2625_v41, %v2625_v41  ;;  %v6652_v41 = vld [vmem:[#allocation142_spill] sm:$0xff] }
 0x6ce   :  { %v3780_v21 = vpop.eup %3779 }
 0x6cf   :  { %v2649_v20 = vmul.f32 %v3780_v21, %v3778_v62  ;;  %v6650_v62 = vld [vmem:[#allocation140_spill] sm:$0xff]  ;;  %v6651_v21 = vld [vmem:[#allocation141_spill] sm:$0xff] }
 0x6d1   :  { %v2665_v63 = vpack.c.bf16 %v2649_v20, %v2649_v20  ;;  %v6653_v20 = vld [vmem:[#allocation143_spill] sm:$0xff] }
 0x6d3   :  { %2698 = vmatprep.mubr.bf16.mxu0 %v2665_v63  ;;  %2739 = vmatprep.mubr.bf16.mxu1 %v2665_v63 }
 0x6d4   :  { %2699 = vmatmul.mubr.bf16.vlgmr.msra.gmra.mxu0 %v5383_v6  ;;  %2740 = vmatmul.mubr.bf16.vlgmr.msra.gmra.mxu1 %v5383_v6 }
 0x6d5   :  { %2749 = vmatpush1.bf16.msra.mxu0 %v6243_v31  ;;  %2790 = vmatpush1.bf16.msra.mxu1 %v6244_v9 }
 0x6d6   :  { %2780 = vmatprep.mubr.bf16.mxu0 %v2665_v63  ;;  %2821 = vmatprep.mubr.bf16.mxu1 %v2665_v63  ;;  %v6654_v63 = vld [vmem:[#allocation144_spill] sm:$0xff] }
 0x6d7   :  { %2750 = vmatprep.subr.bf16.mxu0 %v6245_v11  ;;  %2791 = vmatprep.subr.bf16.mxu1 %v6246_v53 }
 0x6d9   :  { %2751 = vmatpush1.bf16.msra.mxu0 %v6247_v52  ;;  %2792 = vmatpush1.bf16.msra.mxu1 %v6248_v39 }
 0x6da   :  { %2752 = vmatprep.subr.bf16.mxu0 %v6249_v0  ;;  %2793 = vmatprep.subr.bf16.mxu1 %v6250_v38 }
 0x6dd   :  { %2753 = vmatpush1.bf16.msra.mxu0 %v6251_v3  ;;  %2794 = vmatpush1.bf16.msra.mxu1 %v6252_v12 }
 0x6de   :  { %2754 = vmatprep.subr.bf16.mxu0 %v6253_v28  ;;  %2795 = vmatprep.subr.bf16.mxu1 %v6254_v46 }
 0x6e1   :  { %2755 = vmatpush1.bf16.msra.mxu0 %v6255_v30  ;;  %2796 = vmatpush1.bf16.msra.mxu1 %v6256_v51 }
 0x6e2   :  { %2756 = vmatprep.subr.bf16.mxu0 %v6257_v58  ;;  %2797 = vmatprep.subr.bf16.mxu1 %v6258_v59 }
 0x6e5   :  { %2757 = vmatpush1.bf16.msra.mxu0 %v6259_v4  ;;  %2798 = vmatpush1.bf16.msra.mxu1 %v6346_v1 }
 0x6e6   :  { %2758 = vmatprep.subr.bf16.mxu0 %v6347_v35  ;;  %2799 = vmatprep.subr.bf16.mxu1 %v6348_v17 }
 0x6e9   :  { %2759 = vmatpush1.bf16.msra.mxu0 %v6349_v24  ;;  %2800 = vmatpush1.bf16.msra.mxu1 %v6350_v16 }
 0x6ea   :  { %2760 = vmatprep.subr.bf16.mxu0 %v6351_v42  ;;  %2801 = vmatprep.subr.bf16.mxu1 %v6352_v32 }
 0x6ed   :  { %2761 = vmatpush1.bf16.msra.mxu0 %v6353_v48  ;;  %2802 = vmatpush1.bf16.msra.mxu1 %v6354_v18 }
 0x6ee   :  { %2762 = vmatprep.subr.bf16.mxu0 %v6355_v10  ;;  %2803 = vmatprep.subr.bf16.mxu1 %v6356_v8 }
 0x6f1   :  { %2763 = vmatpush1.bf16.msra.mxu0 %v6357_v19  ;;  %2804 = vmatpush1.bf16.msra.mxu1 %v6358_v40 }
 0x6f2   :  { %2764 = vmatprep.subr.bf16.mxu0 %v6359_v49  ;;  %2805 = vmatprep.subr.bf16.mxu1 %v6360_v43 }
 0x6f5   :  { %2765 = vmatpush2.bf16.msra.mxu0 %v6361_v13  ;;  %2806 = vmatpush2.bf16.msra.mxu1 %v6362_v26 }
 0x6f6   :  { %2766 = vmatprep.subr.bf16.mxu0 %v6363_v27  ;;  %2807 = vmatprep.subr.bf16.mxu1 %v6364_v57 }
 0x6f9   :  { %2767 = vmatpush2.bf16.msra.mxu0 %v6365_v33  ;;  %2808 = vmatpush2.bf16.msra.mxu1 %v6280_v14 }
 0x6fa   :  { %2768 = vmatprep.subr.bf16.mxu0 %v6281_v47  ;;  %2809 = vmatprep.subr.bf16.mxu1 %v6282_v45 }
 0x6fd   :  { %2769 = vmatpush2.bf16.msra.mxu0 %v6634_v60  ;;  %2810 = vmatpush2.bf16.msra.mxu1 %v6635_v44 }
 0x6fe   :  { %2770 = vmatprep.subr.bf16.mxu0 %v6636_v22  ;;  %2811 = vmatprep.subr.bf16.mxu1 %v6637_v36 }
 0x701   :  { %2771 = vmatpush2.bf16.msra.mxu0 %v6638_v56  ;;  %2812 = vmatpush2.bf16.msra.mxu1 %v6639_v54 }
 0x702   :  { %2772 = vmatprep.subr.bf16.mxu0 %v6640_v5  ;;  %2813 = vmatprep.subr.bf16.mxu1 %v6641_v50 }
 0x705   :  { %2773 = vmatpush2.bf16.msra.mxu0 %v6642_v29  ;;  %2814 = vmatpush2.bf16.msra.mxu1 %v6643_v15  ;;  %v6723_v15 = vld [vmem:[#allocation163_spill] sm:$0xff] }
 0x706   :  { %2774 = vmatprep.subr.bf16.mxu0 %v6644_v37  ;;  %2815 = vmatprep.subr.bf16.mxu1 %v6645_v61  ;;  %v6655_v37 = vld [vmem:[#allocation145_spill] sm:$0xff]  ;;  %v6656_v61 = vld [vmem:[#allocation18_spill] sm:$0xff] }
 0x709   :  { %2775 = vmatpush2.bf16.msra.mxu0 %v6646_v55  ;;  %2816 = vmatpush2.bf16.msra.mxu1 %v6647_v25  ;;  %v6657_v55 = vld [vmem:[#allocation19_spill] sm:$0xff]  ;;  %v6722_v25 = vld [vmem:[#allocation162_spill] sm:$0xff] }
 0x70a   :  { %2776 = vmatprep.subr.bf16.mxu0 %v6648_v23  ;;  %2817 = vmatprep.subr.bf16.mxu1 %v6649_v2  ;;  %v6658_v2 = vld [vmem:[#allocation20_spill] sm:$0xff]  ;;  %v6667_v23 = vld [vmem:[#allocation29_spill] sm:$0xff] }
 0x70d   :  { %2777 = vmatpush2.bf16.msra.mxu0 %v6650_v62  ;;  %2818 = vmatpush2.bf16.msra.mxu1 %v6651_v21  ;;  %v6659_v62 = vld [vmem:[#allocation21_spill] sm:$0xff]  ;;  %v6660_v21 = vld [vmem:[#allocation22_spill] sm:$0xff] }
 0x70e   :  { %2778 = vmatprep.subr.bf16.mxu0 %v6652_v41  ;;  %2819 = vmatprep.subr.bf16.mxu1 %v6653_v20  ;;  %v6661_v41 = vld [vmem:[#allocation23_spill] sm:$0xff]  ;;  %v6662_v20 = vld [vmem:[#allocation24_spill] sm:$0xff] }
 0x711   :  { %2779 = vmatpush2.bf16.msra.mxu0 %v6654_v63  ;;  %2820 = vmatpush2.bf16.msra.mxu1 %v6655_v37  ;;  %v6663_v63 = vld [vmem:[#allocation25_spill] sm:$0xff]  ;;  %v6664_v37 = vld [vmem:[#allocation26_spill] sm:$0xff] }
 0x712   :  { %2902 = vmatprep.subr.bf16.mxu0 %v6656_v61  ;;  %2943 = vmatprep.subr.bf16.mxu1 %v6657_v55  ;;  %v6665_v61 = vld [vmem:[#allocation27_spill] sm:$0xff]  ;;  %v6666_v55 = vld [vmem:[#allocation28_spill] sm:$0xff] }
 0x714   :  { %2781 = vmatmul.mubr.bf16.vlgmr.msra.gmra.mxu0 %v5383_v6  ;;  %2822 = vmatmul.mubr.bf16.vlgmr.msra.gmra.mxu1 %v5383_v6  ;;  %v6668_v6 = vld [vmem:[#allocation30_spill] sm:$0xff] }
 0x715   :  { %2903 = vmatpush1.bf16.msra.mxu0 %v6658_v2  ;;  %2944 = vmatpush1.bf16.msra.mxu1 %v6659_v62  ;;  %v6669_v2 = vld [vmem:[#allocation31_spill] sm:$0xff]  ;;  %v6670_v62 = vld [vmem:[#allocation32_spill] sm:$0xff] }
 0x716   :  { %2904 = vmatprep.subr.bf16.mxu0 %v6660_v21  ;;  %2945 = vmatprep.subr.bf16.mxu1 %v6661_v41  ;;  %v6671_v21 = vld [vmem:[#allocation33_spill] sm:$0xff]  ;;  %v6672_v41 = vld [vmem:[#allocation34_spill] sm:$0xff] }
 0x719   :  { %2905 = vmatpush1.bf16.msra.mxu0 %v6662_v20  ;;  %2946 = vmatpush1.bf16.msra.mxu1 %v6663_v63  ;;  %v6673_v20 = vld [vmem:[#allocation35_spill] sm:$0xff]  ;;  %v6674_v63 = vld [vmem:[#allocation36_spill] sm:$0xff] }
 0x71a   :  { %2906 = vmatprep.subr.bf16.mxu0 %v6664_v37  ;;  %2947 = vmatprep.subr.bf16.mxu1 %v6665_v61  ;;  %v6675_v37 = vld [vmem:[#allocation37_spill] sm:$0xff]  ;;  %v6676_v61 = vld [vmem:[#allocation38_spill] sm:$0xff] }
 0x71d   :  { %2907 = vmatpush1.bf16.msra.mxu0 %v6666_v55  ;;  %2948 = vmatpush1.bf16.msra.mxu1 %v6667_v23  ;;  %v6677_v55 = vld [vmem:[#allocation39_spill] sm:$0xff]  ;;  %v6678_v23 = vld [vmem:[#allocation40_spill] sm:$0xff] }
 0x71e   :  { %2908 = vmatprep.subr.bf16.mxu0 %v6668_v6  ;;  %2949 = vmatprep.subr.bf16.mxu1 %v6669_v2  ;;  %v6679_v6 = vld [vmem:[#allocation41_spill] sm:$0xff]  ;;  %v6680_v2 = vld [vmem:[#allocation42_spill] sm:$0xff] }
 0x721   :  { %2909 = vmatpush1.bf16.msra.mxu0 %v6670_v62  ;;  %2950 = vmatpush1.bf16.msra.mxu1 %v6671_v21  ;;  %v6681_v62 = vld [vmem:[#allocation43_spill] sm:$0xff]  ;;  %v6682_v21 = vld [vmem:[#allocation44_spill] sm:$0xff] }
 0x722   :  { %2910 = vmatprep.subr.bf16.mxu0 %v6672_v41  ;;  %2951 = vmatprep.subr.bf16.mxu1 %v6673_v20  ;;  %v6683_v41 = vld [vmem:[#allocation45_spill] sm:$0xff]  ;;  %v6684_v20 = vld [vmem:[#allocation46_spill] sm:$0xff] }
 0x725   :  { %2911 = vmatpush1.bf16.msra.mxu0 %v6674_v63  ;;  %2952 = vmatpush1.bf16.msra.mxu1 %v6675_v37  ;;  %v6685_v63 = vld [vmem:[#allocation47_spill] sm:$0xff]  ;;  %v6686_v37 = vld [vmem:[#allocation48_spill] sm:$0xff] }
 0x726   :  { %2912 = vmatprep.subr.bf16.mxu0 %v6676_v61  ;;  %2953 = vmatprep.subr.bf16.mxu1 %v6677_v55  ;;  %v6687_v61 = vld [vmem:[#allocation49_spill] sm:$0xff]  ;;  %v6688_v55 = vld [vmem:[#allocation50_spill] sm:$0xff] }
 0x729   :  { %2913 = vmatpush1.bf16.msra.mxu0 %v6678_v23  ;;  %2954 = vmatpush1.bf16.msra.mxu1 %v6679_v6  ;;  %v6689_v23 = vld [vmem:[#allocation51_spill] sm:$0xff]  ;;  %v6690_v6 = vld [vmem:[#allocation52_spill] sm:$0xff] }
 0x72a   :  { %2914 = vmatprep.subr.bf16.mxu0 %v6680_v2  ;;  %2955 = vmatprep.subr.bf16.mxu1 %v6681_v62  ;;  %v6691_v2 = vld [vmem:[#allocation53_spill] sm:$0xff]  ;;  %v6692_v62 = vld [vmem:[#allocation54_spill] sm:$0xff] }
 0x72d   :  { %2915 = vmatpush1.bf16.msra.mxu0 %v6682_v21  ;;  %2956 = vmatpush1.bf16.msra.mxu1 %v6683_v41  ;;  %v6693_v21 = vld [vmem:[#allocation55_spill] sm:$0xff]  ;;  %v6694_v41 = vld [vmem:[#allocation56_spill] sm:$0xff] }
 0x72e   :  { %2916 = vmatprep.subr.bf16.mxu0 %v6684_v20  ;;  %2957 = vmatprep.subr.bf16.mxu1 %v6685_v63  ;;  %v6695_v20 = vld [vmem:[#allocation57_spill] sm:$0xff]  ;;  %v6696_v63 = vld [vmem:[#allocation58_spill] sm:$0xff] }
 0x731   :  { %2917 = vmatpush1.bf16.msra.mxu0 %v6686_v37  ;;  %2958 = vmatpush1.bf16.msra.mxu1 %v6687_v61  ;;  %v6697_v37 = vld [vmem:[#allocation59_spill] sm:$0xff]  ;;  %v6698_v61 = vld [vmem:[#allocation60_spill] sm:$0xff] }
 0x732   :  { %2918 = vmatprep.subr.bf16.mxu0 %v6688_v55  ;;  %2959 = vmatprep.subr.bf16.mxu1 %v6689_v23  ;;  %v6699_v55 = vld [vmem:[#allocation61_spill] sm:$0xff]  ;;  %v6700_v23 = vld [vmem:[#allocation62_spill] sm:$0xff] }
 0x735   :  { %2919 = vmatpush2.bf16.msra.mxu0 %v6690_v6  ;;  %2960 = vmatpush2.bf16.msra.mxu1 %v6691_v2  ;;  %v6701_v6 = vld [vmem:[#allocation63_spill] sm:$0xff]  ;;  %v6702_v2 = vld [vmem:[#allocation64_spill] sm:$0xff] }
 0x736   :  { %2920 = vmatprep.subr.bf16.mxu0 %v6692_v62  ;;  %2961 = vmatprep.subr.bf16.mxu1 %v6693_v21  ;;  %v6703_v62 = vld [vmem:[#allocation65_spill] sm:$0xff]  ;;  %v6704_v21 = vld [vmem:[#allocation66_spill] sm:$0xff] }
 0x739   :  { %2921 = vmatpush2.bf16.msra.mxu0 %v6694_v41  ;;  %2962 = vmatpush2.bf16.msra.mxu1 %v6695_v20  ;;  %v6705_v41 = vld [vmem:[#allocation67_spill] sm:$0xff]  ;;  %v6706_v20 = vld [vmem:[#allocation68_spill] sm:$0xff] }
 0x73a   :  { %2922 = vmatprep.subr.bf16.mxu0 %v6696_v63  ;;  %2963 = vmatprep.subr.bf16.mxu1 %v6697_v37  ;;  %v6707_v63 = vld [vmem:[#allocation69_spill] sm:$0xff]  ;;  %v6708_v37 = vld [vmem:[#allocation70_spill] sm:$0xff] }
 0x73d   :  { %2923 = vmatpush2.bf16.msra.mxu0 %v6698_v61  ;;  %2964 = vmatpush2.bf16.msra.mxu1 %v6699_v55  ;;  %v6709_v61 = vld [vmem:[#allocation71_spill] sm:$0xff]  ;;  %v6710_v55 = vld [vmem:[#allocation72_spill] sm:$0xff] }
 0x73e   :  { %2924 = vmatprep.subr.bf16.mxu0 %v6700_v23  ;;  %2965 = vmatprep.subr.bf16.mxu1 %v6701_v6  ;;  %v6711_v23 = vld [vmem:[#allocation73_spill] sm:$0xff]  ;;  %v6712_v6 = vld [vmem:[#allocation74_spill] sm:$0xff] }
 0x741   :  { %2925 = vmatpush2.bf16.msra.mxu0 %v6702_v2  ;;  %2966 = vmatpush2.bf16.msra.mxu1 %v6703_v62  ;;  %v6713_v2 = vld [vmem:[#allocation75_spill] sm:$0xff]  ;;  %v6714_v62 = vld [vmem:[#allocation76_spill] sm:$0xff] }
 0x742   :  { %2926 = vmatprep.subr.bf16.mxu0 %v6704_v21  ;;  %2967 = vmatprep.subr.bf16.mxu1 %v6705_v41  ;;  %v6715_v21 = vld [vmem:[#allocation77_spill] sm:$0xff]  ;;  %v6716_v41 = vld [vmem:[#allocation78_spill] sm:$0xff] }
 0x745   :  { %2927 = vmatpush2.bf16.msra.mxu0 %v6706_v20  ;;  %2968 = vmatpush2.bf16.msra.mxu1 %v6707_v63  ;;  %v6717_v20 = vld [vmem:[#allocation79_spill] sm:$0xff]  ;;  %v6718_v63 = vld [vmem:[#allocation80_spill] sm:$0xff] }
 0x746   :  { %2928 = vmatprep.subr.bf16.mxu0 %v6708_v37  ;;  %2969 = vmatprep.subr.bf16.mxu1 %v6709_v61  ;;  %v6719_v37 = vld [vmem:[#allocation81_spill] sm:$0xff]  ;;  %v6720_v61 = vld [vmem:[#allocation82_spill] sm:$0xff] }
 0x749   :  { %2929 = vmatpush2.bf16.msra.mxu0 %v6710_v55  ;;  %2970 = vmatpush2.bf16.msra.mxu1 %v6711_v23  ;;  %v6721_v55 = vld [vmem:[#allocation83_spill] sm:$0xff] }
 0x74a   :  { %2930 = vmatprep.subr.bf16.mxu0 %v6712_v6  ;;  %2971 = vmatprep.subr.bf16.mxu1 %v6713_v2 }
 0x74d   :  { %2931 = vmatpush2.bf16.msra.mxu0 %v6714_v62  ;;  %2972 = vmatpush2.bf16.msra.mxu1 %v6715_v21 }
 0x74e   :  { %2932 = vmatprep.subr.bf16.mxu0 %v6716_v41  ;;  %2973 = vmatprep.subr.bf16.mxu1 %v6717_v20  ;;  %v6724_v41 = vld [vmem:[#allocation164_spill] sm:$0xff]  ;;  %v6725_v20 = vld [vmem:[#allocation165_spill] sm:$0xff] }
 0x751   :  { %2933 = vmatpush2.bf16.msra.mxu0 %v6718_v63  ;;  %2974 = vmatpush2.bf16.msra.mxu1 %v6719_v37 }
 0x752   :  { %2984 = vmatprep.subr.bf16.mxu0 %v6720_v61  ;;  %3025 = vmatprep.subr.bf16.mxu1 %v6721_v55 }
 0x794   :  { %v2700_v23 = vpop.f32.mrf.mxu0  ;;  %v2741_v6 = vpop.f32.mrf.mxu1 }
 0x795   :  { %v2830_v2 = vadd.f32 %v2700_v23, %v6722_v25  ;;  %v2832_v62 = vadd.f32 %v2741_v6, %v6723_v15 }
 0x796   :  { %v2702_v29 = vpop.f32.mrf.mxu0  ;;  %v2743_v21 = vpop.f32.mrf.mxu1 }
 0x797   :  { %v3588_v50 = vmul.f32 -1.442695, %v2830_v2  ;;  %v2831_v5 = vadd.f32 %v2702_v29, %v6724_v41  ;;  %v2833_v54 = vadd.f32 %v2743_v21, %v6725_v20  ;;  %v6727_v20 = vld [vmem:[#allocation184_spill] sm:$0xff] }
 0x798   :  { %v2704_v63 = vpop.f32.mrf.mxu0  ;;  %v2745_v56 = vpop.f32.mrf.mxu1 }
 0x799   :  { %3781 = vpow2.f32 %v3588_v50  ;;  %v3589_v37 = vmul.f32 -1.442695, %v2831_v5  ;;  %v6726_v50 = vld [vmem:[#allocation182_spill] sm:$0xff] }
 0x79a   :  { %v2705_v61 = vpop.f32.mrf.mxu0  ;;  %v2746_v36 = vpop.f32.mrf.mxu1 }
 0x79b   :  { %3783 = vpow2.f32 %v3589_v37 }
 0x79c   :  { %3785 = vtanh.f32 %v2833_v54 }
 0x7a6   :  { %v3782_v55 = vpop.eup %3781 }
 0x7a7   :  { %v2847_v22 = vadd.f32 1.0, %v3782_v55 }
 0x7a8   :  { %v3784_v44 = vpop.eup %3783 }
 0x7a9   :  { %3787 = vrcp.f32 %v2847_v22  ;;  %v2848_v15 = vadd.f32 1.0, %v3784_v44  ;;  %v3786_v25 = vpop.eup %3785 }
 0x7ab   :  { %3789 = vrcp.f32 %v2848_v15 }
 0x7b6   :  { %v3788_v23 = vpop.eup %3787 }
 0x7b7   :  { %v2858_v2 = vmul.f32 %v3788_v23, %v3786_v25  ;;  %v6728_v25 = vld [vmem:[#allocation183_spill] sm:$0xff]  ;;  %v3590_v23 = vmul.f32 -1.442695, %v2832_v62 }
 0x7b8   :  { %v3790_v29 = vpop.eup %3789 }
 0x7b9   :  { %v2857_v21 = vmul.f32 %v3790_v29, %v5372_v7  ;;  %v6729_v29 = vld [vmem:[#allocation185_spill] sm:$0xff] }
 0x7bb   :  { %v5522_v41 = vadd.f32 %v2858_v2, %v2857_v21 }
 0x7d4   :  { %v2782_v56 = vpop.f32.mrf.mxu0  ;;  %v2823_v5 = vpop.f32.mrf.mxu1 }
 0x7d5   :  { %v2834_v36 = vadd.f32 %v2782_v56, %v6726_v50  ;;  %v2836_v7 = vadd.f32 %v2823_v5, %v6728_v25 }
 0x7d6   :  { %v2784_v37 = vpop.f32.mrf.mxu0  ;;  %v2825_v61 = vpop.f32.mrf.mxu1 }
 0x7d7   :  { %v3591_v55 = vmul.f32 -1.442695, %v2834_v36  ;;  %v2835_v54 = vadd.f32 %v2784_v37, %v6727_v20  ;;  %v3593_v2 = vmul.f32 -1.442695, %v2836_v7  ;;  %v2837_v21 = vadd.f32 %v2825_v61, %v6729_v29 }
 0x7d8   :  { %v2786_v22 = vpop.f32.mrf.mxu0  ;;  %v2827_v44 = vpop.f32.mrf.mxu1 }
 0x7d9   :  { %3791 = vpow2.f32 %v3591_v55  ;;  %v3592_v63 = vmul.f32 -1.442695, %v2835_v54 }
 0x7da   :  { %v2787_v6 = vpop.f32.mrf.mxu0  ;;  %v2828_v15 = vpop.f32.mrf.mxu1 }
 0x7db   :  { %3793 = vpow2.f32 %v3592_v63 }
 0x7dc   :  { %3795 = vpow2.f32 %v3590_v23 }
 0x7dd   :  { %3797 = vpow2.f32 %v3593_v2 }
 0x7de   :  { %3799 = vtanh.f32 %v2837_v21  ;;  %v6731_v21 = vld [vmem:[#allocation125_spill] sm:$0xff] }
 0x7e6   :  { %v3792_v60 = vpop.eup %3791 }
 0x7e7   :  { %v2871_v56 = vadd.f32 1.0, %v3792_v60 }
 0x7e8   :  { %v3794_v50 = vpop.eup %3793 }
 0x7e9   :  { %3801 = vrcp.f32 %v2871_v56  ;;  %v2872_v36 = vadd.f32 1.0, %v3794_v50  ;;  %v3796_v37 = vpop.eup %3795  ;;  %v6732_v56 = vld [vmem:[#allocation126_spill] sm:$0xff]  ;;  %v6733_v50 = vld [vmem:[#allocation127_spill] sm:$0xff] }
 0x7ea   :  { %v3798_v55 = vpop.eup %3797  ;;  %v2849_v22 = vadd.f32 1.0, %v3796_v37  ;;  %v6735_v37 = vld [vmem:[#allocation129_spill] sm:$0xff] }
 0x7eb   :  { %3803 = vrcp.f32 %v2872_v36  ;;  %v3800_v20 = vpop.eup %3799  ;;  %v2873_v62 = vadd.f32 1.0, %v3798_v55  ;;  %v6734_v36 = vld [vmem:[#allocation128_spill] sm:$0xff]  ;;  %v6736_v55 = vld [vmem:[#allocation130_spill] sm:$0xff] }
 0x7ec   :  { %3805 = vtanh.f32 %v5522_v41 }
 0x7ed   :  { %3807 = vrcp.f32 %v2849_v22  ;;  %v6739_v22 = vld [vmem:[#allocation133_spill] sm:$0xff] }
 0x7ee   :  { %3809 = vrcp.f32 %v2873_v62  ;;  %v6742_v62 = vld [vmem:[#allocation136_spill] sm:$0xff] }
 0x7f6   :  { %v3802_v54 = vpop.eup %3801 }
 0x7f7   :  { %v2882_v44 = vmul.f32 %v3802_v54, %v3800_v20  ;;  %v6737_v20 = vld [vmem:[#allocation131_spill] sm:$0xff]  ;;  %v6738_v54 = vld [vmem:[#allocation132_spill] sm:$0xff] }
 0x7f8   :  { %v3804_v5 = vpop.eup %3803 }
 0x7f9   :  { %v2881_v63 = vmul.f32 %v3804_v5, %v5380_v34  ;;  %v3806_v61 = vpop.eup %3805  ;;  %v6730_v34 = vld [vmem:[#allocation124_spill] sm:$0xff]  ;;  %v6741_v5 = vld [vmem:[#allocation135_spill] sm:$0xff] }
 0x7fa   :  { %v3808_v6 = vpop.eup %3807 }
 0x7fb   :  { %v5530_v60 = vadd.f32 %v2882_v44, %v2881_v63  ;;  %v3810_v15 = vpop.eup %3809  ;;  %v2861_v7 = vmul.f32 %v3808_v6, %v3806_v61  ;;  %v6740_v44 = vld [vmem:[#allocation134_spill] sm:$0xff]  ;;  %v6743_v63 = vld [vmem:[#allocation137_spill] sm:$0xff]  ;;  %v6745_v6 = vld [vmem:[#allocation139_spill] sm:$0xff] }
 0x7fc   :  { %v6744_v61 = vld [vmem:[#allocation138_spill] sm:$0xff] }
 0x7fd   :  { %3811 = vtanh.f32 %v5530_v60  ;;  %v5533_v29 = vpack.c.bf16 %v2861_v7, %v2861_v7  ;;  %v6748_v7 = vld [vmem:[#allocation142_spill] sm:$0xff] }
 0x80a   :  { %v3812_v25 = vpop.eup %3811 }
 0x80b   :  { %v2885_v23 = vmul.f32 %v3812_v25, %v3810_v15  ;;  %v6746_v15 = vld [vmem:[#allocation140_spill] sm:$0xff]  ;;  %v6747_v25 = vld [vmem:[#allocation141_spill] sm:$0xff] }
 0x80d   :  { %v2901_v2 = vpack.c.bf16 %v2885_v23, %v2885_v23  ;;  %v6749_v23 = vld [vmem:[#allocation143_spill] sm:$0xff] }
 0x80f   :  { %2934 = vmatprep.mubr.bf16.mxu0 %v2901_v2  ;;  %2975 = vmatprep.mubr.bf16.mxu1 %v2901_v2 }
 0x810   :  { %2935 = vmatmul.mubr.bf16.vlgmr.msra.gmra.mxu0 %v5533_v29  ;;  %2976 = vmatmul.mubr.bf16.vlgmr.msra.gmra.mxu1 %v5533_v29 }
 0x811   :  { %2985 = vmatpush1.bf16.msra.mxu0 %v6243_v31  ;;  %3026 = vmatpush1.bf16.msra.mxu1 %v6244_v9 }
 0x812   :  { %3016 = vmatprep.mubr.bf16.mxu0 %v2901_v2  ;;  %3057 = vmatprep.mubr.bf16.mxu1 %v2901_v2  ;;  %v6750_v2 = vld [vmem:[#allocation144_spill] sm:$0xff] }
 0x813   :  { %2986 = vmatprep.subr.bf16.mxu0 %v6245_v11  ;;  %3027 = vmatprep.subr.bf16.mxu1 %v6246_v53 }
 0x815   :  { %2987 = vmatpush1.bf16.msra.mxu0 %v6247_v52  ;;  %3028 = vmatpush1.bf16.msra.mxu1 %v6248_v39 }
 0x816   :  { %2988 = vmatprep.subr.bf16.mxu0 %v6249_v0  ;;  %3029 = vmatprep.subr.bf16.mxu1 %v6250_v38 }
 0x819   :  { %2989 = vmatpush1.bf16.msra.mxu0 %v6251_v3  ;;  %3030 = vmatpush1.bf16.msra.mxu1 %v6252_v12 }
 0x81a   :  { %2990 = vmatprep.subr.bf16.mxu0 %v6253_v28  ;;  %3031 = vmatprep.subr.bf16.mxu1 %v6254_v46 }
 0x81d   :  { %2991 = vmatpush1.bf16.msra.mxu0 %v6255_v30  ;;  %3032 = vmatpush1.bf16.msra.mxu1 %v6256_v51 }
 0x81e   :  { %2992 = vmatprep.subr.bf16.mxu0 %v6257_v58  ;;  %3033 = vmatprep.subr.bf16.mxu1 %v6258_v59 }
 0x821   :  { %2993 = vmatpush1.bf16.msra.mxu0 %v6259_v4  ;;  %3034 = vmatpush1.bf16.msra.mxu1 %v6346_v1 }
 0x822   :  { %2994 = vmatprep.subr.bf16.mxu0 %v6347_v35  ;;  %3035 = vmatprep.subr.bf16.mxu1 %v6348_v17 }
 0x825   :  { %2995 = vmatpush1.bf16.msra.mxu0 %v6349_v24  ;;  %3036 = vmatpush1.bf16.msra.mxu1 %v6350_v16 }
 0x826   :  { %2996 = vmatprep.subr.bf16.mxu0 %v6351_v42  ;;  %3037 = vmatprep.subr.bf16.mxu1 %v6352_v32 }
 0x829   :  { %2997 = vmatpush1.bf16.msra.mxu0 %v6353_v48  ;;  %3038 = vmatpush1.bf16.msra.mxu1 %v6354_v18 }
 0x82a   :  { %2998 = vmatprep.subr.bf16.mxu0 %v6355_v10  ;;  %3039 = vmatprep.subr.bf16.mxu1 %v6356_v8 }
 0x82d   :  { %2999 = vmatpush1.bf16.msra.mxu0 %v6357_v19  ;;  %3040 = vmatpush1.bf16.msra.mxu1 %v6358_v40 }
 0x82e   :  { %3000 = vmatprep.subr.bf16.mxu0 %v6359_v49  ;;  %3041 = vmatprep.subr.bf16.mxu1 %v6360_v43 }
 0x831   :  { %3001 = vmatpush2.bf16.msra.mxu0 %v6361_v13  ;;  %3042 = vmatpush2.bf16.msra.mxu1 %v6362_v26 }
 0x832   :  { %3002 = vmatprep.subr.bf16.mxu0 %v6363_v27  ;;  %3043 = vmatprep.subr.bf16.mxu1 %v6364_v57 }
 0x835   :  { %3003 = vmatpush2.bf16.msra.mxu0 %v6365_v33  ;;  %3044 = vmatpush2.bf16.msra.mxu1 %v6280_v14 }
 0x836   :  { %3004 = vmatprep.subr.bf16.mxu0 %v6281_v47  ;;  %3045 = vmatprep.subr.bf16.mxu1 %v6282_v45 }
 0x839   :  { %3005 = vmatpush2.bf16.msra.mxu0 %v6730_v34  ;;  %3046 = vmatpush2.bf16.msra.mxu1 %v6731_v21 }
 0x83a   :  { %3006 = vmatprep.subr.bf16.mxu0 %v6732_v56  ;;  %3047 = vmatprep.subr.bf16.mxu1 %v6733_v50 }
 0x83d   :  { %3007 = vmatpush2.bf16.msra.mxu0 %v6734_v36  ;;  %3048 = vmatpush2.bf16.msra.mxu1 %v6735_v37 }
 0x83e   :  { %3008 = vmatprep.subr.bf16.mxu0 %v6736_v55  ;;  %3049 = vmatprep.subr.bf16.mxu1 %v6737_v20 }
 0x841   :  { %3009 = vmatpush2.bf16.msra.mxu0 %v6738_v54  ;;  %3050 = vmatpush2.bf16.msra.mxu1 %v6739_v22  ;;  %v6819_v22 = vld [vmem:[#allocation167_spill] sm:$0xff] }
 0x842   :  { %3010 = vmatprep.subr.bf16.mxu0 %v6740_v44  ;;  %3051 = vmatprep.subr.bf16.mxu1 %v6741_v5  ;;  %v6751_v44 = vld [vmem:[#allocation145_spill] sm:$0xff]  ;;  %v6752_v5 = vld [vmem:[#allocation18_spill] sm:$0xff] }
 0x845   :  { %3011 = vmatpush2.bf16.msra.mxu0 %v6742_v62  ;;  %3052 = vmatpush2.bf16.msra.mxu1 %v6743_v63  ;;  %v6753_v62 = vld [vmem:[#allocation19_spill] sm:$0xff]  ;;  %v6818_v63 = vld [vmem:[#allocation166_spill] sm:$0xff] }
 0x846   :  { %3012 = vmatprep.subr.bf16.mxu0 %v6744_v61  ;;  %3053 = vmatprep.subr.bf16.mxu1 %v6745_v6  ;;  %v6754_v6 = vld [vmem:[#allocation20_spill] sm:$0xff]  ;;  %v6763_v61 = vld [vmem:[#allocation29_spill] sm:$0xff] }
 0x849   :  { %3013 = vmatpush2.bf16.msra.mxu0 %v6746_v15  ;;  %3054 = vmatpush2.bf16.msra.mxu1 %v6747_v25  ;;  %v6755_v15 = vld [vmem:[#allocation21_spill] sm:$0xff]  ;;  %v6756_v25 = vld [vmem:[#allocation22_spill] sm:$0xff] }
 0x84a   :  { %3014 = vmatprep.subr.bf16.mxu0 %v6748_v7  ;;  %3055 = vmatprep.subr.bf16.mxu1 %v6749_v23  ;;  %v6757_v7 = vld [vmem:[#allocation23_spill] sm:$0xff]  ;;  %v6758_v23 = vld [vmem:[#allocation24_spill] sm:$0xff] }
 0x84d   :  { %3015 = vmatpush2.bf16.msra.mxu0 %v6750_v2  ;;  %3056 = vmatpush2.bf16.msra.mxu1 %v6751_v44  ;;  %v6759_v2 = vld [vmem:[#allocation25_spill] sm:$0xff]  ;;  %v6760_v44 = vld [vmem:[#allocation26_spill] sm:$0xff] }
 0x84e   :  { %3137 = vmatprep.subr.bf16.mxu0 %v6752_v5  ;;  %3178 = vmatprep.subr.bf16.mxu1 %v6753_v62  ;;  %v6761_v5 = vld [vmem:[#allocation27_spill] sm:$0xff]  ;;  %v6762_v62 = vld [vmem:[#allocation28_spill] sm:$0xff] }
 0x850   :  { %3017 = vmatmul.mubr.bf16.vlgmr.msra.gmra.mxu0 %v5533_v29  ;;  %3058 = vmatmul.mubr.bf16.vlgmr.msra.gmra.mxu1 %v5533_v29  ;;  %v6764_v29 = vld [vmem:[#allocation30_spill] sm:$0xff] }
 0x851   :  { %3138 = vmatpush1.bf16.msra.mxu0 %v6754_v6  ;;  %3179 = vmatpush1.bf16.msra.mxu1 %v6755_v15  ;;  %v6765_v6 = vld [vmem:[#allocation31_spill] sm:$0xff]  ;;  %v6766_v15 = vld [vmem:[#allocation32_spill] sm:$0xff] }
 0x852   :  { %3139 = vmatprep.subr.bf16.mxu0 %v6756_v25  ;;  %3180 = vmatprep.subr.bf16.mxu1 %v6757_v7  ;;  %v6767_v25 = vld [vmem:[#allocation33_spill] sm:$0xff]  ;;  %v6768_v7 = vld [vmem:[#allocation34_spill] sm:$0xff] }
 0x855   :  { %3140 = vmatpush1.bf16.msra.mxu0 %v6758_v23  ;;  %3181 = vmatpush1.bf16.msra.mxu1 %v6759_v2  ;;  %v6769_v23 = vld [vmem:[#allocation35_spill] sm:$0xff]  ;;  %v6770_v2 = vld [vmem:[#allocation36_spill] sm:$0xff] }
 0x856   :  { %3141 = vmatprep.subr.bf16.mxu0 %v6760_v44  ;;  %3182 = vmatprep.subr.bf16.mxu1 %v6761_v5  ;;  %v6771_v44 = vld [vmem:[#allocation37_spill] sm:$0xff]  ;;  %v6772_v5 = vld [vmem:[#allocation38_spill] sm:$0xff] }
 0x859   :  { %3142 = vmatpush1.bf16.msra.mxu0 %v6762_v62  ;;  %3183 = vmatpush1.bf16.msra.mxu1 %v6763_v61  ;;  %v6773_v62 = vld [vmem:[#allocation39_spill] sm:$0xff]  ;;  %v6774_v61 = vld [vmem:[#allocation40_spill] sm:$0xff] }
 0x85a   :  { %3143 = vmatprep.subr.bf16.mxu0 %v6764_v29  ;;  %3184 = vmatprep.subr.bf16.mxu1 %v6765_v6  ;;  %v6775_v29 = vld [vmem:[#allocation41_spill] sm:$0xff]  ;;  %v6776_v6 = vld [vmem:[#allocation42_spill] sm:$0xff] }
 0x85d   :  { %3144 = vmatpush1.bf16.msra.mxu0 %v6766_v15  ;;  %3185 = vmatpush1.bf16.msra.mxu1 %v6767_v25  ;;  %v6777_v15 = vld [vmem:[#allocation43_spill] sm:$0xff]  ;;  %v6778_v25 = vld [vmem:[#allocation44_spill] sm:$0xff] }
 0x85e   :  { %3145 = vmatprep.subr.bf16.mxu0 %v6768_v7  ;;  %3186 = vmatprep.subr.bf16.mxu1 %v6769_v23  ;;  %v6779_v7 = vld [vmem:[#allocation45_spill] sm:$0xff]  ;;  %v6780_v23 = vld [vmem:[#allocation46_spill] sm:$0xff] }
 0x861   :  { %3146 = vmatpush1.bf16.msra.mxu0 %v6770_v2  ;;  %3187 = vmatpush1.bf16.msra.mxu1 %v6771_v44  ;;  %v6781_v2 = vld [vmem:[#allocation47_spill] sm:$0xff]  ;;  %v6782_v44 = vld [vmem:[#allocation48_spill] sm:$0xff] }
 0x862   :  { %3147 = vmatprep.subr.bf16.mxu0 %v6772_v5  ;;  %3188 = vmatprep.subr.bf16.mxu1 %v6773_v62  ;;  %v6783_v5 = vld [vmem:[#allocation49_spill] sm:$0xff]  ;;  %v6784_v62 = vld [vmem:[#allocation50_spill] sm:$0xff] }
 0x865   :  { %3148 = vmatpush1.bf16.msra.mxu0 %v6774_v61  ;;  %3189 = vmatpush1.bf16.msra.mxu1 %v6775_v29  ;;  %v6785_v61 = vld [vmem:[#allocation51_spill] sm:$0xff]  ;;  %v6786_v29 = vld [vmem:[#allocation52_spill] sm:$0xff] }
 0x866   :  { %3149 = vmatprep.subr.bf16.mxu0 %v6776_v6  ;;  %3190 = vmatprep.subr.bf16.mxu1 %v6777_v15  ;;  %v6787_v6 = vld [vmem:[#allocation53_spill] sm:$0xff]  ;;  %v6788_v15 = vld [vmem:[#allocation54_spill] sm:$0xff] }
 0x869   :  { %3150 = vmatpush1.bf16.msra.mxu0 %v6778_v25  ;;  %3191 = vmatpush1.bf16.msra.mxu1 %v6779_v7  ;;  %v6789_v25 = vld [vmem:[#allocation55_spill] sm:$0xff]  ;;  %v6790_v7 = vld [vmem:[#allocation56_spill] sm:$0xff] }
 0x86a   :  { %3151 = vmatprep.subr.bf16.mxu0 %v6780_v23  ;;  %3192 = vmatprep.subr.bf16.mxu1 %v6781_v2  ;;  %v6791_v23 = vld [vmem:[#allocation57_spill] sm:$0xff]  ;;  %v6792_v2 = vld [vmem:[#allocation58_spill] sm:$0xff] }
 0x86d   :  { %3152 = vmatpush1.bf16.msra.mxu0 %v6782_v44  ;;  %3193 = vmatpush1.bf16.msra.mxu1 %v6783_v5  ;;  %v6793_v44 = vld [vmem:[#allocation59_spill] sm:$0xff]  ;;  %v6794_v5 = vld [vmem:[#allocation60_spill] sm:$0xff] }
 0x86e   :  { %3153 = vmatprep.subr.bf16.mxu0 %v6784_v62  ;;  %3194 = vmatprep.subr.bf16.mxu1 %v6785_v61  ;;  %v6795_v62 = vld [vmem:[#allocation61_spill] sm:$0xff]  ;;  %v6796_v61 = vld [vmem:[#allocation62_spill] sm:$0xff] }
 0x871   :  { %3154 = vmatpush2.bf16.msra.mxu0 %v6786_v29  ;;  %3195 = vmatpush2.bf16.msra.mxu1 %v6787_v6  ;;  %v6797_v29 = vld [vmem:[#allocation63_spill] sm:$0xff]  ;;  %v6798_v6 = vld [vmem:[#allocation64_spill] sm:$0xff] }
 0x872   :  { %3155 = vmatprep.subr.bf16.mxu0 %v6788_v15  ;;  %3196 = vmatprep.subr.bf16.mxu1 %v6789_v25  ;;  %v6799_v15 = vld [vmem:[#allocation65_spill] sm:$0xff]  ;;  %v6800_v25 = vld [vmem:[#allocation66_spill] sm:$0xff] }
 0x875   :  { %3156 = vmatpush2.bf16.msra.mxu0 %v6790_v7  ;;  %3197 = vmatpush2.bf16.msra.mxu1 %v6791_v23  ;;  %v6801_v7 = vld [vmem:[#allocation67_spill] sm:$0xff]  ;;  %v6802_v23 = vld [vmem:[#allocation68_spill] sm:$0xff] }
 0x876   :  { %3157 = vmatprep.subr.bf16.mxu0 %v6792_v2  ;;  %3198 = vmatprep.subr.bf16.mxu1 %v6793_v44  ;;  %v6803_v2 = vld [vmem:[#allocation69_spill] sm:$0xff]  ;;  %v6804_v44 = vld [vmem:[#allocation70_spill] sm:$0xff] }
 0x879   :  { %3158 = vmatpush2.bf16.msra.mxu0 %v6794_v5  ;;  %3199 = vmatpush2.bf16.msra.mxu1 %v6795_v62  ;;  %v6805_v5 = vld [vmem:[#allocation71_spill] sm:$0xff]  ;;  %v6806_v62 = vld [vmem:[#allocation72_spill] sm:$0xff] }
 0x87a   :  { %3159 = vmatprep.subr.bf16.mxu0 %v6796_v61  ;;  %3200 = vmatprep.subr.bf16.mxu1 %v6797_v29  ;;  %v6807_v61 = vld [vmem:[#allocation73_spill] sm:$0xff]  ;;  %v6808_v29 = vld [vmem:[#allocation74_spill] sm:$0xff] }
 0x87d   :  { %3160 = vmatpush2.bf16.msra.mxu0 %v6798_v6  ;;  %3201 = vmatpush2.bf16.msra.mxu1 %v6799_v15  ;;  %v6809_v6 = vld [vmem:[#allocation75_spill] sm:$0xff]  ;;  %v6810_v15 = vld [vmem:[#allocation76_spill] sm:$0xff] }
 0x87e   :  { %3161 = vmatprep.subr.bf16.mxu0 %v6800_v25  ;;  %3202 = vmatprep.subr.bf16.mxu1 %v6801_v7  ;;  %v6811_v25 = vld [vmem:[#allocation77_spill] sm:$0xff]  ;;  %v6812_v7 = vld [vmem:[#allocation78_spill] sm:$0xff] }
 0x881   :  { %3162 = vmatpush2.bf16.msra.mxu0 %v6802_v23  ;;  %3203 = vmatpush2.bf16.msra.mxu1 %v6803_v2  ;;  %v6813_v23 = vld [vmem:[#allocation79_spill] sm:$0xff]  ;;  %v6814_v2 = vld [vmem:[#allocation80_spill] sm:$0xff] }
 0x882   :  { %3163 = vmatprep.subr.bf16.mxu0 %v6804_v44  ;;  %3204 = vmatprep.subr.bf16.mxu1 %v6805_v5  ;;  %v6815_v44 = vld [vmem:[#allocation81_spill] sm:$0xff]  ;;  %v6816_v5 = vld [vmem:[#allocation82_spill] sm:$0xff] }
 0x885   :  { %3164 = vmatpush2.bf16.msra.mxu0 %v6806_v62  ;;  %3205 = vmatpush2.bf16.msra.mxu1 %v6807_v61  ;;  %v6817_v62 = vld [vmem:[#allocation83_spill] sm:$0xff] }
 0x886   :  { %3165 = vmatprep.subr.bf16.mxu0 %v6808_v29  ;;  %3206 = vmatprep.subr.bf16.mxu1 %v6809_v6 }
 0x889   :  { %3166 = vmatpush2.bf16.msra.mxu0 %v6810_v15  ;;  %3207 = vmatpush2.bf16.msra.mxu1 %v6811_v25 }
 0x88a   :  { %3167 = vmatprep.subr.bf16.mxu0 %v6812_v7  ;;  %3208 = vmatprep.subr.bf16.mxu1 %v6813_v23  ;;  %v6820_v7 = vld [vmem:[#allocation168_spill] sm:$0xff]  ;;  %v6821_v23 = vld [vmem:[#allocation169_spill] sm:$0xff] }
 0x88d   :  { %3168 = vmatpush2.bf16.msra.mxu0 %v6814_v2  ;;  %3209 = vmatpush2.bf16.msra.mxu1 %v6815_v44 }
 0x88e   :  { %3219 = vmatprep.subr.bf16.mxu0 %v6816_v5  ;;  %3260 = vmatprep.subr.bf16.mxu1 %v6817_v62 }
 0x8d0   :  { %v2936_v61 = vpop.f32.mrf.mxu0  ;;  %v2977_v29 = vpop.f32.mrf.mxu1 }
 0x8d1   :  { %v3066_v6 = vadd.f32 %v2936_v61, %v6818_v63  ;;  %v3068_v15 = vadd.f32 %v2977_v29, %v6819_v22 }
 0x8d2   :  { %v2938_v54 = vpop.f32.mrf.mxu0  ;;  %v2979_v25 = vpop.f32.mrf.mxu1 }
 0x8d3   :  { %v3594_v20 = vmul.f32 -1.442695, %v3066_v6  ;;  %v3067_v55 = vadd.f32 %v2938_v54, %v6820_v7  ;;  %v3069_v37 = vadd.f32 %v2979_v25, %v6821_v23 }
 0x8d4   :  { %v2940_v2 = vpop.f32.mrf.mxu0  ;;  %v2981_v36 = vpop.f32.mrf.mxu1 }
 0x8d5   :  { %3813 = vpow2.f32 %v3594_v20  ;;  %v3595_v44 = vmul.f32 -1.442695, %v3067_v55  ;;  %v6822_v20 = vld [vmem:[#allocation178_spill] sm:$0xff] }
 0x8d6   :  { %v2941_v5 = vpop.f32.mrf.mxu0  ;;  %v2982_v50 = vpop.f32.mrf.mxu1 }
 0x8d7   :  { %3815 = vpow2.f32 %v3595_v44  ;;  %v6823_v44 = vld [vmem:[#allocation180_spill] sm:$0xff] }
 0x8d8   :  { %3817 = vtanh.f32 %v3069_v37 }
 0x8e2   :  { %v3814_v62 = vpop.eup %3813 }
 0x8e3   :  { %v3083_v56 = vadd.f32 1.0, %v3814_v62 }
 0x8e4   :  { %v3816_v21 = vpop.eup %3815 }
 0x8e5   :  { %3819 = vrcp.f32 %v3083_v56  ;;  %v3084_v22 = vadd.f32 1.0, %v3816_v21  ;;  %v3818_v63 = vpop.eup %3817 }
 0x8e7   :  { %3821 = vrcp.f32 %v3084_v22 }
 0x8f2   :  { %v3820_v61 = vpop.eup %3819 }
 0x8f3   :  { %v3094_v29 = vmul.f32 %v3820_v61, %v3818_v63  ;;  %v6824_v63 = vld [vmem:[#allocation179_spill] sm:$0xff]  ;;  %v3596_v61 = vmul.f32 -1.442695, %v3068_v15 }
 0x8f4   :  { %v3822_v54 = vpop.eup %3821 }
 0x8f5   :  { %v3093_v6 = vmul.f32 %v3822_v54, %v5522_v41  ;;  %v6825_v54 = vld [vmem:[#allocation181_spill] sm:$0xff] }
 0x8f7   :  { %v5672_v25 = vadd.f32 %v3094_v29, %v3093_v6 }
 0x910   :  { %v3018_v36 = vpop.f32.mrf.mxu0  ;;  %v3059_v55 = vpop.f32.mrf.mxu1 }
 0x911   :  { %v3070_v50 = vadd.f32 %v3018_v36, %v6822_v20  ;;  %v3072_v41 = vadd.f32 %v3059_v55, %v6824_v63 }
 0x912   :  { %v3020_v7 = vpop.f32.mrf.mxu0  ;;  %v3061_v23 = vpop.f32.mrf.mxu1 }
 0x913   :  { %v3597_v2 = vmul.f32 -1.442695, %v3070_v50  ;;  %v3071_v37 = vadd.f32 %v3020_v7, %v6823_v44  ;;  %v3599_v29 = vmul.f32 -1.442695, %v3072_v41  ;;  %v3073_v6 = vadd.f32 %v3061_v23, %v6825_v54 }
 0x914   :  { %v3022_v56 = vpop.f32.mrf.mxu0  ;;  %v3063_v21 = vpop.f32.mrf.mxu1 }
 0x915   :  { %3823 = vpow2.f32 %v3597_v2  ;;  %v3598_v5 = vmul.f32 -1.442695, %v3071_v37 }
 0x916   :  { %v3023_v62 = vpop.f32.mrf.mxu0  ;;  %v3064_v22 = vpop.f32.mrf.mxu1 }
 0x917   :  { %3825 = vpow2.f32 %v3598_v5 }
 0x918   :  { %3827 = vpow2.f32 %v3596_v61 }
 0x919   :  { %3829 = vpow2.f32 %v3599_v29 }
 0x91a   :  { %3831 = vtanh.f32 %v3073_v6 }
 0x922   :  { %v3824_v34 = vpop.eup %3823 }
 0x923   :  { %v3107_v36 = vadd.f32 1.0, %v3824_v34 }
 0x924   :  { %v3826_v20 = vpop.eup %3825 }
 0x925   :  { %3833 = vrcp.f32 %v3107_v36  ;;  %v3108_v50 = vadd.f32 1.0, %v3826_v20  ;;  %v3828_v7 = vpop.eup %3827 }
 0x926   :  { %v3830_v2 = vpop.eup %3829  ;;  %v3085_v56 = vadd.f32 1.0, %v3828_v7 }
 0x927   :  { %3835 = vrcp.f32 %v3108_v50  ;;  %v3832_v44 = vpop.eup %3831  ;;  %v3109_v15 = vadd.f32 1.0, %v3830_v2 }
 0x928   :  { %3837 = vtanh.f32 %v5672_v25 }
 0x929   :  { %3839 = vrcp.f32 %v3085_v56 }
 0x92a   :  { %3841 = vrcp.f32 %v3109_v15 }
 0x932   :  { %v3834_v37 = vpop.eup %3833 }
 0x933   :  { %v3118_v21 = vmul.f32 %v3834_v37, %v3832_v44 }
 0x934   :  { %v3836_v55 = vpop.eup %3835 }
 0x935   :  { %v3117_v5 = vmul.f32 %v3836_v55, %v5530_v60  ;;  %v3838_v23 = vpop.eup %3837 }
 0x936   :  { %v3840_v62 = vpop.eup %3839 }
 0x937   :  { %v5680_v34 = vadd.f32 %v3118_v21, %v3117_v5  ;;  %v3842_v22 = vpop.eup %3841  ;;  %v3097_v41 = vmul.f32 %v3840_v62, %v3838_v23 }
 0x939   :  { %3843 = vtanh.f32 %v5680_v34  ;;  %v5683_v54 = vpack.c.bf16 %v3097_v41, %v3097_v41  ;;  %v6852_v41 = vld [vmem:[#allocation174_spill] sm:$0xff] }
 0x946   :  { %v3844_v63 = vpop.eup %3843 }
 0x947   :  { %v3121_v61 = vmul.f32 %v3844_v63, %v3842_v22 }
 0x949   :  { %v3136_v29 = vpack.c.bf16 %v3121_v61, %v3121_v61 }
 0x94b   :  { %3169 = vmatprep.mubr.bf16.mxu0 %v3136_v29  ;;  %3210 = vmatprep.mubr.bf16.mxu1 %v3136_v29 }
 0x94c   :  { %3170 = vmatmul.mubr.bf16.vlgmr.msra.gmra.mxu0 %v5683_v54  ;;  %3211 = vmatmul.mubr.bf16.vlgmr.msra.gmra.mxu1 %v5683_v54 }
 0x94d   :  { %3220 = vmatpush1.bf16.msra.mxu0 %v6243_v31  ;;  %3261 = vmatpush1.bf16.msra.mxu1 %v6244_v9  ;;  %v6826_v31 = vld [vmem:[#allocation124_spill] sm:$0xff]  ;;  %v6827_v9 = vld [vmem:[#allocation125_spill] sm:$0xff] }
 0x94e   :  { %3251 = vmatprep.mubr.bf16.mxu0 %v3136_v29  ;;  %3292 = vmatprep.mubr.bf16.mxu1 %v3136_v29 }
 0x94f   :  { %3221 = vmatprep.subr.bf16.mxu0 %v6245_v11  ;;  %3262 = vmatprep.subr.bf16.mxu1 %v6246_v53  ;;  %v6828_v11 = vld [vmem:[#allocation126_spill] sm:$0xff]  ;;  %v6829_v53 = vld [vmem:[#allocation127_spill] sm:$0xff] }
 0x951   :  { %3222 = vmatpush1.bf16.msra.mxu0 %v6247_v52  ;;  %3263 = vmatpush1.bf16.msra.mxu1 %v6248_v39  ;;  %v6830_v52 = vld [vmem:[#allocation128_spill] sm:$0xff]  ;;  %v6831_v39 = vld [vmem:[#allocation129_spill] sm:$0xff] }
 0x952   :  { %3223 = vmatprep.subr.bf16.mxu0 %v6249_v0  ;;  %3264 = vmatprep.subr.bf16.mxu1 %v6250_v38  ;;  %v6832_v0 = vld [vmem:[#allocation130_spill] sm:$0xff]  ;;  %v6833_v38 = vld [vmem:[#allocation131_spill] sm:$0xff] }
 0x955   :  { %3224 = vmatpush1.bf16.msra.mxu0 %v6251_v3  ;;  %3265 = vmatpush1.bf16.msra.mxu1 %v6252_v12  ;;  %v6834_v3 = vld [vmem:[#allocation132_spill] sm:$0xff]  ;;  %v6835_v12 = vld [vmem:[#allocation133_spill] sm:$0xff] }
 0x956   :  { %3225 = vmatprep.subr.bf16.mxu0 %v6253_v28  ;;  %3266 = vmatprep.subr.bf16.mxu1 %v6254_v46  ;;  %v6836_v28 = vld [vmem:[#allocation134_spill] sm:$0xff]  ;;  %v6837_v46 = vld [vmem:[#allocation135_spill] sm:$0xff] }
 0x959   :  { %3226 = vmatpush1.bf16.msra.mxu0 %v6255_v30  ;;  %3267 = vmatpush1.bf16.msra.mxu1 %v6256_v51  ;;  %v6838_v30 = vld [vmem:[#allocation136_spill] sm:$0xff]  ;;  %v6839_v51 = vld [vmem:[#allocation137_spill] sm:$0xff] }
 0x95a   :  { %3227 = vmatprep.subr.bf16.mxu0 %v6257_v58  ;;  %3268 = vmatprep.subr.bf16.mxu1 %v6258_v59  ;;  %v6840_v58 = vld [vmem:[#allocation138_spill] sm:$0xff]  ;;  %v6841_v59 = vld [vmem:[#allocation139_spill] sm:$0xff] }
 0x95d   :  { %3228 = vmatpush1.bf16.msra.mxu0 %v6259_v4  ;;  %3269 = vmatpush1.bf16.msra.mxu1 %v6346_v1  ;;  %v6842_v4 = vld [vmem:[#allocation140_spill] sm:$0xff] }
 0x95e   :  { %3229 = vmatprep.subr.bf16.mxu0 %v6347_v35  ;;  %3270 = vmatprep.subr.bf16.mxu1 %v6348_v17  ;;  %v6846_v1 = vld [vmem:[#allocation144_spill] sm:$0xff]  ;;  %v6847_v35 = vld [vmem:[#allocation145_spill] sm:$0xff] }
 0x961   :  { %3230 = vmatpush1.bf16.msra.mxu0 %v6349_v24  ;;  %3271 = vmatpush1.bf16.msra.mxu1 %v6350_v16  ;;  %v6848_v16 = vld [vmem:[#allocation170_spill] sm:$0xff] }
 0x962   :  { %3231 = vmatprep.subr.bf16.mxu0 %v6351_v42  ;;  %3272 = vmatprep.subr.bf16.mxu1 %v6352_v32  ;;  %v6849_v32 = vld [vmem:[#allocation171_spill] sm:$0xff] }
 0x965   :  { %3232 = vmatpush1.bf16.msra.mxu0 %v6353_v48  ;;  %3273 = vmatpush1.bf16.msra.mxu1 %v6354_v18 }
 0x966   :  { %3233 = vmatprep.subr.bf16.mxu0 %v6355_v10  ;;  %3274 = vmatprep.subr.bf16.mxu1 %v6356_v8 }
 0x969   :  { %3234 = vmatpush1.bf16.msra.mxu0 %v6357_v19  ;;  %3275 = vmatpush1.bf16.msra.mxu1 %v6358_v40  ;;  %v6850_v19 = vld [vmem:[#allocation172_spill] sm:$0xff] }
 0x96a   :  { %3235 = vmatprep.subr.bf16.mxu0 %v6359_v49  ;;  %3276 = vmatprep.subr.bf16.mxu1 %v6360_v43  ;;  %v6851_v49 = vld [vmem:[#allocation173_spill] sm:$0xff] }
 0x96d   :  { %3236 = vmatpush2.bf16.msra.mxu0 %v6361_v13  ;;  %3277 = vmatpush2.bf16.msra.mxu1 %v6362_v26 }
 0x96e   :  { %3237 = vmatprep.subr.bf16.mxu0 %v6363_v27  ;;  %3278 = vmatprep.subr.bf16.mxu1 %v6364_v57 }
 0x971   :  { %3238 = vmatpush2.bf16.msra.mxu0 %v6365_v33  ;;  %3279 = vmatpush2.bf16.msra.mxu1 %v6280_v14  ;;  %v6844_v14 = vld [vmem:[#allocation142_spill] sm:$0xff] }
 0x972   :  { %3239 = vmatprep.subr.bf16.mxu0 %v6281_v47  ;;  %3280 = vmatprep.subr.bf16.mxu1 %v6282_v45  ;;  %v6843_v45 = vld [vmem:[#allocation141_spill] sm:$0xff]  ;;  %v6845_v47 = vld [vmem:[#allocation143_spill] sm:$0xff] }
 0x975   :  { %3240 = vmatpush2.bf16.msra.mxu0 %v6826_v31  ;;  %3281 = vmatpush2.bf16.msra.mxu1 %v6827_v9  ;;  %v6853_v9 = vld [vmem:[#allocation176_spill] sm:$0xff] }
 0x976   :  { %3241 = vmatprep.subr.bf16.mxu0 %v6828_v11  ;;  %3282 = vmatprep.subr.bf16.mxu1 %v6829_v53 }
 0x979   :  { %3242 = vmatpush2.bf16.msra.mxu0 %v6830_v52  ;;  %3283 = vmatpush2.bf16.msra.mxu1 %v6831_v39 }
 0x97a   :  { %3243 = vmatprep.subr.bf16.mxu0 %v6832_v0  ;;  %3284 = vmatprep.subr.bf16.mxu1 %v6833_v38  ;;  %v6854_v38 = vld [vmem:[#allocation175_spill] sm:$0xff] }
 0x97d   :  { %3244 = vmatpush2.bf16.msra.mxu0 %v6834_v3  ;;  %3285 = vmatpush2.bf16.msra.mxu1 %v6835_v12 }
 0x97e   :  { %3245 = vmatprep.subr.bf16.mxu0 %v6836_v28  ;;  %3286 = vmatprep.subr.bf16.mxu1 %v6837_v46  ;;  %v6855_v28 = vld [vmem:[#allocation177_spill] sm:$0xff] }
 0x981   :  { %3246 = vmatpush2.bf16.msra.mxu0 %v6838_v30  ;;  %3287 = vmatpush2.bf16.msra.mxu1 %v6839_v51 }
 0x982   :  { %3247 = vmatprep.subr.bf16.mxu0 %v6840_v58  ;;  %3288 = vmatprep.subr.bf16.mxu1 %v6841_v59 }
 0x985   :  { %3248 = vmatpush2.bf16.msra.mxu0 %v6842_v4  ;;  %3289 = vmatpush2.bf16.msra.mxu1 %v6843_v45 }
 0x986   :  { %3249 = vmatprep.subr.bf16.mxu0 %v6844_v14  ;;  %3290 = vmatprep.subr.bf16.mxu1 %v6845_v47 }
 0x989   :  { %3250 = vmatpush2.bf16.msra.mxu0 %v6846_v1  ;;  %3291 = vmatpush2.bf16.msra.mxu1 %v6847_v35 }
 0x98c   :  { %3252 = vmatmul.mubr.bf16.vlgmr.msra.gmra.mxu0 %v5683_v54  ;;  %3293 = vmatmul.mubr.bf16.vlgmr.msra.gmra.mxu1 %v5683_v54 }
 0xa0c   :  { %v3171_v17 = vpop.f32.mrf.mxu0  ;;  %v3212_v24 = vpop.f32.mrf.mxu1 }
 0xa0d   :  { %v3301_v42 = vadd.f32 %v3171_v17, %v6848_v16  ;;  %v3303_v48 = vadd.f32 %v3212_v24, %v6849_v32 }
 0xa0e   :  { %v3173_v18 = vpop.f32.mrf.mxu0  ;;  %v3214_v10 = vpop.f32.mrf.mxu1 }
 0xa0f   :  { %v3600_v8 = vmul.f32 -1.442695, %v3301_v42  ;;  %v3302_v40 = vadd.f32 %v3173_v18, %v6850_v19  ;;  %v3304_v43 = vadd.f32 %v3214_v10, %v6851_v49  ;;  %v3602_v60 = vmul.f32 -1.442695, %v3303_v48 }
 0xa10   :  { %v3175_v13 = vpop.f32.mrf.mxu0  ;;  %v3216_v26 = vpop.f32.mrf.mxu1 }
 0xa11   :  { %3845 = vpow2.f32 %v3600_v8  ;;  %v3601_v27 = vmul.f32 -1.442695, %v3302_v40 }
 0xa12   :  { %v3176_v57 = vpop.f32.mrf.mxu0  ;;  %v3217_v33 = vpop.f32.mrf.mxu1 }
 0xa13   :  { %3847 = vpow2.f32 %v3601_v27 }
 0xa14   :  { %3849 = vpow2.f32 %v3602_v60 }
 0xa15   :  { %3851 = vtanh.f32 %v3304_v43 }
 0xa1e   :  { %v3846_v6 = vpop.eup %3845 }
 0xa1f   :  { %v3318_v36 = vadd.f32 1.0, %v3846_v6 }
 0xa20   :  { %v3848_v20 = vpop.eup %3847 }
 0xa21   :  { %3853 = vrcp.f32 %v3318_v36  ;;  %v3319_v50 = vadd.f32 1.0, %v3848_v20  ;;  %v3850_v7 = vpop.eup %3849 }
 0xa22   :  { %v3852_v2 = vpop.eup %3851  ;;  %v3320_v21 = vadd.f32 1.0, %v3850_v7 }
 0xa23   :  { %3855 = vrcp.f32 %v3319_v50 }
 0xa24   :  { %3857 = vrcp.f32 %v3320_v21 }
 0xa2e   :  { %v3854_v44 = vpop.eup %3853 }
 0xa2f   :  { %v3329_v37 = vmul.f32 %v3854_v44, %v3852_v2 }
 0xa30   :  { %v3856_v56 = vpop.eup %3855 }
 0xa31   :  { %v3328_v55 = vmul.f32 %v3856_v56, %v5672_v25  ;;  %v3858_v5 = vpop.eup %3857 }
 0xa33   :  { %v3330_v15 = vadd.f32 %v3329_v37, %v3328_v55 }
 0xa35   :  { %3859 = vtanh.f32 %v3330_v15 }
 0xa42   :  { %v3860_v23 = vpop.eup %3859 }
 0xa43   :  { %v3332_v62 = vmul.f32 %v3860_v23, %v3858_v5 }
 0xa4c   :  { %v3253_v22 = vpop.f32.mrf.mxu0  ;;  %v3294_v63 = vpop.f32.mrf.mxu1 }
 0xa4d   :  { %v3305_v61 = vadd.f32 %v3253_v22, %v6852_v41  ;;  %v3307_v3 = vadd.f32 %v3294_v63, %v6854_v38 }
 0xa4e   :  { %v3255_v29 = vpop.f32.mrf.mxu0  ;;  %v3296_v54 = vpop.f32.mrf.mxu1 }
 0xa4f   :  { %v3603_v31 = vmul.f32 -1.442695, %v3305_v61  ;;  %v3306_v11 = vadd.f32 %v3255_v29, %v6853_v9  ;;  %v3605_v12 = vmul.f32 -1.442695, %v3307_v3  ;;  %v3308_v46 = vadd.f32 %v3296_v54, %v6855_v28 }
 0xa50   :  { %v3257_v53 = vpop.f32.mrf.mxu0  ;;  %v3298_v52 = vpop.f32.mrf.mxu1 }
 0xa51   :  { %3861 = vpow2.f32 %v3603_v31  ;;  %v3604_v39 = vmul.f32 -1.442695, %v3306_v11 }
 0xa52   :  { %v3258_v25 = vpop.f32.mrf.mxu0  ;;  %v3299_v0 = vpop.f32.mrf.mxu1 }
 0xa53   :  { %3863 = vpow2.f32 %v3604_v39 }
 0xa54   :  { %3865 = vpow2.f32 %v3605_v12 }
 0xa55   :  { %3867 = vtanh.f32 %v3308_v46 }
 0xa5e   :  { %v3862_v30 = vpop.eup %3861 }
 0xa5f   :  { %v3342_v51 = vadd.f32 1.0, %v3862_v30 }
 0xa60   :  { %v3864_v58 = vpop.eup %3863 }
 0xa61   :  { %3869 = vrcp.f32 %v3342_v51  ;;  %v3343_v59 = vadd.f32 1.0, %v3864_v58  ;;  %v3866_v4 = vpop.eup %3865 }
 0xa62   :  { %v3868_v45 = vpop.eup %3867  ;;  %v3344_v35 = vadd.f32 1.0, %v3866_v4 }
 0xa63   :  { %3871 = vrcp.f32 %v3343_v59 }
 0xa64   :  { %3873 = vrcp.f32 %v3344_v35 }
 0xa6e   :  { %v3870_v14 = vpop.eup %3869 }
 0xa6f   :  { %v3353_v47 = vmul.f32 %v3870_v14, %v3868_v45 }
 0xa70   :  { %v3872_v1 = vpop.eup %3871 }
 0xa71   :  { %v3352_v17 = vmul.f32 %v3872_v1, %v5680_v34  ;;  %v3874_v16 = vpop.eup %3873 }
 0xa73   :  { %v3354_v24 = vadd.f32 %v3353_v47, %v3352_v17 }
 0xa75   :  { %3875 = vtanh.f32 %v3354_v24 }
 0xa82   :  { %v3876_v42 = vpop.eup %3875 }
 0xa83   :  { %v3356_v32 = vmul.f32 %v3876_v42, %v3874_v16 }
 0xa85   :  { %v3359_v48 = vadd.f32 %v3356_v32, %v3332_v62 }
 0xa87   :  { %3360 = vst [vmem:[#allocation13] sm:$0xff] %v3359_v48 }
 0xa88   :  { %3968 = shalt.err (!%p3965_p10)
}
 0xa89   :  { %3370 = dma.vmem_to_hbm [thread:$0]  %s3368_s3, 128, %s5768_s4, [#allocation7]  }
 0xa8a   :  { %3983 = dma.done.wait [#allocation7], 128  }
 0xa8b   :  { %3984 = vsyncadd [#allocation7], 4294967168 }
 0xa8c   :  { %3374 = vsyncpa [#allocation6], 1 }
 0xa8d   :  { %3375 = vsyncpa [#allocation9], 1 }
 0xa8e   :  { %3376 = vsyncpa [#allocation12], 1 }
 0xa8f   :  { %3377 = vsyncpa [#allocation7], 1 }

</bundles_post_ra>
